<compile_context>
chip_gen: v7x
topology: tpu7x:2x2x1
jax: 0.10.0
libtpu: 0.0.40
codegen_flags: <defaults>
</compile_context>

<pallas_src>
import functools

import jax
import jax.numpy as jnp
from jax.experimental import pallas as pl
from jax.experimental.pallas import tpu as pltpu

_BN_EPS = 1e-5


# ----------------------------------------------------------------------------
# Pallas kernel: fused [im2col-in-VMEM -> single 3x3-conv matmul -> (bias+BN) affine -> ReLU]
# ----------------------------------------------------------------------------
def _fused_conv_bn_relu_kernel(x_ref, w_ref, s_ref, t_ref, o_ref, slab_ref, *, H, W, C):
    """One image per grid step.

    x_ref   : (H+2, W+2, C)  bf16  zero-padded NHWC input (upsampled x1 ++ x2, concatenated)
    w_ref   : (9*C, Cout)    bf16  3x3 conv weight in im2col layout
    s_ref   : (1, Cout)      f32   folded BN scale
    t_ref   : (1, Cout)      f32   folded conv-bias + BN shift
    o_ref   : (H*W, Cout)    f32   output rows (NHWC order), unpadded
    slab_ref: (H*W, 9*C)     bf16  VMEM im2col slab scratch
    """
    # Build the im2col slab once in VMEM: 9 shifted windows of the padded input.
    # Each window is a cheap leading/sublane slice + leading-dim reshape; it is written to
    # the slab exactly once (no per-tap dot, no accumulator chain).
    for tap in range(9):
        di, dj = divmod(tap, 3)
        win = x_ref[di:di + H, dj:dj + W, :].reshape(H * W, C)
        slab_ref[:, tap * C:(tap + 1) * C] = win

    # One K = 9*C MXU matmul with f32 accumulation.
    acc = jnp.dot(slab_ref[...], w_ref[...], preferred_element_type=jnp.float32)

    y = jnp.maximum(acc * s_ref[...] + t_ref[...], 0.0)   # conv bias + BN affine, ReLU
    o_ref[...] = y.astype(o_ref.dtype)                    # Dropout2d: identity in eval mode


def fused_conv_bn_relu(x_nhwc, w, b, gamma, beta, mean, var):
    """x_nhwc: (N, H, W, Cin) f32. w: (Cout, Cin, 3, 3) PyTorch layout."""
    n, h, wd, cin = x_nhwc.shape
    cout, cin_w, kh, kw = w.shape
    assert cin_w == cin and (kh, kw) == (3, 3)

    # Fold conv bias + eval-mode BN into a single per-channel affine.
    scale = gamma / jnp.sqrt(var + _BN_EPS)
    shift = (b - mean) * scale + beta
    scale = scale.reshape(1, cout)
    shift = shift.reshape(1, cout)

    # (Cout, Cin, 3, 3) -> (3, 3, Cin, Cout) -> (9*Cin, Cout), bf16 for the MXU.
    w2 = jnp.transpose(w, (2, 3, 1, 0)).reshape(9 * cin, cout).astype(jnp.bfloat16)

    # Spatial zero-padding for the 'same' 3x3 conv; cast activations to bf16 at the boundary
    # (halves HBM->VMEM DMA bytes, no in-kernel casts).
    xp = jnp.pad(x_nhwc.astype(jnp.bfloat16), ((0, 0), (1, 1), (1, 1), (0, 0)))

    out = pl.pallas_call(
        functools.partial(_fused_conv_bn_relu_kernel, H=h, W=wd, C=cin),
        out_shape=jax.ShapeDtypeStruct((n, h * wd, cout), jnp.float32),
        grid=(n,),
        in_specs=[
            pl.BlockSpec((pl.Squeezed(), h + 2, wd + 2, cin), lambda i: (i, 0, 0, 0)),
            pl.BlockSpec((9 * cin, cout), lambda i: (0, 0)),
            pl.BlockSpec((1, cout), lambda i: (0, 0)),
            pl.BlockSpec((1, cout), lambda i: (0, 0)),
        ],
        out_specs=pl.BlockSpec((pl.Squeezed(), h * wd, cout), lambda i: (i, 0, 0)),
        scratch_shapes=[pltpu.VMEM((h * wd, 9 * cin), jnp.bfloat16)],
        compiler_params=pltpu.CompilerParams(dimension_semantics=("parallel",)),
    )(xp, w2, scale, shift)

    return out.reshape(n, h, wd, cout)


# ----------------------------------------------------------------------------
# Bilinear interpolation (align_corners=True) -- tiny FLOPs, plain-JAX glue
# ----------------------------------------------------------------------------
def _resize_matrix(n_in, n_out):
    if n_out <= 1 or n_in <= 1:
        src = jnp.zeros((n_out,), jnp.float32)
    else:
        src = jnp.arange(n_out, dtype=jnp.float32) * ((n_in - 1) / (n_out - 1))
    i0 = jnp.clip(jnp.floor(src).astype(jnp.int32), 0, n_in - 1)
    i1 = jnp.minimum(i0 + 1, n_in - 1)
    w1 = src - i0.astype(jnp.float32)
    w0 = 1.0 - w1
    m = jnp.zeros((n_out, n_in), jnp.float32)
    m = m.at[jnp.arange(n_out), i0].add(w0)
    m = m.at[jnp.arange(n_out), i1].add(w1)
    return m


def bilinear_resize(x, out_h, out_w):
    """NHWC bilinear resize, align_corners=True (matches F.interpolate). Reference path."""
    if (x.shape[1], x.shape[2]) == (out_h, out_w):
        return x
    mh = _resize_matrix(x.shape[1], out_h)
    mw = _resize_matrix(x.shape[2], out_w)
    return jnp.einsum("oh,nhwc,pw->nopc", mh, x, mw)


# ----------------------------------------------------------------------------
# UpBlock forward (NCHW in / NCHW out, like the PyTorch module)
# ----------------------------------------------------------------------------
def up_block_forward(params, x1_nchw, x2_nchw):
    x1 = jnp.transpose(x1_nchw, (0, 2, 3, 1)).astype(jnp.float32)
    x2 = jnp.transpose(x2_nchw, (0, 2, 3, 1)).astype(jnp.float32)

    # (reference creates `weights = torch.randn(...)` that is never used -> skipped)
    # Compose the two successive bilinear resizes (x2 scale, then resize to x2's HxW) into
    # one pass over x1 (exact when the second resize is the identity).
    h1, w1 = x1.shape[1], x1.shape[2]
    th, tw = x2.shape[1], x2.shape[2]
    mh = _resize_matrix(2 * h1, th) @ _resize_matrix(h1, 2 * h1)
    mw = _resize_matrix(2 * w1, tw) @ _resize_matrix(w1, 2 * w1)
    x1u = jnp.einsum("oh,nhwc,pw->nopc", mh, x1, mw)

    # Channel concat (fused by XLA into the upsample write; the fat tensor never grows).
    x = jnp.concatenate([x1u, x2], axis=-1)

    w, b, gamma, beta, mean, var = params
    out = fused_conv_bn_relu(x, w, b, gamma, beta, mean, var)   # (N, H, W, Cout)
    return jnp.transpose(out, (0, 3, 1, 2))                     # NHWC -> NCHW (~50 KB here)


# ----------------------------------------------------------------------------
# Parameters (PyTorch-default-style init; fresh BatchNorm2d stats)
# ----------------------------------------------------------------------------
def init_params(key, in_channels, out_channels):
    k1, k2 = jax.random.split(key)
    bound = (in_channels * 9) ** -0.5
    w = jax.random.uniform(k1, (out_channels, in_channels, 3, 3), jnp.float32, -bound, bound)
    b = jax.random.uniform(k2, (out_channels,), jnp.float32, -bound, bound)
    gamma = jnp.ones((out_channels,), jnp.float32)
    beta = jnp.zeros((out_channels,), jnp.float32)
    mean = jnp.zeros((out_channels,), jnp.float32)
    var = jnp.ones((out_channels,), jnp.float32)
    return (w, b, gamma, beta, mean, var)


# ----------------------------------------------------------------------------
if __name__ == "__main__":
    C1, C2 = 32, 16                 # x1: low-res / more channels, x2: skip connection
    IN_CH, OUT_CH = C1 + C2, 24     # UpBlock(48, 24), as used in the UNet++ network

    key = jax.random.PRNGKey(0)
    kx1, kx2, kp = jax.random.split(key, 3)
    x1 = jax.random.normal(kx1, (2, C1, 8, 8), jnp.float32)      # NCHW
    x2 = jax.random.normal(kx2, (2, C2, 16, 16), jnp.float32)    # NCHW
    params = init_params(kp, IN_CH, OUT_CH)

    fwd = jax.jit(up_block_forward)
    out = jax.block_until_ready(fwd(params, x1, x2))

    assert out.shape == (2, OUT_CH, 16, 16), out.shape
    assert bool(jnp.all(jnp.isfinite(out)))

    # Sanity check against a pure-XLA f32 reference with the module's two-step resize
    # (loose tolerance: kernel runs the matmul on bf16 operands).
    x1n = jnp.transpose(x1, (0, 2, 3, 1))
    x2n = jnp.transpose(x2, (0, 2, 3, 1))
    x1u = bilinear_resize(bilinear_resize(x1n, 16, 16), 16, 16)
    xin = jnp.concatenate([x1u, x2n], axis=-1)
    w, b, gamma, beta, mean, var = params
    ref = jax.lax.conv_general_dilated(
        xin, jnp.transpose(w, (2, 3, 1, 0)), (1, 1), "SAME",
        dimension_numbers=("NHWC", "HWIO", "NHWC"))
    ref = (ref + b - mean) / jnp.sqrt(var + _BN_EPS) * gamma + beta
    ref = jnp.maximum(ref, 0.0)
    ref = jnp.transpose(ref, (0, 3, 1, 2))
    err = float(jnp.max(jnp.abs(out - ref)))
    assert err < 1e-1, f"max abs err vs XLA reference: {err}"

    print("KERNEL_OK")
</pallas_src>

<mosaic_0001>
module attributes {stable_mosaic.version = 11 : i64} {
  func.func private @main(%arg0: i32) attributes {dimension_semantics = [#tpu.dimension_semantics<core_parallel>], iteration_bounds = array<i64: 2>, tpu.core_type = #tpu.core_type<sc_scalar_subcore>, window_params = []} {
    return
  }
}

module attributes {stable_mosaic.version = 11 : i64} {
  func.func private @main(%arg0: i32) attributes {dimension_semantics = [#tpu.dimension_semantics<core_parallel>], iteration_bounds = array<i64: 2>, tpu.core_type = #tpu.core_type<sc_scalar_subcore>, window_params = []} {
    return
  }
}

module attributes {stable_mosaic.version = 11 : i64} {
  func.func @_fused_conv_bn_relu_kernel(%arg0: i32, %arg1: memref<1x18x18x48xbf16, #tpu.memory_space<vmem>>, %arg2: memref<432x24xbf16, #tpu.memory_space<vmem>>, %arg3: memref<1x24xf32, #tpu.memory_space<vmem>>, %arg4: memref<1x24xf32, #tpu.memory_space<vmem>>, %arg5: memref<1x256x24xf32, #tpu.memory_space<vmem>>, %arg6: memref<256x432xbf16, #tpu.memory_space<vmem>>) attributes {dimension_semantics = [#tpu.dimension_semantics<parallel>], iteration_bounds = array<i64: 2>, scalar_prefetch = 0 : i64, scratch_operands = 1 : i64, tpu.core_type = #tpu.core_type<tc>, window_params = [{transform_indices = @transform_0, window_bounds = array<i64: 1, 18, 18, 48>}, {pipeline_mode = #tpu.pipeline_mode<synchronous>, transform_indices = @transform_1, window_bounds = array<i64: 432, 24>}, {pipeline_mode = #tpu.pipeline_mode<synchronous>, transform_indices = @transform_2, window_bounds = array<i64: 1, 24>}, {pipeline_mode = #tpu.pipeline_mode<synchronous>, transform_indices = @transform_3, window_bounds = array<i64: 1, 24>}, {transform_indices = @transform_4, window_bounds = array<i64: 1, 256, 24>}]} {
    %c0 = arith.constant 0 : index
    %c0_0 = arith.constant 0 : index
    %c0_1 = arith.constant 0 : index
    %c0_2 = arith.constant 0 : index
    %0 = vector.load %arg1[%c0, %c0_0, %c0_1, %c0_2] : memref<1x18x18x48xbf16, #tpu.memory_space<vmem>>, vector<1x16x16x48xbf16>
    %1 = vector.shape_cast %0 : vector<1x16x16x48xbf16> to vector<16x16x48xbf16>
    %2 = vector.shape_cast %1 : vector<16x16x48xbf16> to vector<256x48xbf16>
    %c0_3 = arith.constant 0 : index
    %c0_4 = arith.constant 0 : index
    %3 = vector.load %arg6[%c0_3, %c0_4] : memref<256x432xbf16, #tpu.memory_space<vmem>>, vector<256x48xbf16>
    tpu.vector_store %arg6[%c0_3, %c0_4], %2 {strides = array<i32>} : memref<256x432xbf16, #tpu.memory_space<vmem>>, vector<256x48xbf16>,
    %c0_5 = arith.constant 0 : index
    %c0_6 = arith.constant 0 : index
    %c1 = arith.constant 1 : index
    %c0_7 = arith.constant 0 : index
    %4 = vector.load %arg1[%c0_5, %c0_6, %c1, %c0_7] : memref<1x18x18x48xbf16, #tpu.memory_space<vmem>>, vector<1x16x16x48xbf16>
    %5 = vector.shape_cast %4 : vector<1x16x16x48xbf16> to vector<16x16x48xbf16>
    %6 = vector.shape_cast %5 : vector<16x16x48xbf16> to vector<256x48xbf16>
    %c0_8 = arith.constant 0 : index
    %c48 = arith.constant 48 : index
    %7 = vector.load %arg6[%c0_8, %c48] : memref<256x432xbf16, #tpu.memory_space<vmem>>, vector<256x48xbf16>
    tpu.vector_store %arg6[%c0_8, %c48], %6 {strides = array<i32>} : memref<256x432xbf16, #tpu.memory_space<vmem>>, vector<256x48xbf16>,
    %c0_9 = arith.constant 0 : index
    %c0_10 = arith.constant 0 : index
    %c2 = arith.constant 2 : index
    %c0_11 = arith.constant 0 : index
    %8 = vector.load %arg1[%c0_9, %c0_10, %c2, %c0_11] : memref<1x18x18x48xbf16, #tpu.memory_space<vmem>>, vector<1x16x16x48xbf16>
    %9 = vector.shape_cast %8 : vector<1x16x16x48xbf16> to vector<16x16x48xbf16>
    %10 = vector.shape_cast %9 : vector<16x16x48xbf16> to vector<256x48xbf16>
    %c0_12 = arith.constant 0 : index
    %c96 = arith.constant 96 : index
    %11 = vector.load %arg6[%c0_12, %c96] : memref<256x432xbf16, #tpu.memory_space<vmem>>, vector<256x48xbf16>
    tpu.vector_store %arg6[%c0_12, %c96], %10 {strides = array<i32>} : memref<256x432xbf16, #tpu.memory_space<vmem>>, vector<256x48xbf16>,
    %c0_13 = arith.constant 0 : index
    %c1_14 = arith.constant 1 : index
    %c0_15 = arith.constant 0 : index
    %c0_16 = arith.constant 0 : index
    %12 = vector.load %arg1[%c0_13, %c1_14, %c0_15, %c0_16] : memref<1x18x18x48xbf16, #tpu.memory_space<vmem>>, vector<1x16x16x48xbf16>
    %13 = vector.shape_cast %12 : vector<1x16x16x48xbf16> to vector<16x16x48xbf16>
    %14 = vector.shape_cast %13 : vector<16x16x48xbf16> to vector<256x48xbf16>
    %c0_17 = arith.constant 0 : index
    %c144 = arith.constant 144 : index
    %15 = vector.load %arg6[%c0_17, %c144] : memref<256x432xbf16, #tpu.memory_space<vmem>>, vector<256x48xbf16>
    tpu.vector_store %arg6[%c0_17, %c144], %14 {strides = array<i32>} : memref<256x432xbf16, #tpu.memory_space<vmem>>, vector<256x48xbf16>,
    %c0_18 = arith.constant 0 : index
    %c1_19 = arith.constant 1 : index
    %c1_20 = arith.constant 1 : index
    %c0_21 = arith.constant 0 : index
    %16 = vector.load %arg1[%c0_18, %c1_19, %c1_20, %c0_21] : memref<1x18x18x48xbf16, #tpu.memory_space<vmem>>, vector<1x16x16x48xbf16>
    %17 = vector.shape_cast %16 : vector<1x16x16x48xbf16> to vector<16x16x48xbf16>
    %18 = vector.shape_cast %17 : vector<16x16x48xbf16> to vector<256x48xbf16>
    %c0_22 = arith.constant 0 : index
    %c192 = arith.constant 192 : index
    %19 = vector.load %arg6[%c0_22, %c192] : memref<256x432xbf16, #tpu.memory_space<vmem>>, vector<256x48xbf16>
    tpu.vector_store %arg6[%c0_22, %c192], %18 {strides = array<i32>} : memref<256x432xbf16, #tpu.memory_space<vmem>>, vector<256x48xbf16>,
    %c0_23 = arith.constant 0 : index
    %c1_24 = arith.constant 1 : index
    %c2_25 = arith.constant 2 : index
    %c0_26 = arith.constant 0 : index
    %20 = vector.load %arg1[%c0_23, %c1_24, %c2_25, %c0_26] : memref<1x18x18x48xbf16, #tpu.memory_space<vmem>>, vector<1x16x16x48xbf16>
    %21 = vector.shape_cast %20 : vector<1x16x16x48xbf16> to vector<16x16x48xbf16>
    %22 = vector.shape_cast %21 : vector<16x16x48xbf16> to vector<256x48xbf16>
    %c0_27 = arith.constant 0 : index
    %c240 = arith.constant 240 : index
    %23 = vector.load %arg6[%c0_27, %c240] : memref<256x432xbf16, #tpu.memory_space<vmem>>, vector<256x48xbf16>
    tpu.vector_store %arg6[%c0_27, %c240], %22 {strides = array<i32>} : memref<256x432xbf16, #tpu.memory_space<vmem>>, vector<256x48xbf16>,
    %c0_28 = arith.constant 0 : index
    %c2_29 = arith.constant 2 : index
    %c0_30 = arith.constant 0 : index
    %c0_31 = arith.constant 0 : index
    %24 = vector.load %arg1[%c0_28, %c2_29, %c0_30, %c0_31] : memref<1x18x18x48xbf16, #tpu.memory_space<vmem>>, vector<1x16x16x48xbf16>
    %25 = vector.shape_cast %24 : vector<1x16x16x48xbf16> to vector<16x16x48xbf16>
    %26 = vector.shape_cast %25 : vector<16x16x48xbf16> to vector<256x48xbf16>
    %c0_32 = arith.constant 0 : index
    %c288 = arith.constant 288 : index
    %27 = vector.load %arg6[%c0_32, %c288] : memref<256x432xbf16, #tpu.memory_space<vmem>>, vector<256x48xbf16>
    tpu.vector_store %arg6[%c0_32, %c288], %26 {strides = array<i32>} : memref<256x432xbf16, #tpu.memory_space<vmem>>, vector<256x48xbf16>,
    %c0_33 = arith.constant 0 : index
    %c2_34 = arith.constant 2 : index
    %c1_35 = arith.constant 1 : index
    %c0_36 = arith.constant 0 : index
    %28 = vector.load %arg1[%c0_33, %c2_34, %c1_35, %c0_36] : memref<1x18x18x48xbf16, #tpu.memory_space<vmem>>, vector<1x16x16x48xbf16>
    %29 = vector.shape_cast %28 : vector<1x16x16x48xbf16> to vector<16x16x48xbf16>
    %30 = vector.shape_cast %29 : vector<16x16x48xbf16> to vector<256x48xbf16>
    %c0_37 = arith.constant 0 : index
    %c336 = arith.constant 336 : index
    %31 = vector.load %arg6[%c0_37, %c336] : memref<256x432xbf16, #tpu.memory_space<vmem>>, vector<256x48xbf16>
    tpu.vector_store %arg6[%c0_37, %c336], %30 {strides = array<i32>} : memref<256x432xbf16, #tpu.memory_space<vmem>>, vector<256x48xbf16>,
    %c0_38 = arith.constant 0 : index
    %c2_39 = arith.constant 2 : index
    %c2_40 = arith.constant 2 : index
    %c0_41 = arith.constant 0 : index
    %32 = vector.load %arg1[%c0_38, %c2_39, %c2_40, %c0_41] : memref<1x18x18x48xbf16, #tpu.memory_space<vmem>>, vector<1x16x16x48xbf16>
    %33 = vector.shape_cast %32 : vector<1x16x16x48xbf16> to vector<16x16x48xbf16>
    %34 = vector.shape_cast %33 : vector<16x16x48xbf16> to vector<256x48xbf16>
    %c0_42 = arith.constant 0 : index
    %c384 = arith.constant 384 : index
    %35 = vector.load %arg6[%c0_42, %c384] : memref<256x432xbf16, #tpu.memory_space<vmem>>, vector<256x48xbf16>
    tpu.vector_store %arg6[%c0_42, %c384], %34 {strides = array<i32>} : memref<256x432xbf16, #tpu.memory_space<vmem>>, vector<256x48xbf16>,
    %c0_43 = arith.constant 0 : index
    %c0_44 = arith.constant 0 : index
    %36 = vector.load %arg6[%c0_43, %c0_44] : memref<256x432xbf16, #tpu.memory_space<vmem>>, vector<256x432xbf16>
    %c0_45 = arith.constant 0 : index
    %c0_46 = arith.constant 0 : index
    %37 = vector.load %arg2[%c0_45, %c0_46] : memref<432x24xbf16, #tpu.memory_space<vmem>>, vector<432x24xbf16>
    %cst = arith.constant dense<0.000000e+00> : vector<256x24xf32>
    %38 = tpu.matmul %36, %37, %cst {dimension_numbers = #tpu.dot_dimension_numbers<[1], [0], [0], [1], [0, 0, 1, 1], [], []>} : vector<256x432xbf16>, vector<432x24xbf16>, vector<256x24xf32> -> vector<256x24xf32>
    %c0_47 = arith.constant 0 : index
    %c0_48 = arith.constant 0 : index
    %39 = vector.load %arg3[%c0_47, %c0_48] : memref<1x24xf32, #tpu.memory_space<vmem>>, vector<1x24xf32>
    %40 = vector.broadcast %39 : vector<1x24xf32> to vector<256x24xf32>
    %41 = arith.mulf %38, %40 : vector<256x24xf32>
    %c0_49 = arith.constant 0 : index
    %c0_50 = arith.constant 0 : index
    %42 = vector.load %arg4[%c0_49, %c0_50] : memref<1x24xf32, #tpu.memory_space<vmem>>, vector<1x24xf32>
    %43 = vector.broadcast %42 : vector<1x24xf32> to vector<256x24xf32>
    %44 = arith.addf %41, %43 : vector<256x24xf32>
    %cst_51 = arith.constant 0.000000e+00 : f32
    %45 = vector.broadcast %cst_51 : f32 to vector<256x24xf32>
    %46 = arith.maximumf %44, %45 : vector<256x24xf32>
    %c0_52 = arith.constant 0 : index
    %c0_53 = arith.constant 0 : index
    %c0_54 = arith.constant 0 : index
    %47 = vector.load %arg5[%c0_52, %c0_53, %c0_54] : memref<1x256x24xf32, #tpu.memory_space<vmem>>, vector<1x256x24xf32>
    %48 = vector.shape_cast %47 : vector<1x256x24xf32> to vector<256x24xf32>
    %49 = vector.shape_cast %46 : vector<256x24xf32> to vector<1x256x24xf32>
    tpu.vector_store %arg5[%c0_52, %c0_53, %c0_54], %49 {strides = array<i32>} : memref<1x256x24xf32, #tpu.memory_space<vmem>>, vector<1x256x24xf32>,
    return
  }
  func.func @transform_0(%arg0: i32) -> (i32, i32, i32, i32) {
    %c0_i32 = arith.constant 0 : i32
    %c0_i32_0 = arith.constant 0 : i32
    %c0_i32_1 = arith.constant 0 : i32
    %c0_i32_2 = arith.constant 0 : i32
    return %arg0, %c0_i32, %c0_i32_0, %c0_i32_1 : i32, i32, i32, i32
  }
  func.func @transform_1(%arg0: i32) -> (i32, i32) {
    %c0_i32 = arith.constant 0 : i32
    %c0_i32_0 = arith.constant 0 : i32
    %c0_i32_1 = arith.constant 0 : i32
    return %c0_i32, %c0_i32_0 : i32, i32
  }
  func.func @transform_2(%arg0: i32) -> (i32, i32) {
    %c0_i32 = arith.constant 0 : i32
    %c0_i32_0 = arith.constant 0 : i32
    %c0_i32_1 = arith.constant 0 : i32
    return %c0_i32, %c0_i32_0 : i32, i32
  }
  func.func @transform_3(%arg0: i32) -> (i32, i32) {
    %c0_i32 = arith.constant 0 : i32
    %c0_i32_0 = arith.constant 0 : i32
    %c0_i32_1 = arith.constant 0 : i32
    return %c0_i32, %c0_i32_0 : i32, i32
  }
  func.func @transform_4(%arg0: i32) -> (i32, i32, i32) {
    %c0_i32 = arith.constant 0 : i32
    %c0_i32_0 = arith.constant 0 : i32
    %c0_i32_1 = arith.constant 0 : i32
    return %arg0, %c0_i32, %c0_i32_0 : i32, i32, i32
  }
}

</mosaic_0001>

<bundles_post_ra>
// kernel: up_block_forward.1
= control target key start
LH: loop header
LB: loop body
LE: loop exit
PB: predicated region body
PF: predicated region fallthrough
CT: control target
= control target key end

     0   :  { %9 = vsyncpa [#allocation4], 0  ;;  %s6463_s0 = inlined_call_operand.vmem [shape: bf16[2,18,18,48], index: 0, kind: input, shape index: {}]   ;;  %s6464_s1 = inlined_call_operand.vmem [shape: bf16[432,24], index: 1, kind: input, shape index: {}]   ;;  %s6465_s2 = inlined_call_operand.vmem [shape: f32[1,24], index: 2, kind: input, shape index: {}]   ;;  %s6466_s3 = inlined_call_operand.vmem [shape: f32[1,24], index: 3, kind: input, shape index: {}]   ;;  %s6467_s4 = inlined_call_operand.hbm [shape: f32[2,256,24], index: 4, kind: output, shape index: {}]  }
   0x1   :  { %11 = vsyncpa [#allocation4 + $0x1], 0  ;;  %s5014_s15 = smov 0   ;;  %s5016_s16 = smov 0  }
   0x2   :  { %s5018_s17 = smov 0   ;;  %s5020_s18 = smov 0  }
   0x3 LB: > { %s5035_s19 = sadd.s32 4294967295, %s4976_s18   ;;  %s4172_s20 = sadd.s32 4294967294, %s4976_s18   ;;  %s4976_s18 = sphi %s5020_s18, %s6477_s18   ;;  %s4972_s17 = sphi %s5018_s17, %s6476_s17   ;;  %s4968_s16 = sphi %s5016_s16, %s6475_s16   ;;  %s4964_s15 = sphi %s5014_s15, %s6474_s15  }
   0x4   : > { %s5039_s21 = sadd.s32 1, %s4976_s18   ;;  %s113_s22 = sadd.s32 1, %s4972_s17 }
   0x5   : > { %s110_s23 = ssub.s32 %s4976_s18, %s5039_s21  ;;  %p123_p0 = scmp.ne.s32.totalorder %s4972_s17, %s4968_s16 }
   0x6   : > { %p111_p1 = scmp.eq.s32.totalorder %s110_s23, 0  ;;  %p124_p2 = scmp.eq.s32.totalorder %s5035_s19, 1 }
   0x7   : > { %p129_p3 = scmp.ne.s32.totalorder %s4968_s16, %s4964_s15  ;;  %p130_p4 = scmp.eq.s32.totalorder %s4172_s20, 1 }
   0x8   : > { %s5050_s24 = scalar_select %p111_p1, %s4972_s17, %s113_s22  }
   0x9   : > { %p5052_p5 = por %p124_p2, %p123_p0  ;;  %p5056_p6 = por %p130_p4, %p129_p3 }
   0xa   : > { %p4175_p7 = scmp.ge.s32.totalorder %s4976_s18, 1  ;;  %p165_p8 = scmp.lt.s32.totalorder %s4976_s18, 3 }
   0xc   : > { %p166_p9 = pnand %p4175_p7, %p165_p8 }
   0xd   : > { %p191_p10 = scmp.lt.s32.totalorder (!%p166_p9), %s5035_s19, 1  ;;  %vm986_vm0 = vcmask (!%p166_p9), 1042432   ;;  %vm987_vm1 = vcmask (!%p166_p9), 1046532   ;;  %v4853_v0 = vld [vmem:[%s6464_s1 + $0x80] sm:$0xff] (!%p166_p9)   ;;  %v4978_v1 = vmov (!%p166_p9), 0   ;;  %v4854_v3 = vld [vmem:[%s6464_s1 + $0x88] sm:$0xff] (!%p166_p9)  }
   0xe   : > { %169 = sbr.rel (%p166_p9) target bundleno = 670 (0x29e), region = 36  ;;  %3792 = vmatprep.subr.bf16.mxu1 (!%p166_p9), %v4978_v1  ;;  %vm5068_vm2 = vmor (!%p166_p9), %vm986_vm0, %vm987_vm1  ;;  %vm390_vm3 = vsmask.f32 (!%p166_p9), 3328  ;;  %vm391_vm4 = vsmask.f32 (!%p166_p9), 7440  ;;  %s4979_s10 = smov (!%p166_p9), 16  }
   0xf   : > { %3793 = vmatpush1.bf16.msra.mxu1 (!%p166_p9), %v4853_v0  ;;  %s4980_s11 = smov (!%p166_p9), 32   ;;  %s4981_s12 = smov (!%p166_p9), 96   ;;  %vm5113_vm5 = vmor (!%p166_p9), %vm390_vm3, %vm391_vm4  ;;  %vm1199_vm6 = vcmask (!%p166_p9), 130048   ;;  %vm1392_vm7 = vcmask (!%p166_p9), 523392   ;;  %vm1937_vm8 = vcmask (!%p166_p9), 916992   ;;  %vm2258_vm9 = vcmask (!%p166_p9), 1048448  }
  0x10   : > { %3794 = vmatprep.subr.bf16.mxu1 (!%p166_p9), %v4978_v1  ;;  %s4982_s13 = smov (!%p166_p9), 112   ;;  %s4983_s14 = smov (!%p166_p9), 64   ;;  %vm2260_vm10 = vcmask (!%p166_p9), 261120   ;;  %vm325_vm11 = vcmask (!%p166_p9), 392192   ;;  %vm873_vm12 = vcmask (!%p166_p9), 785792   ;;  %vm1197_vm13 = vcmask (!%p166_p9), 1048320  }
  0x11   : > { %s4984_s20 = smov (!%p166_p9), 48   ;;  %s4985_s22 = smov (!%p166_p9), 80   ;;  %vm2453_vm14 = vcmask (!%p166_p9), 654592   ;;  %vm2998_vm15 = vcmask (!%p166_p9), 1048192   ;;  %vm4063_vm0 = vcmask (!%p166_p9), 195584  }
  0x13   : > { %3795 = vmatpush1.bf16.msra.mxu1 (!%p166_p9), %v4854_v3 }
  0x14   : > { %3796 = vmatprep.subr.bf16.mxu1 (!%p166_p9), %v4978_v1 }
  0x15   : > { %s192_s27 = scalar_select %p191_p10, %s5035_s19, 1 }
  0x17   : > { %s4789_s30 = smul.u32 216, %s192_s27  ;;  %s4986_s27 = smov [#allocation3]  }
  0x18   : > { %s4918_s28 = sshll.u32 %s4986_s27, 4  ;;  %s4919_s28 = int_to_ptr.vmem [resolvable:$false] %s4918_s28 }
  0x19   : > { %s5076_s7 = scalar_lea.vmem %s6463_s0, %s4789_s30  ;;  %s4920_s29 = scalar_lea.vmem %s4919_s28, 8192 }
  0x1a   : > { %v4839_v4 = vld [vmem:[%s5076_s7 + $0xc] sm:$0xff]   ;;  %v4840_v5 = vld [vmem:[%s5076_s7 + $0x18] sm:$0xff]   ;;  %v895_v9 = vld [vmem:[%s5076_s7 + $0x14] sm:$0x1] }
  0x1b   : > { %1344 = vrot.lane.b32.xlu0 %v4839_v4, %s4979_s10  ;;  %v4841_v6 = vld [vmem:[%s5076_s7 + $0x18] sm:$0xff]   ;;  %2405 = vrot.lane.b32.xlu1 %v4840_v5, %s4980_s11  ;;  %v893_v7 = vld [vmem:[%s5076_s7 + $0xc] sm:$0xe]  ;;  %v1001_v12 = vrot.slane %v895_v9, 5 }
  0x1c   : > { %v894_v8 = vld [vmem:[%s5076_s7 + $0x10] sm:$0xf]  ;;  %v4211_v10 = vrot.slane %v893_v7, 9  ;;  %v890_v13 = vld [vmem:[%s5076_s7] sm:$0xe] }
  0x1d   : > { %v998_v11 = vrot.slane %v894_v8, 5  ;;  %v891_v14 = vld [vmem:[%s5076_s7 + $0x4] sm:$0xf]  ;;  %v892_v15 = vld [vmem:[%s5076_s7 + $0x8] sm:$0x1]  ;;  %v4210_v16 = vrot.slane %v890_v13, 9 }
  0x1e   : > { %v991_v19 = vrot.slane %v891_v14, 5  ;;  %v994_v20 = vrot.slane %v892_v15, 5  ;;  %v4290_v21 = vld [vmem:[%s5076_s7 + $0xc] sm:$0xf]  ;;  %v4291_v22 = vld [vmem:[%s5076_s7 + $0x10] sm:$0xf] }
  0x1f   : > { %1346 = vrot.lane.b32.xlu0 %v4841_v6, %s4979_s10  ;;  %v999_v17 = vsel %vm5068_vm2, %v4211_v10, %v998_v11  ;;  %v1000_v18 = vrot.slane %v998_v11, 4  ;;  %v4292_v23 = vld [vmem:[%s5076_s7 + $0x14] sm:$0x1]  ;;  %v1458_v24 = vshrl.u32 %v4290_v21, 16  ;;  %v1461_v25 = vshll.u32 %v4290_v21, 16 }
  0x20   : > { %v992_v27 = vsel %vm5068_vm2, %v4210_v16, %v991_v19  ;;  %v993_v28 = vrot.slane %v991_v19, 4  ;;  %v1467_v29 = vshll.u32 %v4291_v22, 16  ;;  %v4354_v30 = vld [vmem:[%s5076_s7 + $0xc] sm:$0xe]  ;;  %v4355_v31 = vld [vmem:[%s5076_s7 + $0x10] sm:$0xf] }
  0x21   : > { %v1002_v26 = vsel %vm5068_vm2, %v1000_v18, %v1001_v12  ;;  %v1460_v33 = vrot.slane %v1458_v24, 4  ;;  %v1463_v34 = vrot.slane %v1461_v25, 5  ;;  %v1471_v35 = vshrl.u32 %v4291_v22, 16  ;;  %v4356_v36 = vld [vmem:[%s5076_s7 + $0x14] sm:$0x1] }
  0x22   : > { %v4227_v32 = vcombine.low %v999_v17, %v1002_v26  ;;  %v995_v37 = vsel %vm5068_vm2, %v993_v28, %v994_v20  ;;  %v1469_v38 = vrot.slane %v1467_v29, 5  ;;  %v1477_v39 = vshll.u32 %v4292_v23, 16  ;;  %v342_v41 = vld [vmem:[%s5076_s7] sm:$0xf]  ;;  %v343_v46 = vld [vmem:[%s5076_s7 + $0x4] sm:$0xf] }
  0x23   : > { %v4402_v40 = vrot.slane %v4354_v30, 9  ;;  %v4226_v42 = vcombine.low %v992_v27, %v995_v37  ;;  %v1464_v43 = vor.u32 %v1463_v34, %v1460_v33  ;;  %v1473_v44 = vrot.slane %v1471_v35, 4  ;;  %v344_v50 = vld [vmem:[%s5076_s7 + $0x8] sm:$0x1]  ;;  %v4482_v61 = vld [vmem:[%s5076_s7 + $0x18] sm:$0xf] }
  0x24   : > { %1151 = vrot.lane.b32.xlu1 %v4227_v32, %s4981_s12  ;;  %v2052_v45 = vrot.slane %v4355_v31, 5  ;;  %v1479_v48 = vrot.slane %v1477_v39, 5  ;;  %v2055_v49 = vrot.slane %v4356_v36, 5  ;;  %v394_v51 = vshrl.u32 %v342_v41, 16  ;;  %v4483_v4 = vld [vmem:[%s5076_s7 + $0x1c] sm:$0xf] }
  0x25   : > { %v397_v52 = vshll.u32 %v342_v41, 16  ;;  %1149 = vrot.lane.b32.xlu0 %v4226_v42, %s4981_s12  ;;  %v1465_v53 = vrot.slane %v1464_v43, 4  ;;  %v1474_v54 = vor.u32 %v1473_v44, %v1469_v38  ;;  %v403_v59 = vshll.u32 %v343_v46, 16  ;;  %v4484_v9 = vld [vmem:[%s5076_s7 + $0x20] sm:$0x1] }
  0x26   : > { %v2053_v55 = vsel %vm5068_vm2, %v4402_v40, %v2052_v45  ;;  %v2054_v56 = vrot.slane %v2052_v45, 4  ;;  %v396_v57 = vrot.slane %v394_v51, 4  ;;  %v407_v60 = vshrl.u32 %v343_v46, 16  ;;  %v4293_v14 = vld [vmem:[%s5076_s7 + $0x18] sm:$0xf] }
  0x27   : > { %v399_v58 = vrot.slane %v397_v52, 5  ;;  %v1470_v62 = vsel %vm5113_vm5, %v1465_v53, %v1469_v38  ;;  %v1475_v63 = vrot.slane %v1474_v54, 4  ;;  %v413_v3 = vshll.u32 %v344_v50, 16  ;;  %v4294_v19 = vld [vmem:[%s5076_s7 + $0x1c] sm:$0xf] }
  0x28   : > { %v2056_v0 = vsel %vm5068_vm2, %v2054_v56, %v2055_v49  ;;  %v405_v7 = vrot.slane %v403_v59, 5  ;;  %v409_v8 = vrot.slane %v407_v60, 4  ;;  %v2519_v12 = vshrl.u32 %v4482_v61, 16  ;;  %v4295_v24 = vld [vmem:[%s5076_s7 + $0x20] sm:$0x1] }
  0x29   : > { %v4418_v5 = vcombine.low %v2053_v55, %v2056_v0  ;;  %v400_v6 = vor.u32 %v399_v58, %v396_v57  ;;  %v1480_v10 = vsel %vm5113_vm5, %v1475_v63, %v1479_v48  ;;  %v415_v11 = vrot.slane %v413_v3, 5  ;;  %v345_v25 = vld [vmem:[%s5076_s7 + $0xc] sm:$0xf]  ;;  %v346_v42 = vld [vmem:[%s5076_s7 + $0x10] sm:$0xf] }
  0x2a   : > { %v2522_v13 = vshll.u32 %v4482_v61, 16  ;;  %v4338_v15 = vcombine.low %v1470_v62, %v1480_v10  ;;  %v410_v17 = vor.u32 %v409_v8, %v405_v7  ;;  %v2528_v18 = vshll.u32 %v4483_v4, 16  ;;  %v347_v43 = vld [vmem:[%s5076_s7 + $0x14] sm:$0x1]  ;;  %v4357_v49 = vld [vmem:[%s5076_s7 + $0x18] sm:$0xe] }
  0x2b   : > { %2210 = vrot.lane.b32.xlu0 %v4418_v5, %s4982_s13  ;;  %v401_v16 = vrot.slane %v400_v6, 4  ;;  %v2521_v20 = vrot.slane %v2519_v12, 4  ;;  %v2532_v22 = vshrl.u32 %v4483_v4, 16  ;;  %v2538_v23 = vshll.u32 %v4484_v9, 16  ;;  %v4358_v54 = vld [vmem:[%s5076_s7 + $0x1c] sm:$0xf] }
  0x2c   : > { %v2524_v21 = vrot.slane %v2522_v13, 5  ;;  %1889 = vrot.lane.b32.xlu1 %v4338_v15, %s4983_s14  ;;  %v411_v27 = vrot.slane %v410_v17, 4  ;;  %v2530_v28 = vrot.slane %v2528_v18, 5  ;;  %v1482_v29 = vshrl.u32 %v4293_v14, 16  ;;  %v4359_v55 = vld [vmem:[%s5076_s7 + $0x20] sm:$0x1] }
  0x2d   : > { %v406_v26 = vsel %vm5113_vm5, %v401_v16, %v405_v7  ;;  %v2534_v31 = vrot.slane %v2532_v22, 4  ;;  %v2540_v32 = vrot.slane %v2538_v23, 5  ;;  %v1485_v33 = vshll.u32 %v4293_v14, 16  ;;  %v4485_v6 = vld [vmem:[%s5076_s7 + $0x24] sm:$0xf]  ;;  %v4856_v17 = vld [vmem:[%s6464_s1 + $0x90] sm:$0xff]  }
  0x2e   : > { %v2525_v30 = vor.u32 %v2524_v21, %v2521_v20  ;;  %v416_v34 = vsel %vm5113_vm5, %v411_v27, %v415_v11  ;;  %v1484_v35 = vrot.slane %v1482_v29, 4  ;;  %v1491_v36 = vshll.u32 %v4294_v19, 16  ;;  %v4486_v11 = vld [vmem:[%s5076_s7 + $0x28] sm:$0xf]  ;;  %v4487_v16 = vld [vmem:[%s5076_s7 + $0x2c] sm:$0x1]  ;;  %3797 = vmatpush1.bf16.msra.mxu1 %v4856_v17 }
  0x2f   : > { %v1495_v37 = vshrl.u32 %v4294_v19, 16  ;;  %v4194_v38 = vcombine.low %v406_v26, %v416_v34  ;;  %v2535_v40 = vor.u32 %v2534_v31, %v2530_v28  ;;  %v1487_v41 = vrot.slane %v1485_v33, 5  ;;  %v896_v22 = vld [vmem:[%s5076_s7 + $0x18] sm:$0xe]  ;;  %v897_v23 = vld [vmem:[%s5076_s7 + $0x1c] sm:$0xf]  ;;  %3798 = vmatprep.subr.bf16.mxu1 %v4978_v1 }
  0x30   : > { %v2526_v39 = vrot.slane %v2525_v30, 4  ;;  %v1493_v44 = vrot.slane %v1491_v36, 5  ;;  %v1501_v46 = vshll.u32 %v4295_v24, 16  ;;  %v418_v48 = vshrl.u32 %v345_v25, 16  ;;  %v4857_v29 = vld [vmem:[%s6464_s1 + $0x40] sm:$0xff]  }
  0x31   : > { %v1497_v45 = vrot.slane %v1495_v37, 4  ;;  %825 = vrot.lane.b32.xlu1 %v4194_v38, %s4984_s20  ;;  %v2536_v51 = vrot.slane %v2535_v40, 4  ;;  %v1488_v52 = vor.u32 %v1487_v41, %v1484_v35  ;;  %v421_v53 = vshll.u32 %v345_v25, 16  ;;  %v4296_v34 = vld [vmem:[%s5076_s7 + $0x24] sm:$0xf]  ;;  %4677 = vmatprep.subr.bf16.mxu0 %v4857_v29  ;;  %v4859_v41 = vld [vmem:[%s6464_s1 + $0x98] sm:$0xff]  }
  0x32   : > { %v2531_v50 = vsel %vm5113_vm5, %v2526_v39, %v2530_v28  ;;  %v1503_v57 = vrot.slane %v1501_v46, 5  ;;  %v420_v58 = vrot.slane %v418_v48, 4  ;;  %v427_v59 = vshll.u32 %v346_v42, 16  ;;  %v898_v28 = vld [vmem:[%s5076_s7 + $0x20] sm:$0x1]  ;;  %3799 = vmatpush1.bf16.msra.mxu1 %v4859_v41  ;;  %v4864_v29 = vld [vmem:[%s6464_s1 + $0x50] sm:$0xff]  }
  0x33   : > { %v1498_v56 = vor.u32 %v1497_v45, %v1493_v44  ;;  %v2541_v60 = vsel %vm5113_vm5, %v2536_v51, %v2540_v32  ;;  %v1489_v61 = vrot.slane %v1488_v52, 4  ;;  %v423_v62 = vrot.slane %v421_v53, 5  ;;  %v4858_v35 = vld [vmem:[%s6464_s1] sm:$0xff]   ;;  %v4297_v40 = vld [vmem:[%s5076_s7 + $0x28] sm:$0xf]  ;;  %3800 = vmatprep.subr.bf16.mxu1 %v4978_v1 }
  0x34   : > { %v431_v63 = vshrl.u32 %v346_v42, 16  ;;  %v4530_v0 = vcombine.low %v2531_v50, %v2541_v60  ;;  %v429_v4 = vrot.slane %v427_v59, 5  ;;  %v437_v5 = vshll.u32 %v347_v43, 16  ;;  %4678 = vmatpush3.bf16.msra.mxu0 %v4858_v35  ;;  %v4842_v51 = vld [vmem:[%s5076_s7 + $0x24] sm:$0xff]  }
  0x35   : > { %v1499_v3 = vrot.slane %v1498_v56, 4  ;;  %v1494_v7 = vsel %vm5113_vm5, %v1489_v61, %v1493_v44  ;;  %v424_v8 = vor.u32 %v423_v62, %v420_v58  ;;  %v4403_v10 = vrot.slane %v4357_v49, 9  ;;  %v348_v61 = vld [vmem:[%s5076_s7 + $0x18] sm:$0xf]  ;;  %v4861_v62 = vld [vmem:[%s6464_s1 + $0x48] sm:$0xff]  }
  0x36   : > { %v433_v9 = vrot.slane %v431_v63, 4  ;;  %2950 = vrot.lane.b32.xlu0 %v4530_v0, %s4985_s22  ;;  %v439_v13 = vrot.slane %v437_v5, 5  ;;  %v2059_v14 = vrot.slane %v4358_v54, 5  ;;  %v2062_v15 = vrot.slane %v4359_v55, 5  ;;  %v4298_v54 = vld [vmem:[%s5076_s7 + $0x2c] sm:$0x1]  ;;  %4679 = vmatprep.subr.bf16.mxu0 %v4861_v62 }
  0x37   : > { %v1504_v12 = vsel %vm5113_vm5, %v1499_v3, %v1503_v57  ;;  %v425_v19 = vrot.slane %v424_v8, 4  ;;  %v2543_v21 = vshrl.u32 %v4485_v6, 16  ;;  %v2546_v26 = vshll.u32 %v4485_v6, 16  ;;  %v349_v5 = vld [vmem:[%s5076_s7 + $0x1c] sm:$0xf] }
  0x38   : > { %v4339_v18 = vcombine.low %v1494_v7, %v1504_v12  ;;  %v434_v20 = vor.u32 %v433_v9, %v429_v4  ;;  %v2060_v24 = vsel %vm5068_vm2, %v4403_v10, %v2059_v14  ;;  %v2061_v25 = vrot.slane %v2059_v14, 4  ;;  %v350_v10 = vld [vmem:[%s5076_s7 + $0x20] sm:$0x1] }
  0x39   : > { %v2552_v27 = vshll.u32 %v4486_v11, 16  ;;  %v430_v30 = vsel %vm5113_vm5, %v425_v19, %v429_v4  ;;  %v2545_v32 = vrot.slane %v2543_v21, 4  ;;  %v2556_v33 = vshrl.u32 %v4486_v11, 16 }
  0x3a   : > { %1891 = vrot.lane.b32.xlu1 %v4339_v18, %s4983_s14  ;;  %v435_v31 = vrot.slane %v434_v20, 4  ;;  %v2063_v36 = vsel %vm5068_vm2, %v2061_v25, %v2062_v15  ;;  %v2548_v37 = vrot.slane %v2546_v26, 5  ;;  %v2562_v39 = vshll.u32 %v4487_v16, 16  ;;  %v4360_v15 = vld [vmem:[%s5076_s7 + $0x24] sm:$0xe]  ;;  %v4862_v16 = vld [vmem:[%s6464_s1 + $0x8] sm:$0xff]  }
  0x3b   : > { %v2554_v38 = vrot.slane %v2552_v27, 5  ;;  %v4419_v43 = vcombine.low %v2060_v24, %v2063_v36  ;;  %v2558_v44 = vrot.slane %v2556_v33, 4  ;;  %v4212_v45 = vrot.slane %v896_v22, 9  ;;  %v4843_v18 = vld [vmem:[%s5076_s7 + $0x24] sm:$0xff]   ;;  %4680 = vmatpush3.bf16.msra.mxu0 %v4862_v16  ;;  %v4301_v16 = vld [vmem:[%s5076_s7 + $0x38] sm:$0x1] }
  0x3c   : > { %v440_v42 = vsel %vm5113_vm5, %v435_v31, %v439_v13  ;;  %v2549_v48 = vor.u32 %v2548_v37, %v2545_v32  ;;  %v2564_v49 = vrot.slane %v2562_v39, 5  ;;  %v1005_v50 = vrot.slane %v897_v23, 5  ;;  %v4361_v22 = vld [vmem:[%s5076_s7 + $0x28] sm:$0xf]  ;;  %v4863_v23 = vld [vmem:[%s6464_s1 + $0xa0] sm:$0xff]   ;;  %4681 = vmatprep.subr.bf16.mxu0 %v4864_v29 }
  0x3d   : > { %v4195_v46 = vcombine.low %v430_v30, %v440_v42  ;;  %v2559_v52 = vor.u32 %v2558_v44, %v2554_v38  ;;  %v1008_v53 = vrot.slane %v898_v28, 5  ;;  %v1506_v55 = vshrl.u32 %v4296_v34, 16  ;;  %v4362_v28 = vld [vmem:[%s5076_s7 + $0x2c] sm:$0x1]  ;;  %3801 = vmatpush1.bf16.msra.mxu1 %v4863_v23  ;;  %v4866_v44 = vld [vmem:[%s6464_s1 + $0x10] sm:$0xff]  }
  0x3e   : > { %2212 = vrot.lane.b32.xlu1 %v4419_v43, %s4982_s13  ;;  %v1509_v56 = vshll.u32 %v4296_v34, 16  ;;  %v2550_v57 = vrot.slane %v2549_v48, 4  ;;  %v1006_v58 = vsel %vm5068_vm2, %v4212_v45, %v1005_v50  ;;  %v1007_v59 = vrot.slane %v1005_v50, 4  ;;  %v4488_v34 = vld [vmem:[%s5076_s7 + $0x30] sm:$0xf]  ;;  %3802 = vmatprep.subr.bf16.mxu1 %v4978_v1 }
  0x3f   : > { %827 = vrot.lane.b32.xlu0 %v4195_v46, %s4984_s20  ;;  %v1515_v60 = vshll.u32 %v4297_v40, 16  ;;  %v2560_v63 = vrot.slane %v2559_v52, 4  ;;  %v1508_v0 = vrot.slane %v1506_v55, 4  ;;  %v1519_v4 = vshrl.u32 %v4297_v40, 16  ;;  %v4489_v43 = vld [vmem:[%s5076_s7 + $0x34] sm:$0xf]  ;;  %4682 = vmatpush3.bf16.msra.mxu0 %v4866_v44 }
  0x40   : > { %v1511_v3 = vrot.slane %v1509_v56, 5  ;;  %v2555_v6 = vsel %vm5113_vm5, %v2550_v57, %v2554_v38  ;;  %v1009_v7 = vsel %vm5068_vm2, %v1007_v59, %v1008_v53  ;;  %v1525_v9 = vshll.u32 %v4298_v54, 16  ;;  %v4490_v48 = vld [vmem:[%s5076_s7 + $0x38] sm:$0x1]  ;;  %v900_v56 = vld [vmem:[%s5076_s7 + $0x28] sm:$0xf] }
  0x41   : > { %v1517_v8 = vrot.slane %v1515_v60, 5  ;;  %v2565_v11 = vsel %vm5113_vm5, %v2560_v63, %v2564_v49  ;;  %v4228_v12 = vcombine.low %v1006_v58, %v1009_v7  ;;  %v1521_v14 = vrot.slane %v1519_v4, 4  ;;  %v4299_v4 = vld [vmem:[%s5076_s7 + $0x30] sm:$0xf] }
  0x42   : > { %v1512_v13 = vor.u32 %v1511_v3, %v1508_v0  ;;  %v4531_v17 = vcombine.low %v2555_v6, %v2565_v11  ;;  %v1527_v19 = vrot.slane %v1525_v9, 5  ;;  %v442_v20 = vshrl.u32 %v348_v61, 16  ;;  %v901_v3 = vld [vmem:[%s5076_s7 + $0x2c] sm:$0x1]  ;;  %v4300_v9 = vld [vmem:[%s5076_s7 + $0x34] sm:$0xf] }
  0x43   : > { %2407 = vrot.lane.b32.xlu0 %v4842_v51, %s4980_s11  ;;  %v445_v21 = vshll.u32 %v348_v61, 16  ;;  %v1522_v25 = vor.u32 %v1521_v14, %v1517_v8  ;;  %v451_v26 = vshll.u32 %v349_v5, 16  ;;  %v455_v27 = vshrl.u32 %v349_v5, 16  ;;  %v899_v51 = vld [vmem:[%s5076_s7 + $0x24] sm:$0xe] }
  0x44   : > { %v1513_v24 = vrot.slane %v1512_v13, 4  ;;  %2952 = vrot.lane.b32.xlu1 %v4531_v17, %s4985_s22  ;;  %v444_v30 = vrot.slane %v442_v20, 4  ;;  %v461_v32 = vshll.u32 %v350_v10, 16  ;;  %v4404_v33 = vrot.slane %v4360_v15, 9  ;;  %v4867_v10 = vld [vmem:[%s6464_s1 + $0xa8] sm:$0xff]   ;;  %v4868_v17 = vld [vmem:[%s6464_s1 + $0x58] sm:$0xff]  }
  0x45   : > { %v447_v31 = vrot.slane %v445_v21, 5  ;;  %v1523_v36 = vrot.slane %v1522_v25, 4  ;;  %v453_v37 = vrot.slane %v451_v26, 5  ;;  %v457_v38 = vrot.slane %v455_v27, 4  ;;  %3803 = vmatpush1.bf16.msra.mxu1 %v4867_v10  ;;  %v4869_v27 = vld [vmem:[%s6464_s1 + $0x18] sm:$0xff]   ;;  %4683 = vmatprep.subr.bf16.mxu0 %v4868_v17 }
  0x46   : > { %v1518_v35 = vsel %vm5113_vm5, %v1513_v24, %v1517_v8  ;;  %v463_v40 = vrot.slane %v461_v32, 5  ;;  %v2066_v41 = vrot.slane %v4361_v22, 5  ;;  %v2069_v42 = vrot.slane %v4362_v28, 5  ;;  %v351_v22 = vld [vmem:[%s5076_s7 + $0x24] sm:$0xf]  ;;  %3804 = vmatprep.subr.bf16.mxu1 %v4978_v1  ;;  %4684 = vmatpush3.bf16.msra.mxu0 %v4869_v27 }
  0x47   : > { %1153 = vrot.lane.b32.xlu0 %v4228_v12, %s4981_s12  ;;  %v448_v39 = vor.u32 %v447_v31, %v444_v30  ;;  %v1528_v45 = vsel %vm5113_vm5, %v1523_v36, %v1527_v19  ;;  %v458_v46 = vor.u32 %v457_v38, %v453_v37  ;;  %v2567_v49 = vshrl.u32 %v4488_v34, 16  ;;  %v4844_v12 = vld [vmem:[%s5076_s7 + $0x30] sm:$0xff]   ;;  %v352_v38 = vld [vmem:[%s5076_s7 + $0x28] sm:$0xf] }
  0x48   : > { %v2570_v50 = vshll.u32 %v4488_v34, 16  ;;  %1348 = vrot.lane.b32.xlu1 %v4843_v18, %s4979_s10  ;;  %v4340_v52 = vcombine.low %v1518_v35, %v1528_v45  ;;  %v2067_v54 = vsel %vm5068_vm2, %v4404_v33, %v2066_v41  ;;  %v2068_v55 = vrot.slane %v2066_v41, 4  ;;  %v4870_v41 = vld [vmem:[%s6464_s1 + $0xb0] sm:$0xff]  }
  0x49   : > { %v449_v53 = vrot.slane %v448_v39, 4  ;;  %v459_v57 = vrot.slane %v458_v46, 4  ;;  %v2569_v58 = vrot.slane %v2567_v49, 4  ;;  %v2576_v60 = vshll.u32 %v4489_v43, 16  ;;  %v353_v46 = vld [vmem:[%s5076_s7 + $0x2c] sm:$0x1]  ;;  %3805 = vmatpush1.bf16.msra.mxu1 %v4870_v41 }
  0x4a   : > { %v2572_v59 = vrot.slane %v2570_v50, 5  ;;  %v2070_v62 = vsel %vm5068_vm2, %v2068_v55, %v2069_v42  ;;  %v2580_v63 = vshrl.u32 %v4489_v43, 16  ;;  %v2586_v0 = vshll.u32 %v4490_v48, 16  ;;  %v4363_v48 = vld [vmem:[%s5076_s7 + $0x30] sm:$0xe]  ;;  %v4871_v55 = vld [vmem:[%s6464_s1 + $0x60] sm:$0xff]   ;;  %3806 = vmatprep.subr.bf16.mxu1 %v4978_v1 }
  0x4b   : > { %1893 = vrot.lane.b32.xlu0 %v4340_v52, %s4983_s14  ;;  %v454_v61 = vsel %vm5113_vm5, %v449_v53, %v453_v37  ;;  %v464_v5 = vsel %vm5113_vm5, %v459_v57, %v463_v40  ;;  %v4420_v6 = vcombine.low %v2067_v54, %v2070_v62  ;;  %v2578_v8 = vrot.slane %v2576_v60, 5  ;;  %v4364_v49 = vld [vmem:[%s5076_s7 + $0x34] sm:$0xf]  ;;  %v4365_v54 = vld [vmem:[%s5076_s7 + $0x38] sm:$0x1]  ;;  %4685 = vmatprep.subr.bf16.mxu0 %v4871_v55 }
  0x4c   : > { %v2573_v7 = vor.u32 %v2572_v59, %v2569_v58  ;;  %v4196_v11 = vcombine.low %v454_v61, %v464_v5  ;;  %v2582_v13 = vrot.slane %v2580_v63, 4  ;;  %v2588_v14 = vrot.slane %v2586_v0, 5  ;;  %v4491_v60 = vld [vmem:[%s5076_s7 + $0x3c] sm:$0xf]  ;;  %v4845_v61 = vld [vmem:[%s5076_s7 + $0x30] sm:$0xff]  }
  0x4d   : > { %v4213_v15 = vrot.slane %v899_v51, 9  ;;  %v1012_v19 = vrot.slane %v900_v56, 5  ;;  %v1015_v20 = vrot.slane %v901_v3, 5  ;;  %v1530_v21 = vshrl.u32 %v4299_v4, 16 }
  0x4e   : > { %v2574_v18 = vrot.slane %v2573_v7, 4  ;;  %829 = vrot.lane.b32.xlu1 %v4196_v11, %s4984_s20  ;;  %v2583_v23 = vor.u32 %v2582_v13, %v2578_v8  ;;  %v1533_v24 = vshll.u32 %v4299_v4, 16  ;;  %v1539_v25 = vshll.u32 %v4300_v9, 16  ;;  %v4492_v4 = vld [vmem:[%s5076_s7 + $0x40] sm:$0xf] }
  0x4f   : > { %2214 = vrot.lane.b32.xlu0 %v4420_v6, %s4982_s13  ;;  %v1543_v26 = vshrl.u32 %v4300_v9, 16  ;;  %v1013_v29 = vsel %vm5068_vm2, %v4213_v15, %v1012_v19  ;;  %v1014_v30 = vrot.slane %v1012_v19, 4  ;;  %v1532_v31 = vrot.slane %v1530_v21, 4  ;;  %v4493_v13 = vld [vmem:[%s5076_s7 + $0x44] sm:$0x1] }
  0x50   : > { %v2579_v28 = vsel %vm5113_vm5, %v2574_v18, %v2578_v8  ;;  %v2584_v32 = vrot.slane %v2583_v23, 4  ;;  %v1535_v33 = vrot.slane %v1533_v24, 5  ;;  %v1541_v34 = vrot.slane %v1539_v25, 5  ;;  %v903_v19 = vld [vmem:[%s5076_s7 + $0x34] sm:$0xf] }
  0x51   : > { %v1545_v35 = vrot.slane %v1543_v26, 4  ;;  %v1016_v36 = vsel %vm5068_vm2, %v1014_v30, %v1015_v20  ;;  %v1549_v37 = vshll.u32 %v4301_v16, 16  ;;  %v466_v39 = vshrl.u32 %v351_v22, 16  ;;  %v4873_v20 = vld [vmem:[%s6464_s1 + $0x20] sm:$0xff]   ;;  %v904_v25 = vld [vmem:[%s5076_s7 + $0x38] sm:$0x1] }
  0x52   : > { %v469_v40 = vshll.u32 %v351_v22, 16  ;;  %2409 = vrot.lane.b32.xlu1 %v4844_v12, %s4980_s11  ;;  %v2589_v42 = vsel %vm5113_vm5, %v2584_v32, %v2588_v14  ;;  %v4229_v43 = vcombine.low %v1013_v29, %v1016_v36  ;;  %v1536_v44 = vor.u32 %v1535_v33, %v1532_v31  ;;  %v902_v14 = vld [vmem:[%s5076_s7 + $0x30] sm:$0xe]  ;;  %v4874_v26 = vld [vmem:[%s6464_s1 + $0xb8] sm:$0xff]   ;;  %4686 = vmatpush3.bf16.msra.mxu0 %v4873_v20  ;;  %v4875_v32 = vld [vmem:[%s6464_s1 + $0x68] sm:$0xff]  }
  0x53   : > { %v1546_v45 = vor.u32 %v1545_v35, %v1541_v34  ;;  %v4532_v50 = vcombine.low %v2579_v28, %v2589_v42  ;;  %v1551_v51 = vrot.slane %v1549_v37, 5  ;;  %v468_v52 = vrot.slane %v466_v39, 4  ;;  %v4302_v31 = vld [vmem:[%s5076_s7 + $0x3c] sm:$0xf]  ;;  %v4303_v37 = vld [vmem:[%s5076_s7 + $0x40] sm:$0xf]  ;;  %3807 = vmatpush1.bf16.msra.mxu1 %v4874_v26  ;;  %4687 = vmatprep.subr.bf16.mxu0 %v4875_v32 }
  0x54   : > { %v471_v53 = vrot.slane %v469_v40, 5  ;;  %v1537_v56 = vrot.slane %v1536_v44, 4  ;;  %v475_v58 = vshll.u32 %v352_v38, 16  ;;  %v479_v59 = vshrl.u32 %v352_v38, 16  ;;  %v4876_v38 = vld [vmem:[%s6464_s1 + $0x28] sm:$0xff]   ;;  %3808 = vmatprep.subr.bf16.mxu1 %v4978_v1 }
  0x55   : > { %v1547_v57 = vrot.slane %v1546_v45, 4  ;;  %2954 = vrot.lane.b32.xlu0 %v4532_v50, %s4985_s22  ;;  %v485_v63 = vshll.u32 %v353_v46, 16  ;;  %v4405_v0 = vrot.slane %v4363_v48, 9  ;;  %v2073_v3 = vrot.slane %v4364_v49, 5  ;;  %v4304_v48 = vld [vmem:[%s5076_s7 + $0x44] sm:$0x1] }
  0x56   : > { %v472_v62 = vor.u32 %v471_v53, %v468_v52  ;;  %1155 = vrot.lane.b32.xlu1 %v4229_v43, %s4981_s12  ;;  %v1542_v5 = vsel %vm5113_vm5, %v1537_v56, %v1541_v34  ;;  %v477_v7 = vrot.slane %v475_v58, 5  ;;  %v481_v8 = vrot.slane %v479_v59, 4  ;;  %v4878_v49 = vld [vmem:[%s6464_s1 + $0xc0] sm:$0xff]   ;;  %4688 = vmatpush3.bf16.msra.mxu0 %v4876_v38  ;;  %v354_v59 = vld [vmem:[%s5076_s7 + $0x30] sm:$0xf] }
  0x57   : > { %v1552_v6 = vsel %vm5113_vm5, %v1547_v57, %v1551_v51  ;;  %v487_v11 = vrot.slane %v485_v63, 5  ;;  %v2074_v12 = vsel %vm5068_vm2, %v4405_v0, %v2073_v3  ;;  %v2075_v16 = vrot.slane %v2073_v3, 4  ;;  %v4846_v50 = vld [vmem:[%s5076_s7 + $0x3c] sm:$0xff]   ;;  %3809 = vmatpush1.bf16.msra.mxu1 %v4878_v49  ;;  %v355_v0 = vld [vmem:[%s5076_s7 + $0x34] sm:$0xf] }
  0x58   : > { %v4341_v9 = vcombine.low %v1542_v5, %v1552_v6  ;;  %v473_v10 = vrot.slane %v472_v62, 4  ;;  %v482_v15 = vor.u32 %v481_v8, %v477_v7  ;;  %v2076_v17 = vrot.slane %v4365_v54, 5  ;;  %v4880_v3 = vld [vmem:[%s6464_s1 + $0x70] sm:$0xff]   ;;  %3810 = vmatprep.subr.bf16.mxu1 %v4978_v1  ;;  %v356_v8 = vld [vmem:[%s5076_s7 + $0x38] sm:$0x1] }
  0x59   : > { %v2591_v18 = vshrl.u32 %v4491_v60, 16  ;;  %1350 = vrot.lane.b32.xlu0 %v4845_v61, %s4979_s10  ;;  %v2594_v22 = vshll.u32 %v4491_v60, 16  ;;  %v2600_v23 = vshll.u32 %v4492_v4, 16  ;;  %v2604_v24 = vshrl.u32 %v4492_v4, 16  ;;  %4689 = vmatprep.subr.bf16.mxu0 %v4880_v3  ;;  %v906_v49 = vld [vmem:[%s5076_s7 + $0x40] sm:$0xf] }
  0x5a   : > { %v478_v21 = vsel %vm5113_vm5, %v473_v10, %v477_v7  ;;  %1895 = vrot.lane.b32.xlu1 %v4341_v9, %s4983_s14  ;;  %v483_v27 = vrot.slane %v482_v15, 4  ;;  %v2077_v28 = vsel %vm5068_vm2, %v2075_v16, %v2076_v17  ;;  %v2610_v30 = vshll.u32 %v4493_v13, 16  ;;  %v4366_v9 = vld [vmem:[%s5076_s7 + $0x3c] sm:$0xe]  ;;  %v4881_v10 = vld [vmem:[%s6464_s1 + $0x30] sm:$0xff]  }
  0x5b   : > { %v2593_v29 = vrot.slane %v2591_v18, 4  ;;  %v4421_v33 = vcombine.low %v2074_v12, %v2077_v28  ;;  %v2596_v34 = vrot.slane %v2594_v22, 5  ;;  %v2602_v35 = vrot.slane %v2600_v23, 5  ;;  %v4847_v12 = vld [vmem:[%s5076_s7 + $0x3c] sm:$0xff]   ;;  %v4368_v17 = vld [vmem:[%s5076_s7 + $0x44] sm:$0x1]  ;;  %4690 = vmatpush3.bf16.msra.mxu0 %v4881_v10 }
  0x5c   : > { %v2606_v36 = vrot.slane %v2604_v24, 4  ;;  %v488_v39 = vsel %vm5113_vm5, %v483_v27, %v487_v11  ;;  %v2612_v40 = vrot.slane %v2610_v30, 5  ;;  %v4214_v41 = vrot.slane %v902_v14, 9  ;;  %v4367_v16 = vld [vmem:[%s5076_s7 + $0x40] sm:$0xf]  ;;  %v4882_v27 = vld [vmem:[%s6464_s1 + $0xc8] sm:$0xff]  }
  0x5d   : > { %v1019_v42 = vrot.slane %v903_v19, 5  ;;  %v4197_v43 = vcombine.low %v478_v21, %v488_v39  ;;  %v2597_v44 = vor.u32 %v2596_v34, %v2593_v29  ;;  %v1022_v46 = vrot.slane %v904_v25, 5  ;;  %v4494_v22 = vld [vmem:[%s5076_s7 + $0x48] sm:$0xf]  ;;  %3811 = vmatpush1.bf16.msra.mxu1 %v4882_v27  ;;  %v358_v27 = vld [vmem:[%s5076_s7 + $0x40] sm:$0xf] }
  0x5e   : > { %v2607_v45 = vor.u32 %v2606_v36, %v2602_v35  ;;  %2216 = vrot.lane.b32.xlu1 %v4421_v33, %s4982_s13  ;;  %v1554_v53 = vshrl.u32 %v4302_v31, 16  ;;  %v1557_v54 = vshll.u32 %v4302_v31, 16  ;;  %v1563_v57 = vshll.u32 %v4303_v37, 16  ;;  %v4883_v36 = vld [vmem:[%s6464_s1 + $0x78] sm:$0xff]   ;;  %3812 = vmatprep.subr.bf16.mxu1 %v4978_v1 }
  0x5f   : > { %v1020_v51 = vsel %vm5068_vm2, %v4214_v41, %v1019_v42  ;;  %v1021_v52 = vrot.slane %v1019_v42, 4  ;;  %831 = vrot.lane.b32.xlu0 %v4197_v43, %s4984_s20  ;;  %v2598_v55 = vrot.slane %v2597_v44, 4  ;;  %v1567_v58 = vshrl.u32 %v4303_v37, 16  ;;  %v4496_v41 = vld [vmem:[%s5076_s7 + $0x50] sm:$0x1]  ;;  %4691 = vmatprep.subr.bf16.mxu0 %v4883_v36  ;;  %v4884_v1 = vld [vmem:[%s6464_s1 + $0x38] sm:$0xff]  }
  0x60   : > { %v2608_v56 = vrot.slane %v2607_v45, 4  ;;  %v1556_v61 = vrot.slane %v1554_v53, 4  ;;  %v1559_v62 = vrot.slane %v1557_v54, 5  ;;  %v1573_v63 = vshll.u32 %v4304_v48, 16  ;;  %v905_v48 = vld [vmem:[%s5076_s7 + $0x3c] sm:$0xe]  ;;  %4692 = vmatpush3.bf16.msra.mxu0 %v4884_v1 }
  0x61   : > { %v1023_v60 = vsel %vm5068_vm2, %v1021_v52, %v1022_v46  ;;  %v2603_v4 = vsel %vm5113_vm5, %v2598_v55, %v2602_v35  ;;  %v1565_v7 = vrot.slane %v1563_v57, 5  ;;  %v1569_v14 = vrot.slane %v1567_v58, 4  ;;  %v907_v54 = vld [vmem:[%s5076_s7 + $0x44] sm:$0x1] }
  0x62   : > { %v2613_v5 = vsel %vm5113_vm5, %v2608_v56, %v2612_v40  ;;  %v4230_v6 = vcombine.low %v1020_v51, %v1023_v60  ;;  %v1560_v13 = vor.u32 %v1559_v62, %v1556_v61  ;;  %v1575_v15 = vrot.slane %v1573_v63, 5  ;;  %v4495_v40 = vld [vmem:[%s5076_s7 + $0x4c] sm:$0xf]  ;;  %v4305_v63 = vld [vmem:[%s5076_s7 + $0x48] sm:$0xf] }
  0x63   : > { %v4533_v11 = vcombine.low %v2603_v4, %v2613_v5  ;;  %2411 = vrot.lane.b32.xlu0 %v4846_v50, %s4980_s11  ;;  %v490_v18 = vshrl.u32 %v354_v59, 16  ;;  %v493_v19 = vshll.u32 %v354_v59, 16  ;;  %v499_v20 = vshll.u32 %v355_v0, 16 }
  0x64   : > { %v503_v21 = vshrl.u32 %v355_v0, 16  ;;  %v1561_v23 = vrot.slane %v1560_v13, 4  ;;  %v1570_v24 = vor.u32 %v1569_v14, %v1565_v7  ;;  %v509_v25 = vshll.u32 %v356_v8, 16  ;;  %v4886_v0 = vld [vmem:[%s6464_s1 + $0xd0] sm:$0xff]  }
  0x65   : > { %2956 = vrot.lane.b32.xlu1 %v4533_v11, %s4985_s22  ;;  %v4406_v26 = vrot.slane %v4366_v9, 9  ;;  %v492_v28 = vrot.slane %v490_v18, 4  ;;  %v495_v29 = vrot.slane %v493_v19, 5  ;;  %v501_v30 = vrot.slane %v499_v20, 5  ;;  %3813 = vmatpush1.bf16.msra.mxu1 %v4886_v0 }
  0x66   : > { %v505_v31 = vrot.slane %v503_v21, 4  ;;  %v1566_v32 = vsel %vm5113_vm5, %v1561_v23, %v1565_v7  ;;  %v1571_v33 = vrot.slane %v1570_v24, 4  ;;  %v511_v34 = vrot.slane %v509_v25, 5  ;;  %v4306_v7 = vld [vmem:[%s5076_s7 + $0x4c] sm:$0xf] }
  0x67   : > { %v2080_v35 = vrot.slane %v4367_v16, 5  ;;  %1157 = vrot.lane.b32.xlu0 %v4230_v6, %s4981_s12  ;;  %v496_v37 = vor.u32 %v495_v29, %v492_v28  ;;  %v2083_v39 = vrot.slane %v4368_v17, 5  ;;  %v2615_v42 = vshrl.u32 %v4494_v22, 16 }
  0x68   : > { %v506_v38 = vor.u32 %v505_v31, %v501_v30  ;;  %v1576_v43 = vsel %vm5113_vm5, %v1571_v33, %v1575_v15  ;;  %v2618_v46 = vshll.u32 %v4494_v22, 16  ;;  %v2624_v57 = vshll.u32 %v4495_v40, 16  ;;  %v4307_v15 = vld [vmem:[%s5076_s7 + $0x50] sm:$0x1]  ;;  %v357_v22 = vld [vmem:[%s5076_s7 + $0x3c] sm:$0xf] }
  0x69   : > { %1352 = vrot.lane.b32.xlu1 %v4847_v12, %s4979_s10  ;;  %v2081_v44 = vsel %vm5068_vm2, %v4406_v26, %v2080_v35  ;;  %v2082_v45 = vrot.slane %v2080_v35, 4  ;;  %v4342_v50 = vcombine.low %v1566_v32, %v1576_v43  ;;  %v497_v51 = vrot.slane %v496_v37, 4  ;;  %v4848_v12 = vld [vmem:[%s5076_s7 + $0x48] sm:$0xff]   ;;  %v359_v32 = vld [vmem:[%s5076_s7 + $0x44] sm:$0x1] }
  0x6a   : > { %v507_v52 = vrot.slane %v506_v38, 4  ;;  %v2617_v53 = vrot.slane %v2615_v42, 4  ;;  %v2620_v56 = vrot.slane %v2618_v46, 5  ;;  %v2628_v58 = vshrl.u32 %v4495_v40, 16  ;;  %v4369_v37 = vld [vmem:[%s5076_s7 + $0x48] sm:$0xe] }
  0x6b   : > { %v2084_v55 = vsel %vm5068_vm2, %v2082_v45, %v2083_v39  ;;  %1897 = vrot.lane.b32.xlu0 %v4342_v50, %s4983_s14  ;;  %v502_v59 = vsel %vm5113_vm5, %v497_v51, %v501_v30  ;;  %v2634_v62 = vshll.u32 %v4496_v41, 16  ;;  %v2626_v5 = vrot.slane %v2624_v57, 5  ;;  %v4849_v39 = vld [vmem:[%s5076_s7 + $0x48] sm:$0xff]  }
  0x6c   : > { %v512_v60 = vsel %vm5113_vm5, %v507_v52, %v511_v34  ;;  %v4422_v61 = vcombine.low %v2081_v44, %v2084_v55  ;;  %v2621_v4 = vor.u32 %v2620_v56, %v2617_v53  ;;  %v2630_v6 = vrot.slane %v2628_v58, 4  ;;  %v4370_v43 = vld [vmem:[%s5076_s7 + $0x4c] sm:$0xf]  ;;  %v4498_v58 = vld [vmem:[%s5076_s7 + $0x58] sm:$0xf] }
  0x6d   : > { %v4198_v3 = vcombine.low %v502_v59, %v512_v60  ;;  %v2636_v8 = vrot.slane %v2634_v62, 5  ;;  %v4215_v9 = vrot.slane %v905_v48, 9  ;;  %v1026_v10 = vrot.slane %v906_v49, 5  ;;  %v4371_v49 = vld [vmem:[%s5076_s7 + $0x50] sm:$0x1] }
  0x6e   : > { %v1029_v11 = vrot.slane %v907_v54, 5  ;;  %v2622_v13 = vrot.slane %v2621_v4, 4  ;;  %v2631_v14 = vor.u32 %v2630_v6, %v2626_v5  ;;  %v1578_v16 = vshrl.u32 %v4305_v63, 16  ;;  %v4497_v54 = vld [vmem:[%s5076_s7 + $0x54] sm:$0xf] }
  0x6f   : > { %833 = vrot.lane.b32.xlu1 %v4198_v3, %s4984_s20  ;;  %v1581_v17 = vshll.u32 %v4305_v63, 16  ;;  %2218 = vrot.lane.b32.xlu0 %v4422_v61, %s4982_s13  ;;  %v1027_v18 = vsel %vm5068_vm2, %v4215_v9, %v1026_v10  ;;  %v1028_v19 = vrot.slane %v1026_v10, 4  ;;  %v1587_v20 = vshll.u32 %v4306_v7, 16  ;;  %v4499_v63 = vld [vmem:[%s5076_s7 + $0x5c] sm:$0x1] }
  0x70   : > { %v1591_v21 = vshrl.u32 %v4306_v7, 16  ;;  %v2627_v23 = vsel %vm5113_vm5, %v2622_v13, %v2626_v5  ;;  %v2632_v24 = vrot.slane %v2631_v14, 4  ;;  %v1580_v25 = vrot.slane %v1578_v16, 4  ;;  %v908_v10 = vld [vmem:[%s5076_s7 + $0x48] sm:$0xe] }
  0x71   : > { %v1583_v26 = vrot.slane %v1581_v17, 5  ;;  %v1030_v28 = vsel %vm5068_vm2, %v1028_v19, %v1029_v11  ;;  %v1589_v29 = vrot.slane %v1587_v20, 5  ;;  %v1597_v31 = vshll.u32 %v4307_v15, 16  ;;  %v909_v15 = vld [vmem:[%s5076_s7 + $0x4c] sm:$0xf] }
  0x72   : > { %v1593_v30 = vrot.slane %v1591_v21, 4  ;;  %v2637_v33 = vsel %vm5113_vm5, %v2632_v24, %v2636_v8  ;;  %v4231_v34 = vcombine.low %v1027_v18, %v1030_v28  ;;  %v514_v36 = vshrl.u32 %v357_v22, 16  ;;  %v910_v20 = vld [vmem:[%s5076_s7 + $0x50] sm:$0x1]  ;;  %v4308_v21 = vld [vmem:[%s5076_s7 + $0x54] sm:$0xf] }
  0x73   : > { %2413 = vrot.lane.b32.xlu1 %v4848_v12, %s4980_s11  ;;  %v1584_v35 = vor.u32 %v1583_v26, %v1580_v25  ;;  %v4534_v38 = vcombine.low %v2627_v23, %v2637_v33  ;;  %v1599_v41 = vrot.slane %v1597_v31, 5  ;;  %v517_v42 = vshll.u32 %v357_v22, 16  ;;  %v4309_v26 = vld [vmem:[%s5076_s7 + $0x58] sm:$0xf]  ;;  %v4310_v31 = vld [vmem:[%s5076_s7 + $0x5c] sm:$0x1] }
  0x74   : > { %v1594_v40 = vor.u32 %v1593_v30, %v1589_v29  ;;  %v516_v45 = vrot.slane %v514_v36, 4  ;;  %v523_v46 = vshll.u32 %v358_v27, 16  ;;  %v527_v48 = vshrl.u32 %v358_v27, 16  ;;  %v360_v36 = vld [vmem:[%s5076_s7 + $0x48] sm:$0xf] }
  0x75   : > { %v1585_v44 = vrot.slane %v1584_v35, 4  ;;  %2958 = vrot.lane.b32.xlu0 %v4534_v38, %s4985_s22  ;;  %v519_v51 = vrot.slane %v517_v42, 5  ;;  %v533_v52 = vshll.u32 %v359_v32, 16  ;;  %v4407_v53 = vrot.slane %v4369_v37, 9  ;;  %v4850_v37 = vld [vmem:[%s5076_s7 + $0x54] sm:$0xff]  }
  0x76   : > { %v1595_v50 = vrot.slane %v1594_v40, 4  ;;  %v525_v55 = vrot.slane %v523_v46, 5  ;;  %v529_v56 = vrot.slane %v527_v48, 4  ;;  %v2087_v57 = vrot.slane %v4370_v43, 5  ;;  %v361_v42 = vld [vmem:[%s5076_s7 + $0x4c] sm:$0xf] }
  0x77   : > { %1159 = vrot.lane.b32.xlu1 %v4231_v34, %s4981_s12  ;;  %v1590_v1 = vsel %vm5113_vm5, %v1585_v44, %v1589_v29  ;;  %v520_v60 = vor.u32 %v519_v51, %v516_v45  ;;  %v535_v61 = vrot.slane %v533_v52, 5  ;;  %v2090_v62 = vrot.slane %v4371_v49, 5  ;;  %v362_v48 = vld [vmem:[%s5076_s7 + $0x50] sm:$0x1]  ;;  %v4372_v49 = vld [vmem:[%s5076_s7 + $0x54] sm:$0xe] }
  0x78   : > { %v1600_v59 = vsel %vm5113_vm5, %v1595_v50, %v1599_v41  ;;  %v530_v3 = vor.u32 %v529_v56, %v525_v55  ;;  %v2088_v4 = vsel %vm5068_vm2, %v4407_v53, %v2087_v57  ;;  %v2089_v5 = vrot.slane %v2087_v57, 4  ;;  %v4373_v57 = vld [vmem:[%s5076_s7 + $0x58] sm:$0xf] }
  0x79   : > { %v4343_v0 = vcombine.low %v1590_v1, %v1600_v59  ;;  %1354 = vrot.lane.b32.xlu0 %v4849_v39, %s4979_s10  ;;  %v521_v6 = vrot.slane %v520_v60, 4  ;;  %v2639_v7 = vshrl.u32 %v4497_v54, 16  ;;  %v2642_v8 = vshll.u32 %v4497_v54, 16 }
  0x7a   : > { %v2648_v9 = vshll.u32 %v4498_v58, 16  ;;  %v531_v11 = vrot.slane %v530_v3, 4  ;;  %v2091_v12 = vsel %vm5068_vm2, %v2089_v5, %v2090_v62  ;;  %v2652_v13 = vshrl.u32 %v4498_v58, 16  ;;  %v4374_v58 = vld [vmem:[%s5076_s7 + $0x5c] sm:$0x1] }
  0x7b   : > { %1899 = vrot.lane.b32.xlu1 %v4343_v0, %s4983_s14  ;;  %v2658_v14 = vshll.u32 %v4499_v63, 16  ;;  %v526_v16 = vsel %vm5113_vm5, %v521_v6, %v525_v55  ;;  %v4423_v17 = vcombine.low %v2088_v4, %v2091_v12  ;;  %v2641_v18 = vrot.slane %v2639_v7, 4  ;;  %v4851_v63 = vld [vmem:[%s5076_s7 + $0x54] sm:$0xff]   ;;  %v4500_v6 = vld [vmem:[%s5076_s7 + $0x60] sm:$0xf] }
  0x7c   : > { %v2644_v19 = vrot.slane %v2642_v8, 5  ;;  %v536_v22 = vsel %vm5113_vm5, %v531_v11, %v535_v61  ;;  %v2650_v23 = vrot.slane %v2648_v9, 5  ;;  %v2654_v24 = vrot.slane %v2652_v13, 4  ;;  %v4501_v11 = vld [vmem:[%s5076_s7 + $0x64] sm:$0xf] }
  0x7d   : > { %v2660_v25 = vrot.slane %v2658_v14, 5  ;;  %v4199_v27 = vcombine.low %v526_v16, %v536_v22  ;;  %v4216_v29 = vrot.slane %v908_v10, 9  ;;  %v1033_v30 = vrot.slane %v909_v15, 5  ;;  %v4502_v16 = vld [vmem:[%s5076_s7 + $0x68] sm:$0x1] }
  0x7e   : > { %v2645_v28 = vor.u32 %v2644_v19, %v2641_v18  ;;  %v2655_v32 = vor.u32 %v2654_v24, %v2650_v23  ;;  %v1036_v33 = vrot.slane %v910_v20, 5  ;;  %v1602_v34 = vshrl.u32 %v4308_v21, 16 }
  0x7f   : > { %2220 = vrot.lane.b32.xlu1 %v4423_v17, %s4982_s13  ;;  %v1605_v35 = vshll.u32 %v4308_v21, 16  ;;  %835 = vrot.lane.b32.xlu0 %v4199_v27, %s4984_s20  ;;  %v1034_v39 = vsel %vm5068_vm2, %v4216_v29, %v1033_v30  ;;  %v1035_v40 = vrot.slane %v1033_v30, 4  ;;  %v1611_v41 = vshll.u32 %v4309_v26, 16  ;;  %v912_v30 = vld [vmem:[%s5076_s7 + $0x58] sm:$0xf] }
  0x80   : > { %v2646_v38 = vrot.slane %v2645_v28, 4  ;;  %v2656_v43 = vrot.slane %v2655_v32, 4  ;;  %v1604_v44 = vrot.slane %v1602_v34, 4  ;;  %v1615_v46 = vshrl.u32 %v4309_v26, 16 }
  0x81   : > { %v1607_v45 = vrot.slane %v1605_v35, 5  ;;  %v1037_v51 = vsel %vm5068_vm2, %v1035_v40, %v1036_v33  ;;  %v1613_v52 = vrot.slane %v1611_v41, 5  ;;  %v1621_v53 = vshll.u32 %v4310_v31, 16  ;;  %v913_v31 = vld [vmem:[%s5076_s7 + $0x5c] sm:$0x1] }
  0x82   : > { %v2651_v50 = vsel %vm5113_vm5, %v2646_v38, %v2650_v23  ;;  %v2661_v54 = vsel %vm5113_vm5, %v2656_v43, %v2660_v25  ;;  %v4232_v1 = vcombine.low %v1034_v39, %v1037_v51  ;;  %v1617_v56 = vrot.slane %v1615_v46, 4  ;;  %v911_v25 = vld [vmem:[%s5076_s7 + $0x54] sm:$0xe]  ;;  %v4312_v41 = vld [vmem:[%s5076_s7 + $0x64] sm:$0xf] }
  0x83   : > { %v1608_v55 = vor.u32 %v1607_v45, %v1604_v44  ;;  %2415 = vrot.lane.b32.xlu0 %v4850_v37, %s4980_s11  ;;  %v4535_v59 = vcombine.low %v2651_v50, %v2661_v54  ;;  %v1623_v60 = vrot.slane %v1621_v53, 5  ;;  %v538_v61 = vshrl.u32 %v360_v36, 16  ;;  %v4313_v51 = vld [vmem:[%s5076_s7 + $0x68] sm:$0x1] }
  0x84   : > { %v541_v62 = vshll.u32 %v360_v36, 16  ;;  %v1618_v3 = vor.u32 %v1617_v56, %v1613_v52  ;;  %v547_v4 = vshll.u32 %v361_v42, 16  ;;  %v551_v5 = vshrl.u32 %v361_v42, 16  ;;  %v4311_v36 = vld [vmem:[%s5076_s7 + $0x60] sm:$0xf] }
  0x85   : > { %v1609_v0 = vrot.slane %v1608_v55, 4  ;;  %2960 = vrot.lane.b32.xlu1 %v4535_v59, %s4985_s22  ;;  %v540_v7 = vrot.slane %v538_v61, 4  ;;  %v557_v9 = vshll.u32 %v362_v48, 16  ;;  %v4408_v10 = vrot.slane %v4372_v49, 9  ;;  %v4852_v56 = vld [vmem:[%s5076_s7 + $0x60] sm:$0xff]  }
  0x86   : > { %v543_v8 = vrot.slane %v541_v62, 5  ;;  %v1619_v13 = vrot.slane %v1618_v3, 4  ;;  %v549_v14 = vrot.slane %v547_v4, 5  ;;  %v553_v15 = vrot.slane %v551_v5, 4  ;;  %v364_v3 = vld [vmem:[%s5076_s7 + $0x58] sm:$0xf] }
  0x87   : > { %v1614_v12 = vsel %vm5113_vm5, %v1609_v0, %v1613_v52  ;;  %1161 = vrot.lane.b32.xlu0 %v4232_v1, %s4981_s12  ;;  %v559_v18 = vrot.slane %v557_v9, 5  ;;  %v2094_v19 = vrot.slane %v4373_v57, 5  ;;  %v2097_v20 = vrot.slane %v4374_v58, 5  ;;  %v363_v52 = vld [vmem:[%s5076_s7 + $0x54] sm:$0xf] }
  0x88   : > { %v544_v17 = vor.u32 %v543_v8, %v540_v7  ;;  %v1624_v21 = vsel %vm5113_vm5, %v1619_v13, %v1623_v60  ;;  %v554_v22 = vor.u32 %v553_v15, %v549_v14  ;;  %v2663_v23 = vshrl.u32 %v4500_v6, 16  ;;  %v365_v8 = vld [vmem:[%s5076_s7 + $0x5c] sm:$0x1]  ;;  %v4375_v13 = vld [vmem:[%s5076_s7 + $0x60] sm:$0xe] }
  0x89   : > { %v2666_v24 = vshll.u32 %v4500_v6, 16  ;;  %1356 = vrot.lane.b32.xlu1 %v4851_v63, %s4979_s10  ;;  %v4344_v26 = vcombine.low %v1614_v12, %v1624_v21  ;;  %v2095_v28 = vsel %vm5068_vm2, %v4408_v10, %v2094_v19  ;;  %v2096_v29 = vrot.slane %v2094_v19, 4  ;;  %v4376_v19 = vld [vmem:[%s5076_s7 + $0x64] sm:$0xf] }
  0x8a   : > { %v545_v27 = vrot.slane %v544_v17, 4  ;;  %v555_v32 = vrot.slane %v554_v22, 4  ;;  %v2665_v33 = vrot.slane %v2663_v23, 4  ;;  %v2672_v35 = vshll.u32 %v4501_v11, 16 }
  0x8b   : > { %v2668_v34 = vrot.slane %v2666_v24, 5  ;;  %1901 = vrot.lane.b32.xlu0 %v4344_v26, %s4983_s14  ;;  %v2098_v38 = vsel %vm5068_vm2, %v2096_v29, %v2097_v20  ;;  %v2676_v39 = vshrl.u32 %v4501_v11, 16  ;;  %v2682_v40 = vshll.u32 %v4502_v16, 16  ;;  %v4503_v26 = vld [vmem:[%s5076_s7 + $0x6c] sm:$0xf] }
  0x8c   : > { %v550_v37 = vsel %vm5113_vm5, %v545_v27, %v549_v14  ;;  %v560_v42 = vsel %vm5113_vm5, %v555_v32, %v559_v18  ;;  %v4424_v43 = vcombine.low %v2095_v28, %v2098_v38  ;;  %v2674_v45 = vrot.slane %v2672_v35, 5  ;;  %v4855_v32 = vld [vmem:[%s5076_s7 + $0x60] sm:$0xff]  }
  0x8d   : > { %v2669_v44 = vor.u32 %v2668_v34, %v2665_v33  ;;  %v4200_v46 = vcombine.low %v550_v37, %v560_v42  ;;  %v2678_v48 = vrot.slane %v2676_v39, 4  ;;  %v2684_v49 = vrot.slane %v2682_v40, 5  ;;  %v5489_v14 = vpop.permute.xlu0 %1344  ;;  %v5495_v20 = vpop.permute.xlu1 %2405  ;;  %v4505_v37 = vld [vmem:[%s5076_s7 + $0x74] sm:$0x1] }
  0x8e   : > { %v4217_v50 = vrot.slane %v911_v25, 9  ;;  %v1040_v54 = vrot.slane %v912_v30, 5  ;;  %v1043_v1 = vrot.slane %v913_v31, 5  ;;  %v1626_v55 = vshrl.u32 %v4311_v36, 16  ;;  %v4377_v25 = vld [vmem:[%s5076_s7 + $0x68] sm:$0x1] }
  0x8f   : > { %v2670_v53 = vrot.slane %v2669_v44, 4  ;;  %837 = vrot.lane.b32.xlu1 %v4200_v46, %s4984_s20  ;;  %2222 = vrot.lane.b32.xlu0 %v4424_v43, %s4982_s13  ;;  %v2679_v57 = vor.u32 %v2678_v48, %v2674_v45  ;;  %v1629_v58 = vshll.u32 %v4311_v36, 16  ;;  %v1635_v59 = vshll.u32 %v4312_v41, 16  ;;  %v4504_v31 = vld [vmem:[%s5076_s7 + $0x70] sm:$0xf] }
  0x90   : > { %v1639_v60 = vshrl.u32 %v4312_v41, 16  ;;  %v1041_v62 = vsel %vm5068_vm2, %v4217_v50, %v1040_v54  ;;  %v1042_v63 = vrot.slane %v1040_v54, 4  ;;  %v1628_v0 = vrot.slane %v1626_v55, 4  ;;  %v914_v46 = vld [vmem:[%s5076_s7 + $0x60] sm:$0xe] }
  0x91   : > { %v2675_v61 = vsel %vm5113_vm5, %v2670_v53, %v2674_v45  ;;  %v2680_v4 = vrot.slane %v2679_v57, 4  ;;  %v1631_v5 = vrot.slane %v1629_v58, 5  ;;  %v1637_v6 = vrot.slane %v1635_v59, 5  ;;  %v915_v48 = vld [vmem:[%s5076_s7 + $0x64] sm:$0xf] }
  0x92   : > { %v1641_v7 = vrot.slane %v1639_v60, 4  ;;  %v1044_v9 = vsel %vm5068_vm2, %v1042_v63, %v1043_v1  ;;  %v1645_v10 = vshll.u32 %v4313_v51, 16  ;;  %v562_v11 = vshrl.u32 %v363_v52, 16  ;;  %v916_v54 = vld [vmem:[%s5076_s7 + $0x68] sm:$0x1] }
  0x93   : > { %v565_v12 = vshll.u32 %v363_v52, 16  ;;  %2417 = vrot.lane.b32.xlu1 %v4852_v56, %s4980_s11  ;;  %v2685_v15 = vsel %vm5113_vm5, %v2680_v4, %v2684_v49  ;;  %v4233_v16 = vcombine.low %v1041_v62, %v1044_v9  ;;  %v1632_v17 = vor.u32 %v1631_v5, %v1628_v0  ;;  %v5512_v49 = vpop.permute.xlu0 %1346  ;;  %v4314_v59 = vld [vmem:[%s5076_s7 + $0x6c] sm:$0xf]  ;;  %v4315_v0 = vld [vmem:[%s5076_s7 + $0x70] sm:$0xf] }
  0x94   : > { %v1642_v18 = vor.u32 %v1641_v7, %v1637_v6  ;;  %v4536_v21 = vcombine.low %v2675_v61, %v2685_v15  ;;  %v1647_v22 = vrot.slane %v1645_v10, 5  ;;  %v564_v23 = vrot.slane %v562_v11, 4  ;;  %v4316_v7 = vld [vmem:[%s5076_s7 + $0x74] sm:$0x1] }
  0x95   : > { %v567_v24 = vrot.slane %v565_v12, 5  ;;  %v1633_v27 = vrot.slane %v1632_v17, 4  ;;  %v571_v29 = vshll.u32 %v364_v3, 16  ;;  %v575_v30 = vshrl.u32 %v364_v3, 16 }
  0x96   : > { %v1643_v28 = vrot.slane %v1642_v18, 4  ;;  %2962 = vrot.lane.b32.xlu0 %v4536_v21, %s4985_s22  ;;  %v581_v34 = vshll.u32 %v365_v8, 16  ;;  %v4409_v35 = vrot.slane %v4375_v13, 9  ;;  %v2101_v36 = vrot.slane %v4376_v19, 5  ;;  %v5515_v1 = vpop.permute.xlu1 %1151  ;;  %v4860_v18 = vld [vmem:[%s5076_s7 + $0x6c] sm:$0xff]  }
  0x97   : > { %v568_v33 = vor.u32 %v567_v24, %v564_v23  ;;  %1163 = vrot.lane.b32.xlu1 %v4233_v16, %s4981_s12  ;;  %v1638_v38 = vsel %vm5113_vm5, %v1633_v27, %v1637_v6  ;;  %v573_v40 = vrot.slane %v571_v29, 5  ;;  %v577_v41 = vrot.slane %v575_v30, 4  ;;  %v5528_v17 = vpop.permute.xlu0 %1149  ;;  %v366_v24 = vld [vmem:[%s5076_s7 + $0x60] sm:$0xf]  ;;  %1202 = vst.msk [vmem:[#allocation2 + $0x28] sm:$0xff] %vm1199_vm6, %v5515_v1 }
  0x98   : > { %v1648_v39 = vsel %vm5113_vm5, %v1643_v28, %v1647_v22  ;;  %v583_v44 = vrot.slane %v581_v34, 5  ;;  %v2102_v45 = vsel %vm5068_vm2, %v4409_v35, %v2101_v36  ;;  %v2103_v51 = vrot.slane %v2101_v36, 4  ;;  %1200 = vst.msk [vmem:[#allocation2 + $0x8] sm:$0xff] %vm1199_vm6, %v5528_v17 }
  0x99   : > { %v4345_v42 = vcombine.low %v1638_v38, %v1648_v39  ;;  %v569_v43 = vrot.slane %v568_v33, 4  ;;  %v578_v50 = vor.u32 %v577_v41, %v573_v40  ;;  %v2104_v52 = vrot.slane %v4377_v25, 5  ;;  %v367_v25 = vld [vmem:[%s5076_s7 + $0x64] sm:$0xf]  ;;  %1393 = vst.msk [vmem:[#allocation2 + $0x8] sm:$0xff] %vm1392_vm7, %v5489_v14  ;;  %1394 = vst.msk [vmem:[#allocation2 + $0x28] sm:$0xff] %vm1392_vm7, %v5512_v49 }
  0x9a   : > { %v2687_v53 = vshrl.u32 %v4503_v26, 16  ;;  %1358 = vrot.lane.b32.xlu0 %v4855_v32, %s4979_s10  ;;  %v2690_v56 = vshll.u32 %v4503_v26, 16  ;;  %v2696_v57 = vshll.u32 %v4504_v31, 16  ;;  %v2700_v58 = vshrl.u32 %v4504_v31, 16  ;;  %v368_v31 = vld [vmem:[%s5076_s7 + $0x68] sm:$0x1] }
  0x9b   : > { %v574_v55 = vsel %vm5113_vm5, %v569_v43, %v573_v40  ;;  %1903 = vrot.lane.b32.xlu1 %v4345_v42, %s4983_s14  ;;  %v579_v60 = vrot.slane %v578_v50, 4  ;;  %v2105_v61 = vsel %vm5068_vm2, %v2103_v51, %v2104_v52  ;;  %v2706_v63 = vshll.u32 %v4505_v37, 16  ;;  %v4378_v40 = vld [vmem:[%s5076_s7 + $0x6c] sm:$0xe]  ;;  %v4898_v49 = vld [vmem:[%s5076_s7 + $0x3c] sm:$0xff]  }
  0x9c   : > { %v2689_v62 = vrot.slane %v2687_v53, 4  ;;  %v4425_v3 = vcombine.low %v2102_v45, %v2105_v61  ;;  %v2692_v4 = vrot.slane %v2690_v56, 5  ;;  %v2698_v5 = vrot.slane %v2696_v57, 5  ;;  %v4379_v45 = vld [vmem:[%s5076_s7 + $0x70] sm:$0xf]  ;;  %331 = vst.msk [vmem:[#allocation2 + $0xa0] sm:$0xff] %vm325_vm11, %v4898_v49 }
  0x9d   : > { %v2702_v6 = vrot.slane %v2700_v58, 4  ;;  %v584_v8 = vsel %vm5113_vm5, %v579_v60, %v583_v44  ;;  %v2708_v9 = vrot.slane %v2706_v63, 5  ;;  %v4218_v10 = vrot.slane %v914_v46, 9  ;;  %v5549_v46 = vld [vmem:[%s5076_s7 + $0x74] sm:$0x1]  ;;  %v5552_v53 = vpop.permute.xlu0 %2210  ;;  %v4885_v14 = vld [vmem:[%s5076_s7 + $0xc] sm:$0xff]  }
  0x9e   : > { %v1047_v11 = vrot.slane %v915_v48, 5  ;;  %v4201_v12 = vcombine.low %v574_v55, %v584_v8  ;;  %v2693_v13 = vor.u32 %v2692_v4, %v2689_v62  ;;  %v1050_v16 = vrot.slane %v916_v54, 5  ;;  %v5536_v26 = vpop.permute.xlu1 %1889  ;;  %v4865_v54 = vld [vmem:[%s5076_s7 + $0x6c] sm:$0xff]   ;;  %v4506_v63 = vld [vmem:[%s5076_s7 + $0x78] sm:$0xf]  ;;  %2261 = vst.msk [vmem:[#allocation2 + $0x10] sm:$0xff] %vm2260_vm10, %v5552_v53 }
  0x9f   : > { %v2703_v15 = vor.u32 %v2702_v6, %v2698_v5  ;;  %2224 = vrot.lane.b32.xlu1 %v4425_v3, %s4982_s13  ;;  %v1650_v22 = vshrl.u32 %v4314_v59, 16  ;;  %v1653_v23 = vshll.u32 %v4314_v59, 16  ;;  %v1659_v29 = vshll.u32 %v4315_v0, 16  ;;  %v4507_v6 = vld [vmem:[%s5076_s7 + $0x7c] sm:$0xf]  ;;  %1938 = vst.msk [vmem:[#allocation2 + $0x8] sm:$0xff] %vm1937_vm8, %v5536_v26 }
  0xa0   : > { %v1048_v19 = vsel %vm5068_vm2, %v4218_v10, %v1047_v11  ;;  %v1049_v21 = vrot.slane %v1047_v11, 4  ;;  %839 = vrot.lane.b32.xlu0 %v4201_v12, %s4984_s20  ;;  %v2694_v27 = vrot.slane %v2693_v13, 4  ;;  %v1663_v30 = vshrl.u32 %v4315_v0, 16  ;;  %v4508_v11 = vld [vmem:[%s5076_s7 + $0x80] sm:$0x1]  ;;  %2259 = vst.msk [vmem:[#allocation2 + $0x8] sm:$0xff] %vm2258_vm9, %v5552_v53 }
  0xa1   : > { %v2704_v28 = vrot.slane %v2703_v15, 4  ;;  %v1652_v33 = vrot.slane %v1650_v22, 4  ;;  %v1655_v34 = vrot.slane %v1653_v23, 5  ;;  %v1669_v35 = vshll.u32 %v4316_v7, 16  ;;  %v917_v15 = vld [vmem:[%s5076_s7 + $0x6c] sm:$0xe] }
  0xa2   : > { %v1051_v32 = vsel %vm5068_vm2, %v1049_v21, %v1050_v16  ;;  %v2699_v36 = vsel %vm5113_vm5, %v2694_v27, %v2698_v5  ;;  %v1661_v39 = vrot.slane %v1659_v29, 5  ;;  %v1665_v43 = vrot.slane %v1663_v30, 4  ;;  %v918_v22 = vld [vmem:[%s5076_s7 + $0x70] sm:$0xf]  ;;  %v5581_v23 = vld [vmem:[%s5076_s7 + $0x74] sm:$0x1] }
  0xa3   : > { %v2709_v37 = vsel %vm5113_vm5, %v2704_v28, %v2708_v9  ;;  %v4234_v38 = vcombine.low %v1048_v19, %v1051_v32  ;;  %v1656_v42 = vor.u32 %v1655_v34, %v1652_v33  ;;  %v1671_v44 = vrot.slane %v1669_v35, 5  ;;  %v5556_v58 = vpop.permute.xlu1 %825  ;;  %v4877_v30 = vld [vmem:[%s5076_s7] sm:$0xff]   ;;  %v4889_v32 = vld [vmem:[%s5076_s7 + $0x18] sm:$0xff]   ;;  %v4895_v34 = vld [vmem:[%s5076_s7 + $0x30] sm:$0xff]   ;;  %327 = vst.msk [vmem:[#allocation2 + $0x20] sm:$0xff] %vm325_vm11, %v4885_v14 }
  0xa4   : > { %v4537_v41 = vcombine.low %v2699_v36, %v2709_v37  ;;  %2419 = vrot.lane.b32.xlu0 %v4860_v18, %s4980_s11  ;;  %v586_v48 = vshrl.u32 %v366_v24, 16  ;;  %v589_v50 = vshll.u32 %v366_v24, 16  ;;  %v595_v51 = vshll.u32 %v367_v25, 16  ;;  %v4892_v33 = vld [vmem:[%s5076_s7 + $0x24] sm:$0xff]   ;;  %326 = vst.msk [vmem:[#allocation2] sm:$0xff] %vm325_vm11, %v4877_v30  ;;  %328 = vst.msk [vmem:[#allocation2 + $0x40] sm:$0xff] %vm325_vm11, %v4889_v32 }
  0xa5   : > { %v599_v52 = vshrl.u32 %v367_v25, 16  ;;  %v1657_v55 = vrot.slane %v1656_v42, 4  ;;  %v1666_v56 = vor.u32 %v1665_v43, %v1661_v39  ;;  %v605_v57 = vshll.u32 %v368_v31, 16  ;;  %v4901_v35 = vld [vmem:[%s5076_s7 + $0x48] sm:$0xff]   ;;  %329 = vst.msk [vmem:[#allocation2 + $0x60] sm:$0xff] %vm325_vm11, %v4892_v33  ;;  %330 = vst.msk [vmem:[#allocation2 + $0x80] sm:$0xff] %vm325_vm11, %v4895_v34 }
  0xa6   : > { %2964 = vrot.lane.b32.xlu1 %v4537_v41, %s4985_s22  ;;  %v588_v59 = vrot.slane %v586_v48, 4  ;;  %v591_v60 = vrot.slane %v589_v50, 5  ;;  %v597_v61 = vrot.slane %v595_v51, 5  ;;  %v4410_v5 = vrot.slane %v4378_v40, 9  ;;  %v4872_v48 = vld [vmem:[%s5076_s7 + $0x78] sm:$0xff]   ;;  %332 = vst.msk [vmem:[#allocation2 + $0xc0] sm:$0xff] %vm325_vm11, %v4901_v35 }
  0xa7   : > { %v601_v62 = vrot.slane %v599_v52, 4  ;;  %v1662_v0 = vsel %vm5113_vm5, %v1657_v55, %v1661_v39  ;;  %v1667_v3 = vrot.slane %v1666_v56, 4  ;;  %v607_v4 = vrot.slane %v605_v57, 5  ;;  %v4318_v57 = vld [vmem:[%s5076_s7 + $0x7c] sm:$0xf]  ;;  %874 = vst.msk [vmem:[#allocation2] sm:$0xff] %vm873_vm12, %v5556_v58 }
  0xa8   : > { %1165 = vrot.lane.b32.xlu0 %v4234_v38, %s4981_s12  ;;  %v592_v7 = vor.u32 %v591_v60, %v588_v59  ;;  %v2108_v9 = vrot.slane %v4379_v45, 5  ;;  %v2111_v10 = vrot.slane %v5549_v46, 5  ;;  %v2711_v13 = vshrl.u32 %v4506_v63, 16  ;;  %v5583_v24 = vpop.permute.xlu0 %2950  ;;  %1198 = vst.msk [vmem:[#allocation2] sm:$0xff] %vm1197_vm13, %v5528_v17  ;;  %v3304_v14 = vld [vmem:[#allocation2 + $0x8] sm:$0xff] }
  0xa9   : > { %v602_v8 = vor.u32 %v601_v62, %v597_v61  ;;  %v1672_v12 = vsel %vm5113_vm5, %v1667_v3, %v1671_v44  ;;  %v2714_v28 = vshll.u32 %v4506_v63, 16  ;;  %v2720_v29 = vshll.u32 %v4507_v6, 16  ;;  %v4319_v63 = vld [vmem:[%s5076_s7 + $0x80] sm:$0x1]  ;;  %2454 = vst.msk [vmem:[#allocation2 + $0x10] sm:$0xff] %vm2453_vm14, %v5495_v20  ;;  %3663 = vmatprep.mubr.bf16.mxu0 %v3304_v14 }
  0xaa   : > { %1360 = vrot.lane.b32.xlu1 %v4865_v54, %s4979_s10  ;;  %v4346_v16 = vcombine.low %v1662_v0, %v1672_v12  ;;  %v593_v18 = vrot.slane %v592_v7, 4  ;;  %v2109_v21 = vsel %vm5068_vm2, %v4410_v5, %v2108_v9  ;;  %v2110_v25 = vrot.slane %v2108_v9, 4  ;;  %v4317_v54 = vld [vmem:[%s5076_s7 + $0x78] sm:$0xf]  ;;  %2999 = vst.msk [vmem:[#allocation2 + $0x10] sm:$0xff] %vm2998_vm15, %v5583_v24 }
  0xab   : > { %v603_v19 = vrot.slane %v602_v8, 4  ;;  %v2713_v27 = vrot.slane %v2711_v13, 4  ;;  %v2724_v37 = vshrl.u32 %v4507_v6, 16  ;;  %v2730_v38 = vshll.u32 %v4508_v11, 16  ;;  %v4904_v0 = vld [vmem:[%s5076_s7 + $0x54] sm:$0xff]  }
  0xac   : > { %v1892_v31 = vpop.permute.xlu1 %1891  ;;  %1905 = vrot.lane.b32.xlu0 %v4346_v16, %s4983_s14  ;;  %v598_v36 = vsel %vm5113_vm5, %v593_v18, %v597_v61  ;;  %v2112_v40 = vsel %vm5068_vm2, %v2110_v25, %v2111_v10  ;;  %v2716_v41 = vrot.slane %v2714_v28, 5  ;;  %v2722_v42 = vrot.slane %v2720_v29, 5  ;;  %333 = vst.msk [vmem:[#allocation2 + $0xe0] sm:$0xff] %vm325_vm11, %v4904_v0  ;;  %v369_v13 = vld [vmem:[%s5076_s7 + $0x6c] sm:$0xf] }
  0xad   : > { %v608_v26 = vsel %vm5113_vm5, %v603_v19, %v607_v4  ;;  %1939 = vst.msk [vmem:[#allocation2 + $0x28] sm:$0xff] %vm1937_vm8, %v1892_v31  ;;  %v4426_v43 = vcombine.low %v2109_v21, %v2112_v40  ;;  %v2726_v44 = vrot.slane %v2724_v37, 4  ;;  %v2732_v45 = vrot.slane %v2730_v38, 5  ;;  %v370_v21 = vld [vmem:[%s5076_s7 + $0x70] sm:$0xf] }
  0xae   : > { %v4202_v39 = vcombine.low %v598_v36, %v608_v26  ;;  %v4219_v46 = vrot.slane %v917_v15, 9  ;;  %v2717_v50 = vor.u32 %v2716_v41, %v2713_v27  ;;  %v1054_v51 = vrot.slane %v918_v22, 5  ;;  %v4879_v22 = vld [vmem:[%s5076_s7 + $0x78] sm:$0xff]   ;;  %v4383_v41 = vld [vmem:[%s5076_s7 + $0x80] sm:$0x1] }
  0xaf   : > { %v1057_v52 = vrot.slane %v5581_v23, 5  ;;  %v2727_v56 = vor.u32 %v2726_v44, %v2722_v42  ;;  %v1674_v3 = vshrl.u32 %v4317_v54, 16  ;;  %v1677_v4 = vshll.u32 %v4317_v54, 16  ;;  %v4381_v38 = vld [vmem:[%s5076_s7 + $0x78] sm:$0xe] }
  0xb0   : > { %841 = vrot.lane.b32.xlu1 %v4202_v39, %s4984_s20  ;;  %v2213_v55 = vpop.permute.xlu1 %2212  ;;  %2226 = vrot.lane.b32.xlu0 %v4426_v43, %s4982_s13  ;;  %v2718_v60 = vrot.slane %v2717_v50, 4  ;;  %v1055_v61 = vsel %vm5068_vm2, %v4219_v46, %v1054_v51  ;;  %v1056_v62 = vrot.slane %v1054_v51, 4  ;;  %v1683_v5 = vshll.u32 %v4318_v57, 16  ;;  %v4382_v24 = vld [vmem:[%s5076_s7 + $0x7c] sm:$0xf]  ;;  %v3303_v50 = vld [vmem:[#allocation2] sm:$0xff] }
  0xb1   : > { %v828_v59 = vpop.permute.xlu0 %827  ;;  %2262 = vst.msk [vmem:[#allocation2 + $0x28] sm:$0xff] %vm2258_vm9, %v2213_v55  ;;  %v2728_v53 = vrot.slane %v2727_v56, 4  ;;  %v1687_v58 = vshrl.u32 %v4318_v57, 16  ;;  %v1693_v8 = vshll.u32 %v4319_v63, 16  ;;  %v1676_v11 = vrot.slane %v1674_v3, 4  ;;  %3664 = vmatmul.mubr.bf16.vlgmr.msra.gmra.mrb[0].mxu0 %v3303_v50 }
  0xb2   : > { %2263 = vst.msk [vmem:[#allocation2 + $0x30] sm:$0xff] %vm2260_vm10, %v2213_v55  ;;  %v2723_v6 = vsel %vm5113_vm5, %v2718_v60, %v2722_v42  ;;  %v1058_v7 = vsel %vm5068_vm2, %v1056_v62, %v1057_v52  ;;  %v1679_v12 = vrot.slane %v1677_v4, 5  ;;  %v1685_v18 = vrot.slane %v1683_v5, 5  ;;  %v4509_v63 = vld [vmem:[%s5076_s7 + $0x84] sm:$0xf] }
  0xb3   : > { %875 = vst.msk [vmem:[#allocation2 + $0x20] sm:$0xff] %vm873_vm12, %v828_v59  ;;  %v2733_v9 = vsel %vm5113_vm5, %v2728_v53, %v2732_v45  ;;  %v4235_v10 = vcombine.low %v1055_v61, %v1058_v7  ;;  %v1689_v17 = vrot.slane %v1687_v58, 4  ;;  %v1695_v19 = vrot.slane %v1693_v8, 5  ;;  %v4510_v0 = vld [vmem:[%s5076_s7 + $0x88] sm:$0xf] }
  0xb4   : > { %2421 = vrot.lane.b32.xlu1 %v4872_v48, %s4980_s11  ;;  %1201 = vst.msk [vmem:[#allocation2 + $0x20] sm:$0xff] %vm1197_vm13, %v5515_v1  ;;  %v4538_v16 = vcombine.low %v2723_v6, %v2733_v9  ;;  %v1680_v23 = vor.u32 %v1679_v12, %v1676_v11  ;;  %v371_v1 = vld [vmem:[%s5076_s7 + $0x74] sm:$0x1]  ;;  %v610_v25 = vshrl.u32 %v369_v13, 16  ;;  %v613_v29 = vshll.u32 %v369_v13, 16 }
  0xb5   : > { %v2408_v15 = vpop.permute.xlu0 %2407  ;;  %v1690_v28 = vor.u32 %v1689_v17, %v1685_v18  ;;  %v619_v30 = vshll.u32 %v370_v21, 16  ;;  %v623_v31 = vshrl.u32 %v370_v21, 16  ;;  %v629_v34 = vshll.u32 %v371_v1, 16  ;;  %v4511_v53 = vld [vmem:[%s5076_s7 + $0x8c] sm:$0x1] }
  0xb6   : > { %v2953_v27 = vpop.permute.xlu1 %2952  ;;  %2966 = vrot.lane.b32.xlu0 %v4538_v16, %s4985_s22  ;;  %2455 = vst.msk [vmem:[#allocation2 + $0x30] sm:$0xff] %vm2453_vm14, %v2408_v15  ;;  %v1681_v32 = vrot.slane %v1680_v23, 4  ;;  %v612_v33 = vrot.slane %v610_v25, 4  ;;  %v615_v36 = vrot.slane %v613_v29, 5  ;;  %v4411_v42 = vrot.slane %v4381_v38, 9  ;;  %v4887_v16 = vld [vmem:[%s5076_s7 + $0x84] sm:$0xff]  }
  0xb7   : > { %3000 = vst.msk [vmem:[#allocation2 + $0x30] sm:$0xff] %vm2998_vm15, %v2953_v27  ;;  %v1691_v35 = vrot.slane %v1690_v28, 4  ;;  %v621_v26 = vrot.slane %v619_v30, 5  ;;  %v625_v37 = vrot.slane %v623_v31, 4  ;;  %v631_v40 = vrot.slane %v629_v34, 5  ;;  %v4906_v28 = vld [vmem:[%s5076_s7 + $0x60] sm:$0xff]  }
  0xb8   : > { %1167 = vrot.lane.b32.xlu1 %v4235_v10, %s4981_s12  ;;  %v3308_v20 = vld [vmem:[#allocation2 + $0x28] sm:$0xff]  ;;  %v1686_v39 = vsel %vm5113_vm5, %v1681_v32, %v1685_v18  ;;  %v616_v45 = vor.u32 %v615_v36, %v612_v33  ;;  %v2115_v48 = vrot.slane %v4382_v24, 5  ;;  %v2118_v52 = vrot.slane %v4383_v41, 5  ;;  %v4546_v7 = vld [vmem:[%s5076_s7 + $0x18] sm:$0xe]  ;;  %334 = vst.msk [vmem:[#allocation2 + $0x100] sm:$0xff] %vm325_vm11, %v4906_v28 }
  0xb9   : > { %v1154_v49 = vpop.permute.xlu0 %1153  ;;  %v1696_v44 = vsel %vm5113_vm5, %v1691_v35, %v1695_v19  ;;  %v626_v46 = vor.u32 %v625_v37, %v621_v26  ;;  %3671 = vmatprep.mubr.bf16.mxu0 %v3308_v20  ;;  %v2735_v5 = vshrl.u32 %v4509_v63, 16  ;;  %v2738_v6 = vshll.u32 %v4509_v63, 16  ;;  %v4547_v58 = vld [vmem:[%s5076_s7 + $0x1c] sm:$0xf]  ;;  %v4548_v13 = vld [vmem:[%s5076_s7 + $0x20] sm:$0x1] }
  0xba   : > { %1204 = vst.msk [vmem:[#allocation2 + $0x48] sm:$0xff] %vm1199_vm6, %v1154_v49  ;;  %v1349_v43 = vpop.permute.xlu1 %1348  ;;  %1362 = vrot.lane.b32.xlu0 %v4879_v22, %s4979_s10  ;;  %v4347_v51 = vcombine.low %v1686_v39, %v1696_v44  ;;  %v617_v55 = vrot.slane %v616_v45, 4  ;;  %v2116_v57 = vsel %vm5068_vm2, %v4411_v42, %v2115_v48  ;;  %v2117_v59 = vrot.slane %v2115_v48, 4  ;;  %v920_v27 = vld [vmem:[%s5076_s7 + $0x78] sm:$0xe]  ;;  %v4907_v39 = vld [vmem:[%s5076_s7 + $0x6c] sm:$0xff]  }
  0xbb   : > { %1395 = vst.msk [vmem:[#allocation2 + $0x48] sm:$0xff] %vm1392_vm7, %v1349_v43  ;;  %v627_v56 = vrot.slane %v626_v46, 4  ;;  %v2744_v10 = vshll.u32 %v4510_v0, 16  ;;  %v2748_v11 = vshrl.u32 %v4510_v0, 16  ;;  %v2754_v12 = vshll.u32 %v4511_v53, 16  ;;  %v3307_v22 = vld [vmem:[#allocation2 + $0x20] sm:$0xff] }
  0xbc   : > { %1907 = vrot.lane.b32.xlu1 %v4347_v51, %s4983_s14  ;;  %v622_v60 = vsel %vm5113_vm5, %v617_v55, %v621_v26  ;;  %v2119_v62 = vsel %vm5068_vm2, %v2117_v59, %v2118_v52  ;;  %v4594_v15 = vrot.slane %v4546_v7, 9  ;;  %v2737_v18 = vrot.slane %v2735_v5, 4  ;;  %v921_v14 = vld [vmem:[%s5076_s7 + $0x7c] sm:$0xf]  ;;  %v922_v32 = vld [vmem:[%s5076_s7 + $0x80] sm:$0x1]  ;;  %3672 = vmatmul.mubr.bf16.gmra.mrb[4].mxu0 %v3307_v22 }
  0xbd   : > { %v1894_v54 = vpop.permute.xlu0 %1893  ;;  %v632_v61 = vsel %vm5113_vm5, %v627_v56, %v631_v40  ;;  %v4427_v4 = vcombine.low %v2116_v57, %v2119_v62  ;;  %v2740_v17 = vrot.slane %v2738_v6, 5  ;;  %v3113_v19 = vrot.slane %v4547_v58, 5  ;;  %v4320_v37 = vld [vmem:[%s5076_s7 + $0x84] sm:$0xf]  ;;  %v4321_v38 = vld [vmem:[%s5076_s7 + $0x88] sm:$0xf] }
  0xbe   : > { %1940 = vst.msk [vmem:[#allocation2 + $0x48] sm:$0xff] %vm1937_vm8, %v1894_v54  ;;  %v4203_v3 = vcombine.low %v622_v60, %v632_v61  ;;  %v3116_v21 = vrot.slane %v4548_v13, 5  ;;  %v2746_v23 = vrot.slane %v2744_v10, 5  ;;  %v2750_v1 = vrot.slane %v2748_v11, 4  ;;  %v4322_v43 = vld [vmem:[%s5076_s7 + $0x8c] sm:$0x1] }
  0xbf   : > { %v2756_v25 = vrot.slane %v2754_v12, 5  ;;  %v2741_v29 = vor.u32 %v2740_v17, %v2737_v18  ;;  %v3114_v30 = vsel %vm5068_vm2, %v4594_v15, %v3113_v19  ;;  %v3115_v31 = vrot.slane %v3113_v19, 4  ;;  %v372_v44 = vld [vmem:[%s5076_s7 + $0x78] sm:$0xf]  ;;  %v373_v52 = vld [vmem:[%s5076_s7 + $0x7c] sm:$0xf] }
  0xc0   : > { %v830_v8 = vpop.permute.xlu1 %829  ;;  %843 = vrot.lane.b32.xlu0 %v4203_v3, %s4984_s20  ;;  %2228 = vrot.lane.b32.xlu1 %v4427_v4, %s4982_s13  ;;  %v4220_v33 = vrot.slane %v920_v27, 9  ;;  %v1061_v20 = vrot.slane %v921_v14, 5  ;;  %v1064_v35 = vrot.slane %v922_v32, 5  ;;  %v1698_v48 = vshrl.u32 %v4320_v37, 16  ;;  %335 = vst.msk [vmem:[#allocation2 + $0x120] sm:$0xff] %vm325_vm11, %v4907_v39  ;;  %v4888_v53 = vld [vmem:[%s5076_s7 + $0x84] sm:$0xff]  }
  0xc1   : > { %v2215_v9 = vpop.permute.xlu0 %2214  ;;  %876 = vst.msk [vmem:[#allocation2 + $0x40] sm:$0xff] %vm873_vm12, %v830_v8  ;;  %v2742_v36 = vrot.slane %v2741_v29, 4  ;;  %v3117_v26 = vsel %vm5068_vm2, %v3115_v31, %v3116_v21  ;;  %v1701_v50 = vshll.u32 %v4320_v37, 16  ;;  %v1707_v51 = vshll.u32 %v4321_v38, 16  ;;  %v374_v61 = vld [vmem:[%s5076_s7 + $0x80] sm:$0x1] }
  0xc2   : > { %2264 = vst.msk [vmem:[#allocation2 + $0x48] sm:$0xff] %vm2258_vm9, %v2215_v9  ;;  %v4610_v24 = vcombine.low %v3114_v30, %v3117_v26  ;;  %v1062_v41 = vsel %vm5068_vm2, %v4220_v33, %v1061_v20  ;;  %v1063_v42 = vrot.slane %v1061_v20, 4  ;;  %v1711_v59 = vshrl.u32 %v4321_v38, 16  ;;  %v4549_v62 = vld [vmem:[%s5076_s7 + $0x24] sm:$0xe]  ;;  %v3305_v17 = vld [vmem:[#allocation2 + $0x10] sm:$0xff] }
  0xc3   : > { %2265 = vst.msk [vmem:[#allocation2 + $0x50] sm:$0xff] %vm2260_vm10, %v2215_v9  ;;  %v2747_v46 = vsel %vm5113_vm5, %v2742_v36, %v2746_v23  ;;  %v1717_v60 = vshll.u32 %v4322_v43, 16  ;;  %v1700_v3 = vrot.slane %v1698_v48, 4  ;;  %v1703_v4 = vrot.slane %v1701_v50, 5  ;;  %v4550_v5 = vld [vmem:[%s5076_s7 + $0x28] sm:$0xf] }
  0xc4   : > { %1203 = vst.msk [vmem:[#allocation2 + $0x40] sm:$0xff] %vm1197_vm13, %v1154_v49  ;;  %v2410_v34 = vpop.permute.xlu1 %2409  ;;  %v2751_v49 = vor.u32 %v2750_v1, %v2746_v23  ;;  %2423 = vrot.lane.b32.xlu0 %v4887_v16, %s4980_s11  ;;  %v1065_v57 = vsel %vm5068_vm2, %v1063_v42, %v1064_v35  ;;  %v4551_v6 = vld [vmem:[%s5076_s7 + $0x2c] sm:$0x1]  ;;  %v1709_v7 = vrot.slane %v1707_v51, 5  ;;  %v1713_v58 = vrot.slane %v1711_v59, 4 }
  0xc5   : > { %2456 = vst.msk [vmem:[#allocation2 + $0x50] sm:$0xff] %vm2453_vm14, %v2410_v34  ;;  %v4236_v0 = vcombine.low %v1062_v41, %v1065_v57  ;;  %v1719_v8 = vrot.slane %v1717_v60, 5  ;;  %v634_v9 = vshrl.u32 %v372_v44, 16  ;;  %v1704_v11 = vor.u32 %v1703_v4, %v1700_v3  ;;  %v4384_v1 = vld [vmem:[%s5076_s7 + $0x84] sm:$0xe] }
  0xc6   : > { %v2752_v40 = vrot.slane %v2751_v49, 4  ;;  %3287 = vst.msk [vmem:[#allocation2 + $0x18] sm:$0xff] %vm325_vm11, %v4610_v24  ;;  %v637_v12 = vshll.u32 %v372_v44, 16  ;;  %v643_v13 = vshll.u32 %v373_v52, 16  ;;  %v647_v15 = vshrl.u32 %v373_v52, 16 }
  0xc7   : > { %v2955_v45 = vpop.permute.xlu0 %2954  ;;  %v1714_v19 = vor.u32 %v1713_v58, %v1709_v7  ;;  %v636_v21 = vrot.slane %v634_v9, 4  ;;  %v653_v22 = vshll.u32 %v374_v61, 16  ;;  %v4595_v23 = vrot.slane %v4549_v62, 9  ;;  %v4385_v31 = vld [vmem:[%s5076_s7 + $0x88] sm:$0xf] }
  0xc8   : > { %3001 = vst.msk [vmem:[#allocation2 + $0x50] sm:$0xff] %vm2998_vm15, %v2955_v45  ;;  %v5707_v54 = vpop.permute.xlu1 %1155  ;;  %v2757_v56 = vsel %vm5113_vm5, %v2752_v40, %v2756_v25  ;;  %1169 = vrot.lane.b32.xlu0 %v4236_v0, %s4981_s12  ;;  %v4908_v25 = vld [vmem:[%s5076_s7 + $0x78] sm:$0xff]   ;;  %v1705_v27 = vrot.slane %v1704_v11, 4  ;;  %v639_v28 = vrot.slane %v637_v12, 5  ;;  %v645_v29 = vrot.slane %v643_v13, 5  ;;  %v4890_v13 = vld [vmem:[%s5076_s7 + $0x90] sm:$0xff]  }
  0xc9   : > { %v3312_v55 = vld [vmem:[#allocation2 + $0x48] sm:$0xff]  ;;  %1206 = vst.msk [vmem:[#allocation2 + $0x68] sm:$0xff] %vm1199_vm6, %v5707_v54  ;;  %v4539_v63 = vcombine.low %v2747_v46, %v2757_v56  ;;  %v649_v30 = vrot.slane %v647_v15, 4  ;;  %v1715_v14 = vrot.slane %v1714_v19, 4  ;;  %v655_v32 = vrot.slane %v653_v22, 5 }
  0xca   : > { %3679 = vmatprep.mubr.bf16.mxu0 %v3312_v55  ;;  %v3120_v33 = vrot.slane %v4550_v5, 5  ;;  %v3123_v34 = vrot.slane %v4551_v6, 5  ;;  %v4386_v49 = vld [vmem:[%s5076_s7 + $0x8c] sm:$0x1]  ;;  %336 = vst.msk [vmem:[#allocation2 + $0x140] sm:$0xff] %vm325_vm11, %v4908_v25  ;;  %v1710_v35 = vsel %vm5113_vm5, %v1705_v27, %v1709_v7  ;;  %v640_v36 = vor.u32 %v639_v28, %v636_v21 }
  0xcb   : > { %v1351_v10 = vpop.permute.xlu0 %1350  ;;  %2968 = vrot.lane.b32.xlu1 %v4539_v63, %s4985_s22  ;;  %v3311_v18 = vld [vmem:[#allocation2 + $0x40] sm:$0xff]  ;;  %v650_v26 = vor.u32 %v649_v30, %v645_v29  ;;  %v4412_v37 = vrot.slane %v4384_v1, 9  ;;  %v1720_v39 = vsel %vm5113_vm5, %v1715_v14, %v1719_v8  ;;  %v2122_v41 = vrot.slane %v4385_v31, 5  ;;  %v4512_v42 = vld [vmem:[%s5076_s7 + $0x90] sm:$0xf] }
  0xcc   : > { %1396 = vst.msk [vmem:[#allocation2 + $0x68] sm:$0xff] %vm1392_vm7, %v1351_v10  ;;  %v1896_v16 = vpop.permute.xlu1 %1895  ;;  %3680 = vmatmul.mubr.bf16.gmra.mrb[8].mxu0 %v3311_v18  ;;  %v3121_v40 = vsel %vm5068_vm2, %v4595_v23, %v3120_v33  ;;  %v3122_v24 = vrot.slane %v3120_v33, 4  ;;  %v4513_v43 = vld [vmem:[%s5076_s7 + $0x94] sm:$0xf]  ;;  %v4348_v45 = vcombine.low %v1710_v35, %v1720_v39  ;;  %v641_v46 = vrot.slane %v640_v36, 4 }
  0xcd   : > { %1941 = vst.msk [vmem:[#allocation2 + $0x68] sm:$0xff] %vm1937_vm8, %v1896_v16  ;;  %v3306_v20 = vld [vmem:[#allocation2 + $0x18] sm:$0xff]  ;;  %v651_v48 = vrot.slane %v650_v26, 4  ;;  %v2125_v50 = vrot.slane %v4386_v49, 5  ;;  %v2123_v55 = vsel %vm5068_vm2, %v4412_v37, %v2122_v41  ;;  %v2124_v56 = vrot.slane %v2122_v41, 4  ;;  %v4909_v41 = vld [vmem:[%s5076_s7 + $0x84] sm:$0xff]  }
  0xce   : > { %4653 = vmatprep.mubr.msk.bf16.mxu1 %vm325_vm11, %v3306_v20  ;;  %v4514_v51 = vld [vmem:[%s5076_s7 + $0x98] sm:$0x1]  ;;  %v3124_v52 = vsel %vm5068_vm2, %v3122_v24, %v3123_v34  ;;  %v2759_v57 = vshrl.u32 %v4512_v42, 16  ;;  %v923_v59 = vld [vmem:[%s5076_s7 + $0x84] sm:$0xe]  ;;  %1909 = vrot.lane.b32.xlu0 %v4348_v45, %s4983_s14  ;;  %v646_v61 = vsel %vm5113_vm5, %v641_v46, %v645_v29  ;;  %v2762_v0 = vshll.u32 %v4512_v42, 16 }
  0xcf   : > { %1364 = vrot.lane.b32.xlu1 %v4888_v53, %s4979_s10  ;;  %3825 = vmatmul.mubr.bf16.vlgmr.msra.gmra.mrb[0].mxu1 %v3305_v17  ;;  %v924_v60 = vld [vmem:[%s5076_s7 + $0x88] sm:$0xf]  ;;  %v656_v62 = vsel %vm5113_vm5, %v651_v48, %v655_v32  ;;  %v4611_v63 = vcombine.low %v3121_v40, %v3124_v52  ;;  %v925_v53 = vld [vmem:[%s5076_s7 + $0x8c] sm:$0x1]  ;;  %v2126_v4 = vsel %vm5068_vm2, %v2124_v56, %v2125_v50  ;;  %v2768_v6 = vshll.u32 %v4513_v43, 16  ;;  %v3309_v32 = vld [vmem:[#allocation2 + $0x30] sm:$0xff] }
  0xd0   : > { %v2217_v38 = vpop.permute.xlu1 %2216  ;;  %v4204_v3 = vcombine.low %v646_v61, %v656_v62  ;;  %v2761_v5 = vrot.slane %v2759_v57, 4  ;;  %v4428_v58 = vcombine.low %v2123_v55, %v2126_v4  ;;  %v2764_v8 = vrot.slane %v2762_v0, 5  ;;  %v4324_v11 = vld [vmem:[%s5076_s7 + $0x94] sm:$0xf]  ;;  %v4325_v23 = vld [vmem:[%s5076_s7 + $0x98] sm:$0x1] }
  0xd1   : > { %v832_v44 = vpop.permute.xlu0 %831  ;;  %2266 = vst.msk [vmem:[#allocation2 + $0x68] sm:$0xff] %vm2258_vm9, %v2217_v38  ;;  %v2772_v9 = vshrl.u32 %v4513_v43, 16  ;;  %v2778_v10 = vshll.u32 %v4514_v51, 16  ;;  %v2770_v15 = vrot.slane %v2768_v6, 5  ;;  %v4221_v16 = vrot.slane %v923_v59, 9 }
  0xd2   : > { %2267 = vst.msk [vmem:[#allocation2 + $0x70] sm:$0xff] %vm2260_vm10, %v2217_v38  ;;  %v1068_v18 = vrot.slane %v924_v60, 5  ;;  %v1071_v17 = vrot.slane %v925_v53, 5  ;;  %2230 = vrot.lane.b32.xlu0 %v4428_v58, %s4982_s13  ;;  %v2765_v19 = vor.u32 %v2764_v8, %v2761_v5  ;;  %v1731_v30 = vshll.u32 %v4324_v11, 16  ;;  %v375_v31 = vld [vmem:[%s5076_s7 + $0x84] sm:$0xf] }
  0xd3   : > { %877 = vst.msk [vmem:[#allocation2 + $0x60] sm:$0xff] %vm873_vm12, %v832_v44  ;;  %845 = vrot.lane.b32.xlu1 %v4204_v3, %s4984_s20  ;;  %v2774_v21 = vrot.slane %v2772_v9, 4  ;;  %v2780_v22 = vrot.slane %v2778_v10, 5  ;;  %v1735_v20 = vshrl.u32 %v4324_v11, 16  ;;  %v376_v35 = vld [vmem:[%s5076_s7 + $0x88] sm:$0xf] }
  0xd4   : > { %1205 = vst.msk [vmem:[#allocation2 + $0x60] sm:$0xff] %vm1197_vm13, %v5707_v54  ;;  %v4323_v54 = vld [vmem:[%s5076_s7 + $0x90] sm:$0xf]  ;;  %v1069_v27 = vsel %vm5068_vm2, %v4221_v16, %v1068_v18  ;;  %v1070_v28 = vrot.slane %v1068_v18, 4  ;;  %v2766_v33 = vrot.slane %v2765_v19, 4  ;;  %v1733_v39 = vrot.slane %v1731_v30, 5 }
  0xd5   : > { %v2412_v7 = vpop.permute.xlu0 %2411  ;;  %3288 = vst.msk [vmem:[#allocation2 + $0x38] sm:$0xff] %vm325_vm11, %v4611_v63  ;;  %v1722_v1 = vshrl.u32 %v4323_v54, 16  ;;  %v1725_v29 = vshll.u32 %v4323_v54, 16  ;;  %v2775_v34 = vor.u32 %v2774_v21, %v2770_v15  ;;  %v1741_v40 = vshll.u32 %v4325_v23, 16  ;;  %v377_v24 = vld [vmem:[%s5076_s7 + $0x8c] sm:$0x1] }
  0xd6   : > { %2457 = vst.msk [vmem:[#allocation2 + $0x70] sm:$0xff] %vm2453_vm14, %v2412_v7  ;;  %v1072_v37 = vsel %vm5068_vm2, %v1070_v28, %v1071_v17  ;;  %v2771_v42 = vsel %vm5113_vm5, %v2766_v33, %v2770_v15  ;;  %v1737_v45 = vrot.slane %v1735_v20, 4  ;;  %v4387_v46 = vld [vmem:[%s5076_s7 + $0x90] sm:$0xe]  ;;  %v4388_v48 = vld [vmem:[%s5076_s7 + $0x94] sm:$0xf] }
  0xd7   : > { %v2957_v12 = vpop.permute.xlu1 %2956  ;;  %v1724_v49 = vrot.slane %v1722_v1, 4  ;;  %2425 = vrot.lane.b32.xlu1 %v4890_v13, %s4980_s11  ;;  %v1727_v38 = vrot.slane %v1725_v29, 5  ;;  %v2776_v43 = vrot.slane %v2775_v34, 4  ;;  %v4237_v44 = vcombine.low %v1069_v27, %v1072_v37  ;;  %337 = vst.msk [vmem:[#allocation2 + $0x160] sm:$0xff] %vm325_vm11, %v4909_v41  ;;  %v4389_v63 = vld [vmem:[%s5076_s7 + $0x98] sm:$0x1] }
  0xd8   : > { %3002 = vst.msk [vmem:[#allocation2 + $0x70] sm:$0xff] %vm2998_vm15, %v2957_v12  ;;  %v3316_v25 = vld [vmem:[#allocation2 + $0x68] sm:$0xff]  ;;  %v1743_v52 = vrot.slane %v1741_v40, 5  ;;  %v658_v55 = vshrl.u32 %v375_v31, 16  ;;  %v661_v56 = vshll.u32 %v375_v31, 16  ;;  %v1738_v60 = vor.u32 %v1737_v45, %v1733_v39  ;;  %v4891_v53 = vld [vmem:[%s5076_s7 + $0x90] sm:$0xff]  }
  0xd9   : > { %v5773_v14 = vpop.permute.xlu0 %1157  ;;  %3687 = vmatprep.mubr.bf16.mxu0 %v3316_v25  ;;  %v1728_v51 = vor.u32 %v1727_v38, %v1724_v49  ;;  %v2781_v59 = vsel %vm5113_vm5, %v2776_v43, %v2780_v22  ;;  %v667_v61 = vshll.u32 %v376_v35, 16  ;;  %v671_v62 = vshrl.u32 %v376_v35, 16  ;;  %v4552_v6 = vld [vmem:[%s5076_s7 + $0x30] sm:$0xe]  ;;  %v4553_v54 = vld [vmem:[%s5076_s7 + $0x34] sm:$0xf] }
  0xda   : > { %1208 = vst.msk [vmem:[#allocation2 + $0x88] sm:$0xff] %vm1199_vm6, %v5773_v14  ;;  %v4540_v0 = vcombine.low %v2771_v42, %v2781_v59  ;;  %v660_v4 = vrot.slane %v658_v55, 4  ;;  %v663_v5 = vrot.slane %v661_v56, 5  ;;  %v1739_v7 = vrot.slane %v1738_v60, 4  ;;  %v4554_v10 = vld [vmem:[%s5076_s7 + $0x38] sm:$0x1] }
  0xdb   : > { %v1353_v36 = vpop.permute.xlu1 %1352  ;;  %v3315_v26 = vld [vmem:[#allocation2 + $0x60] sm:$0xff]  ;;  %1171 = vrot.lane.b32.xlu1 %v4237_v44, %s4981_s12  ;;  %v1729_v3 = vrot.slane %v1728_v51, 4  ;;  %v669_v58 = vrot.slane %v667_v61, 5  ;;  %v673_v8 = vrot.slane %v671_v62, 4  ;;  %v677_v9 = vshll.u32 %v377_v24, 16 }
  0xdc   : > { %1397 = vst.msk [vmem:[#allocation2 + $0x88] sm:$0xff] %vm1392_vm7, %v1353_v36  ;;  %3688 = vmatmul.mubr.bf16.gmra.mrb[12].mxu0 %v3315_v26  ;;  %v3310_v50 = vld [vmem:[#allocation2 + $0x38] sm:$0xff]  ;;  %2970 = vrot.lane.b32.xlu0 %v4540_v0, %s4985_s22  ;;  %v664_v13 = vor.u32 %v663_v5, %v660_v4  ;;  %v4413_v15 = vrot.slane %v4387_v46, 9  ;;  %v2129_v16 = vrot.slane %v4388_v48, 5  ;;  %v1744_v17 = vsel %vm5113_vm5, %v1739_v7, %v1743_v52  ;;  %v4516_v29 = vld [vmem:[%s5076_s7 + $0xa0] sm:$0xf] }
  0xdd   : > { %v1898_v57 = vpop.permute.xlu0 %1897  ;;  %4654 = vmatprep.mubr.msk.bf16.mxu1 %vm325_vm11, %v3310_v50  ;;  %v1734_v12 = vsel %vm5113_vm5, %v1729_v3, %v1733_v39  ;;  %v674_v19 = vor.u32 %v673_v8, %v669_v58  ;;  %v679_v21 = vrot.slane %v677_v9, 5  ;;  %v2132_v22 = vrot.slane %v4389_v63, 5  ;;  %v4515_v23 = vld [vmem:[%s5076_s7 + $0x9c] sm:$0xf]  ;;  %v4517_v30 = vld [vmem:[%s5076_s7 + $0xa4] sm:$0x1] }
  0xde   : > { %1942 = vst.msk [vmem:[#allocation2 + $0x88] sm:$0xff] %vm1937_vm8, %v1898_v57  ;;  %3833 = vmatmul.mubr.bf16.gmra.mrb[4].mxu1 %v3309_v32  ;;  %v4349_v1 = vcombine.low %v1734_v12, %v1744_v17  ;;  %v665_v25 = vrot.slane %v664_v13, 4  ;;  %v2130_v27 = vsel %vm5068_vm2, %v4413_v15, %v2129_v16  ;;  %v2131_v28 = vrot.slane %v2129_v16, 4  ;;  %v926_v49 = vld [vmem:[%s5076_s7 + $0x90] sm:$0xe]  ;;  %v4893_v59 = vld [vmem:[%s5076_s7 + $0x9c] sm:$0xff]  }
  0xdf   : > { %v675_v31 = vrot.slane %v674_v19, 4  ;;  %v4596_v32 = vrot.slane %v4552_v6, 9  ;;  %v3127_v33 = vrot.slane %v4553_v54, 5  ;;  %v3130_v34 = vrot.slane %v4554_v10, 5  ;;  %v927_v37 = vld [vmem:[%s5076_s7 + $0x94] sm:$0xf] }
  0xe0   : > { %1366 = vrot.lane.b32.xlu0 %v4891_v53, %s4979_s10  ;;  %1911 = vrot.lane.b32.xlu1 %v4349_v1, %s4983_s14  ;;  %v670_v20 = vsel %vm5113_vm5, %v665_v25, %v669_v58  ;;  %v2133_v35 = vsel %vm5068_vm2, %v2131_v28, %v2132_v22  ;;  %v2783_v36 = vshrl.u32 %v4515_v23, 16  ;;  %v2786_v26 = vshll.u32 %v4515_v23, 16  ;;  %v928_v41 = vld [vmem:[%s5076_s7 + $0x98] sm:$0x1]  ;;  %v4326_v46 = vld [vmem:[%s5076_s7 + $0x9c] sm:$0xf] }
  0xe1   : > { %v834_v11 = vpop.permute.xlu1 %833  ;;  %v2219_v18 = vpop.permute.xlu0 %2218  ;;  %v680_v38 = vsel %vm5113_vm5, %v675_v31, %v679_v21  ;;  %v4429_v39 = vcombine.low %v2130_v27, %v2133_v35  ;;  %v3128_v40 = vsel %vm5068_vm2, %v4596_v32, %v3127_v33  ;;  %v3129_v24 = vrot.slane %v3127_v33, 4  ;;  %v4327_v63 = vld [vmem:[%s5076_s7 + $0xa0] sm:$0xf]  ;;  %v4328_v4 = vld [vmem:[%s5076_s7 + $0xa4] sm:$0x1] }
  0xe2   : > { %878 = vst.msk [vmem:[#allocation2 + $0x80] sm:$0xff] %vm873_vm12, %v834_v11  ;;  %v4205_v42 = vcombine.low %v670_v20, %v680_v38  ;;  %v2785_v43 = vrot.slane %v2783_v36, 4  ;;  %v2788_v44 = vrot.slane %v2786_v26, 5  ;;  %v2792_v45 = vshll.u32 %v4516_v29, 16  ;;  %v378_v8 = vld [vmem:[%s5076_s7 + $0x90] sm:$0xf] }
  0xe3   : > { %1207 = vst.msk [vmem:[#allocation2 + $0x80] sm:$0xff] %vm1197_vm13, %v5773_v14  ;;  %v3131_v50 = vsel %vm5068_vm2, %v3129_v24, %v3130_v34  ;;  %v2796_v51 = vshrl.u32 %v4516_v29, 16  ;;  %v2802_v52 = vshll.u32 %v4517_v30, 16  ;;  %v4222_v55 = vrot.slane %v926_v49, 9  ;;  %v379_v16 = vld [vmem:[%s5076_s7 + $0x94] sm:$0xf] }
  0xe4   : > { %2268 = vst.msk [vmem:[#allocation2 + $0x88] sm:$0xff] %vm2258_vm9, %v2219_v18  ;;  %847 = vrot.lane.b32.xlu0 %v4205_v42, %s4984_s20  ;;  %2232 = vrot.lane.b32.xlu1 %v4429_v39, %s4982_s13  ;;  %v4612_v57 = vcombine.low %v3128_v40, %v3131_v50  ;;  %v2789_v60 = vor.u32 %v2788_v44, %v2785_v43  ;;  %v2794_v61 = vrot.slane %v2792_v45, 5  ;;  %v1075_v62 = vrot.slane %v927_v37, 5  ;;  %v380_v1 = vld [vmem:[%s5076_s7 + $0x98] sm:$0x1]  ;;  %v4910_v30 = vld [vmem:[%s5076_s7 + $0x90] sm:$0xff]  }
  0xe5   : > { %2269 = vst.msk [vmem:[#allocation2 + $0x90] sm:$0xff] %vm2260_vm10, %v2219_v18  ;;  %v2414_v14 = vpop.permute.xlu1 %2413  ;;  %v2798_v0 = vrot.slane %v2796_v51, 4  ;;  %v2804_v53 = vrot.slane %v2802_v52, 5  ;;  %v1078_v3 = vrot.slane %v928_v41, 5  ;;  %v1746_v5 = vshrl.u32 %v4326_v46, 16  ;;  %v3313_v39 = vld [vmem:[#allocation2 + $0x50] sm:$0xff] }
  0xe6   : > { %2458 = vst.msk [vmem:[#allocation2 + $0x90] sm:$0xff] %vm2453_vm14, %v2414_v14  ;;  %v2790_v6 = vrot.slane %v2789_v60, 4  ;;  %v1076_v54 = vsel %vm5068_vm2, %v4222_v55, %v1075_v62  ;;  %v1077_v7 = vrot.slane %v1075_v62, 4  ;;  %v1749_v58 = vshll.u32 %v4326_v46, 16  ;;  %v4555_v49 = vld [vmem:[%s5076_s7 + $0x3c] sm:$0xe] }
  0xe7   : > { %v2959_v48 = vpop.permute.xlu0 %2958  ;;  %3289 = vst.msk [vmem:[#allocation2 + $0x58] sm:$0xff] %vm325_vm11, %v4612_v57  ;;  %v2799_v11 = vor.u32 %v2798_v0, %v2794_v61  ;;  %v1748_v12 = vrot.slane %v1746_v5, 4  ;;  %v1755_v13 = vshll.u32 %v4327_v63, 16  ;;  %v1759_v15 = vshrl.u32 %v4327_v63, 16  ;;  %v4556_v26 = vld [vmem:[%s5076_s7 + $0x40] sm:$0xf] }
  0xe8   : > { %3003 = vst.msk [vmem:[#allocation2 + $0x90] sm:$0xff] %vm2998_vm15, %v2959_v48  ;;  %2427 = vrot.lane.b32.xlu0 %v4893_v59, %s4980_s11  ;;  %v2795_v19 = vsel %vm5113_vm5, %v2790_v6, %v2794_v61  ;;  %v1079_v21 = vsel %vm5068_vm2, %v1077_v7, %v1078_v3  ;;  %v1751_v22 = vrot.slane %v1749_v58, 5  ;;  %v1765_v23 = vshll.u32 %v4328_v4, 16  ;;  %v4557_v37 = vld [vmem:[%s5076_s7 + $0x44] sm:$0x1]  ;;  %v4894_v48 = vld [vmem:[%s5076_s7 + $0x9c] sm:$0xff]  }
  0xe9   : > { %v5832_v56 = vpop.permute.xlu1 %1159  ;;  %v2800_v25 = vrot.slane %v2799_v11, 4  ;;  %v4238_v27 = vcombine.low %v1076_v54, %v1079_v21  ;;  %v1757_v28 = vrot.slane %v1755_v13, 5  ;;  %v1761_v29 = vrot.slane %v1759_v15, 4  ;;  %338 = vst.msk [vmem:[#allocation2 + $0x180] sm:$0xff] %vm325_vm11, %v4910_v30  ;;  %v4390_v43 = vld [vmem:[%s5076_s7 + $0x9c] sm:$0xe] }
  0xea   : > { %1210 = vst.msk [vmem:[#allocation2 + $0xa8] sm:$0xff] %vm1199_vm6, %v5832_v56  ;;  %v3319_v17 = vld [vmem:[#allocation2 + $0x80] sm:$0xff]  ;;  %v1752_v31 = vor.u32 %v1751_v22, %v1748_v12  ;;  %v1767_v32 = vrot.slane %v1765_v23, 5  ;;  %v682_v33 = vshrl.u32 %v378_v8, 16  ;;  %v685_v34 = vshll.u32 %v378_v8, 16 }
  0xeb   : > { %v1355_v9 = vpop.permute.xlu0 %1354  ;;  %v3320_v10 = vld [vmem:[#allocation2 + $0x88] sm:$0xff]  ;;  %v2805_v14 = vsel %vm5113_vm5, %v2800_v25, %v2804_v53  ;;  %v1762_v20 = vor.u32 %v1761_v29, %v1757_v28  ;;  %v691_v35 = vshll.u32 %v379_v16, 16  ;;  %v695_v36 = vshrl.u32 %v379_v16, 16  ;;  %v4391_v44 = vld [vmem:[%s5076_s7 + $0xa0] sm:$0xf] }
  0xec   : > { %1398 = vst.msk [vmem:[#allocation2 + $0xa8] sm:$0xff] %vm1392_vm7, %v1355_v9  ;;  %3695 = vmatprep.mubr.bf16.mxu0 %v3320_v10  ;;  %v4541_v40 = vcombine.low %v2795_v19, %v2805_v14  ;;  %1173 = vrot.lane.b32.xlu0 %v4238_v27, %s4981_s12  ;;  %v1753_v24 = vrot.slane %v1752_v31, 4  ;;  %v684_v41 = vrot.slane %v682_v33, 4  ;;  %v687_v42 = vrot.slane %v685_v34, 5  ;;  %v4392_v62 = vld [vmem:[%s5076_s7 + $0xa4] sm:$0x1] }
  0xed   : > { %v1900_v18 = vpop.permute.xlu1 %1899  ;;  %3696 = vmatmul.mubr.bf16.gmra.mrb[16].mxu0 %v3319_v17  ;;  %v1763_v50 = vrot.slane %v1762_v20, 4  ;;  %v693_v51 = vrot.slane %v691_v35, 5  ;;  %v697_v52 = vrot.slane %v695_v36, 4  ;;  %v701_v55 = vshll.u32 %v380_v1, 16  ;;  %v4518_v4 = vld [vmem:[%s5076_s7 + $0xa8] sm:$0xf] }
  0xee   : > { %1943 = vst.msk [vmem:[#allocation2 + $0xa8] sm:$0xff] %vm1937_vm8, %v1900_v18  ;;  %v3314_v46 = vld [vmem:[#allocation2 + $0x58] sm:$0xff]  ;;  %2972 = vrot.lane.b32.xlu1 %v4541_v40, %s4985_s22  ;;  %v1758_v57 = vsel %vm5113_vm5, %v1753_v24, %v1757_v28  ;;  %v688_v59 = vor.u32 %v687_v42, %v684_v41  ;;  %v4597_v60 = vrot.slane %v4555_v49, 9  ;;  %v3134_v61 = vrot.slane %v4556_v26, 5  ;;  %v4519_v58 = vld [vmem:[%s5076_s7 + $0xac] sm:$0xf] }
  0xef   : > { %4655 = vmatprep.mubr.msk.bf16.mxu1 %vm325_vm11, %v3314_v46  ;;  %v1768_v63 = vsel %vm5113_vm5, %v1763_v50, %v1767_v32  ;;  %v698_v0 = vor.u32 %v697_v52, %v693_v51  ;;  %v703_v53 = vrot.slane %v701_v55, 5  ;;  %v3137_v3 = vrot.slane %v4557_v37, 5  ;;  %v4520_v8 = vld [vmem:[%s5076_s7 + $0xb0] sm:$0x1]  ;;  %v929_v13 = vld [vmem:[%s5076_s7 + $0x9c] sm:$0xe] }
  0xf0   : > { %3841 = vmatmul.mubr.bf16.gmra.mrb[8].mxu1 %v3313_v39  ;;  %v4350_v5 = vcombine.low %v1758_v57, %v1768_v63  ;;  %v689_v6 = vrot.slane %v688_v59, 4  ;;  %v3135_v54 = vsel %vm5068_vm2, %v4597_v60, %v3134_v61  ;;  %v3136_v7 = vrot.slane %v3134_v61, 4  ;;  %v930_v25 = vld [vmem:[%s5076_s7 + $0xa0] sm:$0xf]  ;;  %v931_v27 = vld [vmem:[%s5076_s7 + $0xa4] sm:$0x1] }
  0xf1   : > { %v2221_v38 = vpop.permute.xlu1 %2220  ;;  %v836_v45 = vpop.permute.xlu0 %835  ;;  %v699_v10 = vrot.slane %v698_v0, 4  ;;  %v2136_v11 = vrot.slane %v4391_v44, 5  ;;  %v2139_v12 = vrot.slane %v4392_v62, 5  ;;  %v2807_v18 = vshrl.u32 %v4518_v4, 16  ;;  %v4329_v33 = vld [vmem:[%s5076_s7 + $0xa8] sm:$0xf] }
  0xf2   : > { %2270 = vst.msk [vmem:[#allocation2 + $0xa8] sm:$0xff] %vm2258_vm9, %v2221_v38  ;;  %1368 = vrot.lane.b32.xlu1 %v4894_v48, %s4979_s10  ;;  %1913 = vrot.lane.b32.xlu0 %v4350_v5, %s4983_s14  ;;  %v694_v15 = vsel %vm5113_vm5, %v689_v6, %v693_v51  ;;  %v3138_v16 = vsel %vm5068_vm2, %v3136_v7, %v3137_v3  ;;  %v2810_v17 = vshll.u32 %v4518_v4, 16  ;;  %v2816_v32 = vshll.u32 %v4519_v58, 16  ;;  %v4896_v37 = vld [vmem:[%s5076_s7 + $0xa8] sm:$0xff]   ;;  %v381_v55 = vld [vmem:[%s5076_s7 + $0x9c] sm:$0xf] }
  0xf3   : > { %2271 = vst.msk [vmem:[#allocation2 + $0xb0] sm:$0xff] %vm2260_vm10, %v2221_v38  ;;  %v704_v21 = vsel %vm5113_vm5, %v699_v10, %v703_v53  ;;  %v4613_v22 = vcombine.low %v3135_v54, %v3138_v16  ;;  %v2138_v1 = vrot.slane %v2136_v11, 4  ;;  %v2809_v30 = vrot.slane %v2807_v18, 4  ;;  %v4330_v24 = vld [vmem:[%s5076_s7 + $0xac] sm:$0xf]  ;;  %v3317_v6 = vld [vmem:[#allocation2 + $0x70] sm:$0xff] }
  0xf4   : > { %879 = vst.msk [vmem:[#allocation2 + $0xa0] sm:$0xff] %vm873_vm12, %v836_v45  ;;  %v4206_v29 = vcombine.low %v694_v15, %v704_v21  ;;  %v2812_v31 = vrot.slane %v2810_v17, 5  ;;  %v2820_v14 = vshrl.u32 %v4519_v58, 16  ;;  %v2826_v20 = vshll.u32 %v4520_v8, 16  ;;  %v4331_v45 = vld [vmem:[%s5076_s7 + $0xb0] sm:$0x1] }
  0xf5   : > { %1209 = vst.msk [vmem:[#allocation2 + $0xa0] sm:$0xff] %vm1197_vm13, %v5832_v56  ;;  %v2416_v9 = vpop.permute.xlu0 %2415  ;;  %v4414_v56 = vrot.slane %v4390_v43, 9  ;;  %v2140_v49 = vsel %vm5068_vm2, %v2138_v1, %v2139_v12  ;;  %v4223_v35 = vrot.slane %v929_v13, 9  ;;  %v2818_v39 = vrot.slane %v2816_v32, 5  ;;  %v382_v63 = vld [vmem:[%s5076_s7 + $0xa0] sm:$0xf] }
  0xf6   : > { %2459 = vst.msk [vmem:[#allocation2 + $0xb0] sm:$0xff] %vm2453_vm14, %v2416_v9  ;;  %849 = vrot.lane.b32.xlu1 %v4206_v29, %s4984_s20  ;;  %v2813_v38 = vor.u32 %v2812_v31, %v2809_v30  ;;  %v1082_v40 = vrot.slane %v930_v25, 5  ;;  %v2822_v42 = vrot.slane %v2820_v14, 4  ;;  %v2828_v43 = vrot.slane %v2826_v20, 5  ;;  %v383_v5 = vld [vmem:[%s5076_s7 + $0xa4] sm:$0x1] }
  0xf7   : > { %v2961_v19 = vpop.permute.xlu1 %2960  ;;  %v2137_v23 = vsel %vm5068_vm2, %v4414_v56, %v2136_v11  ;;  %3290 = vst.msk [vmem:[#allocation2 + $0x78] sm:$0xff] %vm325_vm11, %v4613_v22  ;;  %v1085_v44 = vrot.slane %v931_v27, 5  ;;  %v1770_v46 = vshrl.u32 %v4329_v33, 16  ;;  %v1773_v52 = vshll.u32 %v4329_v33, 16  ;;  %v4393_v9 = vld [vmem:[%s5076_s7 + $0xa8] sm:$0xe] }
  0xf8   : > { %3004 = vst.msk [vmem:[#allocation2 + $0xb0] sm:$0xff] %vm2998_vm15, %v2961_v19  ;;  %v4430_v26 = vcombine.low %v2137_v23, %v2140_v49  ;;  %v2814_v48 = vrot.slane %v2813_v38, 4  ;;  %v1083_v50 = vsel %vm5068_vm2, %v4223_v35, %v1082_v40  ;;  %v1084_v51 = vrot.slane %v1082_v40, 4  ;;  %v4394_v15 = vld [vmem:[%s5076_s7 + $0xac] sm:$0xf]  ;;  %v4911_v30 = vld [vmem:[%s5076_s7 + $0x9c] sm:$0xff]  }
  0xf9   : > { %v3324_v28 = vld [vmem:[#allocation2 + $0xa8] sm:$0xff]  ;;  %v5898_v34 = vpop.permute.xlu0 %1161  ;;  %v2823_v59 = vor.u32 %v2822_v42, %v2818_v39  ;;  %v1772_v60 = vrot.slane %v1770_v46, 4  ;;  %v1779_v61 = vshll.u32 %v4330_v24, 16  ;;  %v1783_v62 = vshrl.u32 %v4330_v24, 16  ;;  %v4395_v23 = vld [vmem:[%s5076_s7 + $0xb0] sm:$0x1] }
  0xfa   : > { %3703 = vmatprep.mubr.bf16.mxu0 %v3324_v28  ;;  %1212 = vst.msk [vmem:[#allocation2 + $0xc8] sm:$0xff] %vm1199_vm6, %v5898_v34  ;;  %2234 = vrot.lane.b32.xlu0 %v4430_v26, %s4982_s13  ;;  %v2819_v0 = vsel %vm5113_vm5, %v2814_v48, %v2818_v39  ;;  %v1086_v53 = vsel %vm5068_vm2, %v1084_v51, %v1085_v44  ;;  %v1775_v3 = vrot.slane %v1773_v52, 5  ;;  %v1789_v4 = vshll.u32 %v4331_v45, 16  ;;  %v4897_v25 = vld [vmem:[%s5076_s7 + $0xa8] sm:$0xff]   ;;  %v4560_v38 = vld [vmem:[%s5076_s7 + $0x50] sm:$0x1] }
  0xfb   : > { %v1357_v41 = vpop.permute.xlu1 %1356  ;;  %2429 = vrot.lane.b32.xlu1 %v4896_v37, %s4980_s11  ;;  %v2824_v54 = vrot.slane %v2823_v59, 4  ;;  %v4239_v7 = vcombine.low %v1083_v50, %v1086_v53  ;;  %v1781_v58 = vrot.slane %v1779_v61, 5  ;;  %v1785_v8 = vrot.slane %v1783_v62, 4  ;;  %v4558_v14 = vld [vmem:[%s5076_s7 + $0x48] sm:$0xe]  ;;  %339 = vst.msk [vmem:[#allocation2 + $0x1a0] sm:$0xff] %vm325_vm11, %v4911_v30 }
  0xfc   : > { %v3323_v36 = vld [vmem:[#allocation2 + $0xa0] sm:$0xff]  ;;  %1399 = vst.msk [vmem:[#allocation2 + $0xc8] sm:$0xff] %vm1392_vm7, %v1357_v41  ;;  %v1776_v56 = vor.u32 %v1775_v3, %v1772_v60  ;;  %v1791_v11 = vrot.slane %v1789_v4, 5  ;;  %v706_v12 = vshrl.u32 %v381_v55, 16  ;;  %v709_v13 = vshll.u32 %v381_v55, 16 }
  0xfd   : > { %3704 = vmatmul.mubr.bf16.gmra.mrb[20].mxu0 %v3323_v36  ;;  %v1902_v57 = vpop.permute.xlu0 %1901  ;;  %v2829_v17 = vsel %vm5113_vm5, %v2824_v54, %v2828_v43  ;;  %v1786_v19 = vor.u32 %v1785_v8, %v1781_v58  ;;  %v715_v21 = vshll.u32 %v382_v63, 16  ;;  %v719_v22 = vshrl.u32 %v382_v63, 16  ;;  %v4559_v37 = vld [vmem:[%s5076_s7 + $0x4c] sm:$0xf]  ;;  %v4521_v42 = vld [vmem:[%s5076_s7 + $0xb4] sm:$0xf] }
  0xfe   : > { %1944 = vst.msk [vmem:[#allocation2 + $0xc8] sm:$0xff] %vm1937_vm8, %v1902_v57  ;;  %v3318_v10 = vld [vmem:[#allocation2 + $0x78] sm:$0xff]  ;;  %v4542_v1 = vcombine.low %v2819_v0, %v2829_v17  ;;  %v1777_v27 = vrot.slane %v1776_v56, 4  ;;  %v708_v28 = vrot.slane %v706_v12, 4  ;;  %v711_v29 = vrot.slane %v709_v13, 5 }
  0xff   : > { %4656 = vmatprep.mubr.msk.bf16.mxu1 %vm325_vm11, %v3318_v10  ;;  %1175 = vrot.lane.b32.xlu1 %v4239_v7, %s4981_s12  ;;  %v1787_v31 = vrot.slane %v1786_v19, 4  ;;  %v717_v32 = vrot.slane %v715_v21, 5  ;;  %v721_v33 = vrot.slane %v719_v22, 4  ;;  %v725_v49 = vshll.u32 %v383_v5, 16  ;;  %v4522_v48 = vld [vmem:[%s5076_s7 + $0xb8] sm:$0xf] }
 0x100   : > { %3849 = vmatmul.mubr.bf16.gmra.mrb[12].mxu1 %v3317_v6  ;;  %2974 = vrot.lane.b32.xlu0 %v4542_v1, %s4985_s22  ;;  %v1782_v20 = vsel %vm5113_vm5, %v1777_v27, %v1781_v58  ;;  %v712_v35 = vor.u32 %v711_v29, %v708_v28  ;;  %v4415_v36 = vrot.slane %v4393_v9, 9  ;;  %v2143_v26 = vrot.slane %v4394_v15, 5  ;;  %v4523_v61 = vld [vmem:[%s5076_s7 + $0xbc] sm:$0x1]  ;;  %v932_v0 = vld [vmem:[%s5076_s7 + $0xa8] sm:$0xe] }
 0x101   : > { %v838_v16 = vpop.permute.xlu1 %837  ;;  %v2223_v18 = vpop.permute.xlu0 %2222  ;;  %v722_v40 = vor.u32 %v721_v33, %v717_v32  ;;  %v727_v24 = vrot.slane %v725_v49, 5  ;;  %v2146_v41 = vrot.slane %v4395_v23, 5  ;;  %v4598_v51 = vrot.slane %v4558_v14, 9  ;;  %v933_v54 = vld [vmem:[%s5076_s7 + $0xac] sm:$0xf]  ;;  %v4899_v15 = vld [vmem:[%s5076_s7 + $0xb4] sm:$0xff]  }
 0x102   : > { %880 = vst.msk [vmem:[#allocation2 + $0xc0] sm:$0xff] %vm873_vm12, %v838_v16  ;;  %v713_v44 = vrot.slane %v712_v35, 4  ;;  %v2144_v45 = vsel %vm5068_vm2, %v4415_v36, %v2143_v26  ;;  %v2145_v46 = vrot.slane %v2143_v26, 4  ;;  %v3141_v52 = vrot.slane %v4559_v37, 5  ;;  %v934_v7 = vld [vmem:[%s5076_s7 + $0xb0] sm:$0x1] }
 0x103   : > { %2272 = vst.msk [vmem:[#allocation2 + $0xc8] sm:$0xff] %vm2258_vm9, %v2223_v18  ;;  %v723_v50 = vrot.slane %v722_v40, 4  ;;  %v3144_v55 = vrot.slane %v4560_v38, 5  ;;  %v2831_v62 = vshrl.u32 %v4521_v42, 16  ;;  %v2834_v63 = vshll.u32 %v4521_v42, 16 }
 0x104   : > { %2273 = vst.msk [vmem:[#allocation2 + $0xd0] sm:$0xff] %vm2260_vm10, %v2223_v18  ;;  %1370 = vrot.lane.b32.xlu0 %v4897_v25, %s4979_s10  ;;  %v718_v59 = vsel %vm5113_vm5, %v713_v44, %v717_v32  ;;  %v2147_v60 = vsel %vm5068_vm2, %v2145_v46, %v2146_v41  ;;  %v3142_v5 = vsel %vm5068_vm2, %v4598_v51, %v3141_v52  ;;  %v3143_v6 = vrot.slane %v3141_v52, 4  ;;  %v4333_v25 = vld [vmem:[%s5076_s7 + $0xb8] sm:$0xf]  ;;  %v4334_v27 = vld [vmem:[%s5076_s7 + $0xbc] sm:$0x1] }
 0x105   : > { %1211 = vst.msk [vmem:[#allocation2 + $0xc0] sm:$0xff] %vm1197_vm13, %v5898_v34  ;;  %v2418_v39 = vpop.permute.xlu1 %2417  ;;  %v1792_v34 = vsel %vm5113_vm5, %v1787_v31, %v1791_v11  ;;  %v728_v3 = vsel %vm5113_vm5, %v723_v50, %v727_v24  ;;  %v4431_v4 = vcombine.low %v2144_v45, %v2147_v60  ;;  %v2833_v9 = vrot.slane %v2831_v62, 4  ;;  %v4332_v11 = vld [vmem:[%s5076_s7 + $0xb4] sm:$0xf]  ;;  %v384_v33 = vld [vmem:[%s5076_s7 + $0xa8] sm:$0xf] }
 0x106   : > { %2460 = vst.msk [vmem:[#allocation2 + $0xd0] sm:$0xff] %vm2453_vm14, %v2418_v39  ;;  %v4351_v43 = vcombine.low %v1782_v20, %v1792_v34  ;;  %v4207_v8 = vcombine.low %v718_v59, %v728_v3  ;;  %v2836_v10 = vrot.slane %v2834_v63, 5  ;;  %v2840_v56 = vshll.u32 %v4522_v48, 16  ;;  %v385_v41 = vld [vmem:[%s5076_s7 + $0xac] sm:$0xf] }
 0x107   : > { %v3145_v13 = vsel %vm5068_vm2, %v3143_v6, %v3144_v55  ;;  %v2844_v16 = vshrl.u32 %v4522_v48, 16  ;;  %v2850_v18 = vshll.u32 %v4523_v61, 16  ;;  %v4224_v17 = vrot.slane %v932_v0, 9  ;;  %v386_v42 = vld [vmem:[%s5076_s7 + $0xb0] sm:$0x1]  ;;  %v4912_v55 = vld [vmem:[%s5076_s7 + $0xa8] sm:$0xff]  }
 0x108   : > { %v2963_v57 = vpop.permute.xlu0 %2962  ;;  %1915 = vrot.lane.b32.xlu1 %v4351_v43, %s4983_s14  ;;  %851 = vrot.lane.b32.xlu0 %v4207_v8, %s4984_s20  ;;  %v4614_v21 = vcombine.low %v3142_v5, %v3145_v13  ;;  %v2837_v22 = vor.u32 %v2836_v10, %v2833_v9  ;;  %v2842_v23 = vrot.slane %v2840_v56, 5  ;;  %v1089_v1 = vrot.slane %v933_v54, 5  ;;  %v4561_v50 = vld [vmem:[%s5076_s7 + $0x54] sm:$0xe]  ;;  %v4562_v51 = vld [vmem:[%s5076_s7 + $0x58] sm:$0xf] }
 0x109   : > { %3005 = vst.msk [vmem:[#allocation2 + $0xd0] sm:$0xff] %vm2998_vm15, %v2963_v57  ;;  %v5959_v53 = vpop.permute.xlu1 %1163  ;;  %v2846_v29 = vrot.slane %v2844_v16, 4  ;;  %v2852_v30 = vrot.slane %v2850_v18, 5  ;;  %v1092_v31 = vrot.slane %v934_v7, 5  ;;  %v1794_v32 = vshrl.u32 %v4332_v11, 16  ;;  %v3321_v5 = vld [vmem:[#allocation2 + $0x90] sm:$0xff] }
 0x10a   : > { %1214 = vst.msk [vmem:[#allocation2 + $0xe8] sm:$0xff] %vm1199_vm6, %v5959_v53  ;;  %v3328_v58 = vld [vmem:[#allocation2 + $0xc8] sm:$0xff]  ;;  %v2838_v49 = vrot.slane %v2837_v22, 4  ;;  %v1090_v14 = vsel %vm5068_vm2, %v4224_v17, %v1089_v1  ;;  %v1091_v20 = vrot.slane %v1089_v1, 4  ;;  %v1797_v35 = vshll.u32 %v4332_v11, 16  ;;  %v4900_v10 = vld [vmem:[%s5076_s7 + $0xb4] sm:$0xff]  }
 0x10b   : > { %3711 = vmatprep.mubr.bf16.mxu0 %v3328_v58  ;;  %3291 = vst.msk [vmem:[#allocation2 + $0x98] sm:$0xff] %vm325_vm11, %v4614_v21  ;;  %v2847_v36 = vor.u32 %v2846_v29, %v2842_v23  ;;  %v1796_v26 = vrot.slane %v1794_v32, 4  ;;  %v1803_v37 = vshll.u32 %v4333_v25, 16  ;;  %v1807_v38 = vshrl.u32 %v4333_v25, 16  ;;  %340 = vst.msk [vmem:[#allocation2 + $0x1c0] sm:$0xff] %vm325_vm11, %v4912_v55 }
 0x10c   : > { %v3327_v12 = vld [vmem:[#allocation2 + $0xc0] sm:$0xff]  ;;  %v1359_v19 = vpop.permute.xlu0 %1358  ;;  %2236 = vrot.lane.b32.xlu1 %v4431_v4, %s4982_s13  ;;  %2431 = vrot.lane.b32.xlu0 %v4899_v15, %s4980_s11  ;;  %v2843_v39 = vsel %vm5113_vm5, %v2838_v49, %v2842_v23  ;;  %v1093_v34 = vsel %vm5068_vm2, %v1091_v20, %v1092_v31  ;;  %v1799_v40 = vrot.slane %v1797_v35, 5  ;;  %v1813_v24 = vshll.u32 %v4334_v27, 16  ;;  %v4563_v4 = vld [vmem:[%s5076_s7 + $0x5c] sm:$0x1] }
 0x10d   : > { %3712 = vmatmul.mubr.bf16.gmra.mrb[24].mxu0 %v3327_v12  ;;  %1400 = vst.msk [vmem:[#allocation2 + $0xe8] sm:$0xff] %vm1392_vm7, %v1359_v19  ;;  %v1904_v28 = vpop.permute.xlu1 %1903  ;;  %v2848_v44 = vrot.slane %v2847_v36, 4  ;;  %v4240_v45 = vcombine.low %v1090_v14, %v1093_v34  ;;  %v1805_v46 = vrot.slane %v1803_v37, 5  ;;  %v1809_v48 = vrot.slane %v1807_v38, 4  ;;  %v4396_v8 = vld [vmem:[%s5076_s7 + $0xb4] sm:$0xe] }
 0x10e   : > { %1945 = vst.msk [vmem:[#allocation2 + $0xe8] sm:$0xff] %vm1937_vm8, %v1904_v28  ;;  %v1800_v57 = vor.u32 %v1799_v40, %v1796_v26  ;;  %v1815_v59 = vrot.slane %v1813_v24, 5  ;;  %v730_v60 = vshrl.u32 %v384_v33, 16  ;;  %v733_v61 = vshll.u32 %v384_v33, 16  ;;  %v4397_v19 = vld [vmem:[%s5076_s7 + $0xb8] sm:$0xf] }
 0x10f   : > { %v2853_v62 = vsel %vm5113_vm5, %v2848_v44, %v2852_v30  ;;  %v1810_v63 = vor.u32 %v1809_v48, %v1805_v46  ;;  %v739_v0 = vshll.u32 %v385_v41, 16  ;;  %v743_v3 = vshrl.u32 %v385_v41, 16  ;;  %v4398_v21 = vld [vmem:[%s5076_s7 + $0xbc] sm:$0x1]  ;;  %v4524_v28 = vld [vmem:[%s5076_s7 + $0xc0] sm:$0xf] }
 0x110   : > { %v4543_v6 = vcombine.low %v2843_v39, %v2853_v62  ;;  %1177 = vrot.lane.b32.xlu0 %v4240_v45, %s4981_s12  ;;  %v1801_v54 = vrot.slane %v1800_v57, 4  ;;  %v732_v7 = vrot.slane %v730_v60, 4  ;;  %v735_v58 = vrot.slane %v733_v61, 5  ;;  %v4525_v35 = vld [vmem:[%s5076_s7 + $0xc4] sm:$0xf] }
 0x111   : > { %v2225_v43 = vpop.permute.xlu1 %2224  ;;  %v1811_v56 = vrot.slane %v1810_v63, 4  ;;  %v741_v11 = vrot.slane %v739_v0, 5  ;;  %v745_v12 = vrot.slane %v743_v3, 4  ;;  %v749_v13 = vshll.u32 %v386_v42, 16  ;;  %v4526_v38 = vld [vmem:[%s5076_s7 + $0xc8] sm:$0x1] }
 0x112   : > { %v840_v52 = vpop.permute.xlu0 %839  ;;  %2274 = vst.msk [vmem:[#allocation2 + $0xe8] sm:$0xff] %vm2258_vm9, %v2225_v43  ;;  %v3322_v9 = vld [vmem:[#allocation2 + $0x98] sm:$0xff]  ;;  %2976 = vrot.lane.b32.xlu1 %v4543_v6, %s4985_s22  ;;  %v736_v16 = vor.u32 %v735_v58, %v732_v7  ;;  %v4599_v18 = vrot.slane %v4561_v50, 9  ;;  %v3148_v17 = vrot.slane %v4562_v51, 5  ;;  %v3151_v27 = vrot.slane %v4563_v4, 5  ;;  %v4902_v61 = vld [vmem:[%s5076_s7 + $0xc0] sm:$0xff]  }
 0x113   : > { %2275 = vst.msk [vmem:[#allocation2 + $0xf0] sm:$0xff] %vm2260_vm10, %v2225_v43  ;;  %4657 = vmatprep.mubr.msk.bf16.mxu1 %vm325_vm11, %v3322_v9  ;;  %v1816_v23 = vsel %vm5113_vm5, %v1811_v56, %v1815_v59  ;;  %v746_v1 = vor.u32 %v745_v12, %v741_v11  ;;  %v751_v25 = vrot.slane %v749_v13, 5  ;;  %v4416_v49 = vrot.slane %v4396_v8, 9  ;;  %v935_v40 = vld [vmem:[%s5076_s7 + $0xb4] sm:$0xe] }
 0x114   : > { %881 = vst.msk [vmem:[#allocation2 + $0xe0] sm:$0xff] %vm873_vm12, %v840_v52  ;;  %3857 = vmatmul.mubr.bf16.gmra.mrb[16].mxu1 %v3321_v5  ;;  %v737_v30 = vrot.slane %v736_v16, 4  ;;  %v3149_v31 = vsel %vm5068_vm2, %v4599_v18, %v3148_v17  ;;  %v3150_v32 = vrot.slane %v3148_v17, 4  ;;  %v2150_v14 = vrot.slane %v4397_v19, 5  ;;  %v936_v45 = vld [vmem:[%s5076_s7 + $0xb8] sm:$0xf] }
 0x115   : > { %1213 = vst.msk [vmem:[#allocation2 + $0xe0] sm:$0xff] %vm1197_vm13, %v5959_v53  ;;  %v1806_v53 = vsel %vm5113_vm5, %v1801_v54, %v1805_v46  ;;  %v747_v33 = vrot.slane %v746_v1, 4  ;;  %v2153_v20 = vrot.slane %v4398_v21, 5  ;;  %v2855_v39 = vshrl.u32 %v4524_v28, 16  ;;  %v937_v46 = vld [vmem:[%s5076_s7 + $0xbc] sm:$0x1] }
 0x116   : > { %v2420_v15 = vpop.permute.xlu0 %2419  ;;  %v4352_v29 = vcombine.low %v1806_v53, %v1816_v23  ;;  %1372 = vrot.lane.b32.xlu1 %v4900_v10, %s4979_s10  ;;  %v742_v26 = vsel %vm5113_vm5, %v737_v30, %v741_v11  ;;  %v3152_v37 = vsel %vm5068_vm2, %v3150_v32, %v3151_v27  ;;  %v2858_v34 = vshll.u32 %v4524_v28, 16  ;;  %v4335_v57 = vld [vmem:[%s5076_s7 + $0xc0] sm:$0xf]  ;;  %v4336_v7 = vld [vmem:[%s5076_s7 + $0xc4] sm:$0xf]  ;;  %v3325_v16 = vld [vmem:[#allocation2 + $0xb0] sm:$0xff] }
 0x117   : > { %2461 = vst.msk [vmem:[#allocation2 + $0xf0] sm:$0xff] %vm2453_vm14, %v2420_v15  ;;  %v752_v41 = vsel %vm5113_vm5, %v747_v33, %v751_v25  ;;  %v4615_v42 = vcombine.low %v3149_v31, %v3152_v37  ;;  %v2151_v43 = vsel %vm5068_vm2, %v4416_v49, %v2150_v14  ;;  %v2152_v44 = vrot.slane %v2150_v14, 4  ;;  %v4337_v58 = vld [vmem:[%s5076_s7 + $0xc8] sm:$0x1]  ;;  %v389_v30 = vld [vmem:[%s5076_s7 + $0xbc] sm:$0x1] }
 0x118   : > { %v2965_v22 = vpop.permute.xlu1 %2964  ;;  %1917 = vrot.lane.b32.xlu0 %v4352_v29, %s4983_s14  ;;  %v4208_v50 = vcombine.low %v742_v26, %v752_v41  ;;  %v2857_v51 = vrot.slane %v2855_v39, 4  ;;  %v2860_v52 = vrot.slane %v2858_v34, 5  ;;  %v2864_v55 = vshll.u32 %v4525_v35, 16  ;;  %v388_v29 = vld [vmem:[%s5076_s7 + $0xb8] sm:$0xf] }
 0x119   : > { %3006 = vst.msk [vmem:[#allocation2 + $0xf0] sm:$0xff] %vm2998_vm15, %v2965_v22  ;;  %v3332_v48 = vld [vmem:[#allocation2 + $0xe8] sm:$0xff]  ;;  %v2154_v60 = vsel %vm5068_vm2, %v2152_v44, %v2153_v20  ;;  %v2868_v62 = vshrl.u32 %v4525_v35, 16  ;;  %v2874_v63 = vshll.u32 %v4526_v38, 16  ;;  %v4225_v0 = vrot.slane %v935_v40, 9  ;;  %v4913_v20 = vld [vmem:[%s5076_s7 + $0xb4] sm:$0xff]  }
 0x11a   : > { %v6019_v36 = vpop.permute.xlu0 %1165  ;;  %3719 = vmatprep.mubr.bf16.mxu0 %v3332_v48  ;;  %3292 = vst.msk [vmem:[#allocation2 + $0xb8] sm:$0xff] %vm325_vm11, %v4615_v42  ;;  %853 = vrot.lane.b32.xlu1 %v4208_v50, %s4984_s20  ;;  %v4432_v4 = vcombine.low %v2151_v43, %v2154_v60  ;;  %v2861_v5 = vor.u32 %v2860_v52, %v2857_v51  ;;  %v2866_v6 = vrot.slane %v2864_v55, 5  ;;  %v1096_v54 = vrot.slane %v936_v45, 5  ;;  %v387_v22 = vld [vmem:[%s5076_s7 + $0xb4] sm:$0xf]  ;;  %v4903_v45 = vld [vmem:[%s5076_s7 + $0xc0] sm:$0xff]  }
 0x11b   : > { %1216 = vst.msk [vmem:[#allocation2 + $0x108] sm:$0xff] %vm1199_vm6, %v6019_v36  ;;  %v2870_v8 = vrot.slane %v2868_v62, 4  ;;  %v2876_v9 = vrot.slane %v2874_v63, 5  ;;  %v1099_v10 = vrot.slane %v937_v46, 5  ;;  %v1818_v56 = vshrl.u32 %v4335_v57, 16 }
 0x11c   : > { %v1361_v24 = vpop.permute.xlu1 %1360  ;;  %v3331_v59 = vld [vmem:[#allocation2 + $0xe0] sm:$0xff]  ;;  %2238 = vrot.lane.b32.xlu0 %v4432_v4, %s4982_s13  ;;  %v2862_v11 = vrot.slane %v2861_v5, 4  ;;  %v1097_v12 = vsel %vm5068_vm2, %v4225_v0, %v1096_v54  ;;  %v1098_v13 = vrot.slane %v1096_v54, 4  ;;  %v1821_v15 = vshll.u32 %v4335_v57, 16  ;;  %v4401_v43 = vld [vmem:[%s5076_s7 + $0xc8] sm:$0x1] }
 0x11d   : > { %1401 = vst.msk [vmem:[#allocation2 + $0x108] sm:$0xff] %vm1392_vm7, %v1361_v24  ;;  %3720 = vmatmul.mubr.bf16.gmra.mrb[28].mxu0 %v3331_v59  ;;  %v2871_v18 = vor.u32 %v2870_v8, %v2866_v6  ;;  %v1820_v17 = vrot.slane %v1818_v56, 4  ;;  %v1827_v19 = vshll.u32 %v4336_v7, 16  ;;  %v1831_v21 = vshrl.u32 %v4336_v7, 16  ;;  %v4399_v14 = vld [vmem:[%s5076_s7 + $0xc0] sm:$0xe] }
 0x11e   : > { %v1906_v3 = vpop.permute.xlu0 %1905  ;;  %2433 = vrot.lane.b32.xlu1 %v4902_v61, %s4980_s11  ;;  %v2867_v1 = vsel %vm5113_vm5, %v2862_v11, %v2866_v6  ;;  %v1100_v25 = vsel %vm5068_vm2, %v1098_v13, %v1099_v10  ;;  %v1823_v27 = vrot.slane %v1821_v15, 5  ;;  %v1837_v28 = vshll.u32 %v4337_v58, 16  ;;  %v4400_v42 = vld [vmem:[%s5076_s7 + $0xc4] sm:$0xf]  ;;  %341 = vst.msk [vmem:[#allocation2 + $0x1e0] sm:$0xff] %vm325_vm11, %v4913_v20 }
 0x11f   : > { %1946 = vst.msk [vmem:[#allocation2 + $0x108] sm:$0xff] %vm1937_vm8, %v1906_v3  ;;  %v2872_v31 = vrot.slane %v2871_v18, 4  ;;  %v4241_v32 = vcombine.low %v1097_v12, %v1100_v25  ;;  %v1829_v33 = vrot.slane %v1827_v19, 5  ;;  %v1833_v49 = vrot.slane %v1831_v21, 4  ;;  %v4564_v51 = vld [vmem:[%s5076_s7 + $0x60] sm:$0xe] }
 0x120   : > { %v1824_v26 = vor.u32 %v1823_v27, %v1820_v17  ;;  %v1839_v37 = vrot.slane %v1837_v28, 5  ;;  %v754_v38 = vshrl.u32 %v387_v22, 16  ;;  %v757_v39 = vshll.u32 %v387_v22, 16  ;;  %v4565_v60 = vld [vmem:[%s5076_s7 + $0x64] sm:$0xf] }
 0x121   : > { %v3326_v35 = vld [vmem:[#allocation2 + $0xb8] sm:$0xff]  ;;  %v1834_v40 = vor.u32 %v1833_v49, %v1829_v33  ;;  %v763_v24 = vshll.u32 %v388_v29, 16  ;;  %v767_v41 = vshrl.u32 %v388_v29, 16  ;;  %v773_v59 = vshll.u32 %v389_v30, 16  ;;  %v4566_v3 = vld [vmem:[%s5076_s7 + $0x68] sm:$0x1] }
 0x122   : > { %v842_v53 = vpop.permute.xlu1 %841  ;;  %v2227_v23 = vpop.permute.xlu0 %2226  ;;  %4658 = vmatprep.mubr.msk.bf16.mxu1 %vm325_vm11, %v3326_v35  ;;  %1179 = vrot.lane.b32.xlu1 %v4241_v32, %s4981_s12  ;;  %v1825_v46 = vrot.slane %v1824_v26, 4  ;;  %v756_v48 = vrot.slane %v754_v38, 4  ;;  %v759_v50 = vrot.slane %v757_v39, 5  ;;  %v4417_v63 = vrot.slane %v4399_v14, 9  ;;  %v4527_v4 = vld [vmem:[%s5076_s7 + $0xcc] sm:$0xf] }
 0x123   : > { %882 = vst.msk [vmem:[#allocation2 + $0x100] sm:$0xff] %vm873_vm12, %v842_v53  ;;  %3865 = vmatmul.mubr.bf16.gmra.mrb[20].mxu1 %v3325_v16  ;;  %v1835_v52 = vrot.slane %v1834_v40, 4  ;;  %v765_v55 = vrot.slane %v763_v24, 5  ;;  %v769_v57 = vrot.slane %v767_v41, 4  ;;  %v2157_v0 = vrot.slane %v4400_v42, 5 }
 0x124   : > { %1215 = vst.msk [vmem:[#allocation2 + $0x100] sm:$0xff] %vm1197_vm13, %v6019_v36  ;;  %v2877_v36 = vsel %vm5113_vm5, %v2872_v31, %v2876_v9  ;;  %v1830_v61 = vsel %vm5113_vm5, %v1825_v46, %v1829_v33  ;;  %v760_v62 = vor.u32 %v759_v50, %v756_v48  ;;  %v775_v58 = vrot.slane %v773_v59, 5  ;;  %v4528_v9 = vld [vmem:[%s5076_s7 + $0xd0] sm:$0xf]  ;;  %v4529_v13 = vld [vmem:[%s5076_s7 + $0xd4] sm:$0x1] }
 0x125   : > { %2276 = vst.msk [vmem:[#allocation2 + $0x108] sm:$0xff] %vm2258_vm9, %v2227_v23  ;;  %v4544_v44 = vcombine.low %v2867_v1, %v2877_v36  ;;  %v1840_v54 = vsel %vm5113_vm5, %v1835_v52, %v1839_v37  ;;  %v770_v7 = vor.u32 %v769_v57, %v765_v55  ;;  %v2160_v8 = vrot.slane %v4401_v43, 5  ;;  %v4567_v15 = vld [vmem:[%s5076_s7 + $0x6c] sm:$0xe]  ;;  %v4568_v21 = vld [vmem:[%s5076_s7 + $0x70] sm:$0xf] }
 0x126   : > { %2277 = vst.msk [vmem:[#allocation2 + $0x110] sm:$0xff] %vm2260_vm10, %v2227_v23  ;;  %v2422_v34 = vpop.permute.xlu1 %2421  ;;  %v4353_v10 = vcombine.low %v1830_v61, %v1840_v54  ;;  %v761_v56 = vrot.slane %v760_v62, 4  ;;  %v2158_v11 = vsel %vm5068_vm2, %v4417_v63, %v2157_v0  ;;  %v2159_v12 = vrot.slane %v2157_v0, 4  ;;  %v4569_v27 = vld [vmem:[%s5076_s7 + $0x74] sm:$0x1] }
 0x127   : > { %2462 = vst.msk [vmem:[#allocation2 + $0x110] sm:$0xff] %vm2453_vm14, %v2422_v34  ;;  %2978 = vrot.lane.b32.xlu0 %v4544_v44, %s4985_s22  ;;  %v771_v16 = vrot.slane %v770_v7, 4  ;;  %v4600_v18 = vrot.slane %v4564_v51, 9  ;;  %v3155_v17 = vrot.slane %v4565_v60, 5  ;;  %v3158_v19 = vrot.slane %v4566_v3, 5  ;;  %v4905_v34 = vld [vmem:[%s5076_s7 + $0xcc] sm:$0xff]  }
 0x128   : > { %v2967_v5 = vpop.permute.xlu0 %2966  ;;  %1919 = vrot.lane.b32.xlu1 %v4353_v10, %s4983_s14  ;;  %v766_v22 = vsel %vm5113_vm5, %v761_v56, %v765_v55  ;;  %v2161_v23 = vsel %vm5068_vm2, %v2159_v12, %v2160_v8  ;;  %v2879_v1 = vshrl.u32 %v4527_v4, 16  ;;  %v2882_v25 = vshll.u32 %v4527_v4, 16  ;;  %v4570_v49 = vld [vmem:[%s5076_s7 + $0x78] sm:$0xe]  ;;  %v4571_v14 = vld [vmem:[%s5076_s7 + $0x7c] sm:$0xf] }
 0x129   : > { %3007 = vst.msk [vmem:[#allocation2 + $0x110] sm:$0xff] %vm2998_vm15, %v2967_v5  ;;  %v776_v30 = vsel %vm5113_vm5, %v771_v16, %v775_v58  ;;  %v4433_v31 = vcombine.low %v2158_v11, %v2161_v23  ;;  %v3156_v32 = vsel %vm5068_vm2, %v4600_v18, %v3155_v17  ;;  %v3157_v33 = vrot.slane %v3155_v17, 4  ;;  %v4572_v38 = vld [vmem:[%s5076_s7 + $0x80] sm:$0x1]  ;;  %v4573_v42 = vld [vmem:[%s5076_s7 + $0x84] sm:$0xe] }
 0x12a   : > { %v6081_v6 = vpop.permute.xlu1 %1167  ;;  %v4209_v20 = vcombine.low %v766_v22, %v776_v30  ;;  %v2881_v35 = vrot.slane %v2879_v1, 4  ;;  %v2884_v26 = vrot.slane %v2882_v25, 5  ;;  %v2888_v37 = vshll.u32 %v4528_v9, 16  ;;  %v4574_v48 = vld [vmem:[%s5076_s7 + $0x88] sm:$0xf] }
 0x12b   : > { %1218 = vst.msk [vmem:[#allocation2 + $0x128] sm:$0xff] %vm1199_vm6, %v6081_v6  ;;  %1374 = vrot.lane.b32.xlu0 %v4903_v45, %s4979_s10  ;;  %v3335_v29 = vld [vmem:[#allocation2 + $0x100] sm:$0xff]  ;;  %v3159_v39 = vsel %vm5068_vm2, %v3157_v33, %v3158_v19  ;;  %v2892_v36 = vshrl.u32 %v4528_v9, 16  ;;  %v2898_v40 = vshll.u32 %v4529_v13, 16  ;;  %v4601_v24 = vrot.slane %v4567_v15, 9 }
 0x12c   : > { %v3336_v53 = vld [vmem:[#allocation2 + $0x108] sm:$0xff]  ;;  %v1363_v28 = vpop.permute.xlu0 %1362  ;;  %2240 = vrot.lane.b32.xlu1 %v4433_v31, %s4982_s13  ;;  %v4616_v43 = vcombine.low %v3156_v32, %v3159_v39  ;;  %v2885_v44 = vor.u32 %v2884_v26, %v2881_v35  ;;  %v2890_v45 = vrot.slane %v2888_v37, 5  ;;  %v3162_v46 = vrot.slane %v4568_v21, 5  ;;  %v4576_v10 = vld [vmem:[%s5076_s7 + $0x90] sm:$0xe] }
 0x12d   : > { %3727 = vmatprep.mubr.bf16.mxu0 %v3336_v53  ;;  %1402 = vst.msk [vmem:[#allocation2 + $0x128] sm:$0xff] %vm1392_vm7, %v1363_v28  ;;  %v2894_v50 = vrot.slane %v2892_v36, 4  ;;  %v2900_v51 = vrot.slane %v2898_v40, 5  ;;  %v3165_v52 = vrot.slane %v4569_v27, 5  ;;  %v4602_v55 = vrot.slane %v4570_v49, 9 }
 0x12e   : > { %3728 = vmatmul.mubr.bf16.gmra.mrb[32].mxu0 %v3335_v29  ;;  %v1908_v41 = vpop.permute.xlu1 %1907  ;;  %v4575_v57 = vld [vmem:[%s5076_s7 + $0x8c] sm:$0x1]  ;;  %3293 = vst.msk [vmem:[#allocation2 + $0xd8] sm:$0xff] %vm325_vm11, %v4616_v43  ;;  %v2886_v59 = vrot.slane %v2885_v44, 4  ;;  %v3163_v60 = vsel %vm5068_vm2, %v4601_v24, %v3162_v46  ;;  %v3164_v61 = vrot.slane %v3162_v46, 4  ;;  %v3169_v62 = vrot.slane %v4571_v14, 5 }
 0x12f   : > { %855 = vrot.lane.b32.xlu0 %v4209_v20, %s4984_s20  ;;  %1947 = vst.msk [vmem:[#allocation2 + $0x128] sm:$0xff] %vm1937_vm8, %v1908_v41  ;;  %v2895_v63 = vor.u32 %v2894_v50, %v2890_v45  ;;  %v3172_v3 = vrot.slane %v4572_v38, 5  ;;  %v4603_v5 = vrot.slane %v4573_v42, 9  ;;  %v3176_v54 = vrot.slane %v4574_v48, 5  ;;  %v4577_v56 = vld [vmem:[%s5076_s7 + $0x94] sm:$0xf] }
 0x130   : > { %v2891_v7 = vsel %vm5113_vm5, %v2886_v59, %v2890_v45  ;;  %v3166_v58 = vsel %vm5068_vm2, %v3164_v61, %v3165_v52  ;;  %v3170_v8 = vsel %vm5068_vm2, %v4602_v55, %v3169_v62  ;;  %v3171_v9 = vrot.slane %v3169_v62, 4  ;;  %v4578_v53 = vld [vmem:[%s5076_s7 + $0x98] sm:$0x1]  ;;  %v4579_v16 = vld [vmem:[%s5076_s7 + $0x9c] sm:$0xe]  ;;  %v3329_v29 = vld [vmem:[#allocation2 + $0xd0] sm:$0xff] }
 0x131   : > { %v2896_v11 = vrot.slane %v2895_v63, 4  ;;  %v4617_v12 = vcombine.low %v3163_v60, %v3166_v58  ;;  %v3177_v13 = vsel %vm5068_vm2, %v4603_v5, %v3176_v54  ;;  %v3178_v15 = vrot.slane %v3176_v54, 4  ;;  %v4580_v22 = vld [vmem:[%s5076_s7 + $0xa0] sm:$0xf]  ;;  %v4581_v27 = vld [vmem:[%s5076_s7 + $0xa4] sm:$0x1] }
 0x132   : > { %v844_v0 = vpop.permute.xlu0 %843  ;;  %v2229_v4 = vpop.permute.xlu1 %2228  ;;  %v3173_v18 = vsel %vm5068_vm2, %v3171_v9, %v3172_v3  ;;  %v3179_v17 = vrot.slane %v4575_v57, 5  ;;  %v4604_v19 = vrot.slane %v4576_v10, 9  ;;  %v3183_v21 = vrot.slane %v4577_v56, 5  ;;  %v4582_v26 = vld [vmem:[%s5076_s7 + $0xa8] sm:$0xe]  ;;  %v3333_v63 = vld [vmem:[#allocation2 + $0xf0] sm:$0xff] }
 0x133   : > { %2435 = vrot.lane.b32.xlu0 %v4905_v34, %s4980_s11  ;;  %883 = vst.msk [vmem:[#allocation2 + $0x120] sm:$0xff] %vm873_vm12, %v844_v0  ;;  %v2901_v23 = vsel %vm5113_vm5, %v2896_v11, %v2900_v51  ;;  %v4618_v1 = vcombine.low %v3170_v8, %v3173_v18  ;;  %v3186_v25 = vrot.slane %v4578_v53, 5  ;;  %v4605_v28 = vrot.slane %v4579_v16, 9  ;;  %v4583_v37 = vld [vmem:[%s5076_s7 + $0xac] sm:$0xf] }
 0x134   : > { %2278 = vst.msk [vmem:[#allocation2 + $0x128] sm:$0xff] %vm2258_vm9, %v2229_v4  ;;  %v4545_v30 = vcombine.low %v2891_v7, %v2901_v23  ;;  %v3180_v31 = vsel %vm5068_vm2, %v3178_v15, %v3179_v17  ;;  %v3184_v47 = vsel %vm5068_vm2, %v4604_v19, %v3183_v21  ;;  %v3185_v32 = vrot.slane %v3183_v21, 4  ;;  %v4584_v38 = vld [vmem:[%s5076_s7 + $0xb0] sm:$0x1]  ;;  %v4585_v41 = vld [vmem:[%s5076_s7 + $0xb4] sm:$0xe] }
 0x135   : > { %2279 = vst.msk [vmem:[#allocation2 + $0x130] sm:$0xff] %vm2260_vm10, %v2229_v4  ;;  %v3330_v33 = vld [vmem:[#allocation2 + $0xd8] sm:$0xff]  ;;  %v4619_v49 = vcombine.low %v3177_v13, %v3180_v31  ;;  %v3190_v14 = vrot.slane %v4580_v22, 5  ;;  %v3193_v20 = vrot.slane %v4581_v27, 5  ;;  %v4606_v24 = vrot.slane %v4582_v26, 9 }
 0x136   : > { %1217 = vst.msk [vmem:[#allocation2 + $0x120] sm:$0xff] %vm1197_vm13, %v6081_v6  ;;  %v2424_v6 = vpop.permute.xlu0 %2423  ;;  %4659 = vmatprep.mubr.msk.bf16.mxu1 %vm325_vm11, %v3330_v33  ;;  %2980 = vrot.lane.b32.xlu1 %v4545_v30, %s4985_s22  ;;  %v3187_v35 = vsel %vm5068_vm2, %v3185_v32, %v3186_v25  ;;  %v3197_v43 = vrot.slane %v4583_v37, 5  ;;  %v3200_v44 = vrot.slane %v4584_v38, 5  ;;  %v4586_v45 = vld [vmem:[%s5076_s7 + $0xb8] sm:$0xf]  ;;  %v4607_v46 = vrot.slane %v4585_v41, 9 }
 0x137   : > { %3294 = vst.msk [vmem:[#allocation2 + $0xf8] sm:$0xff] %vm325_vm11, %v4617_v12  ;;  %3295 = vst.msk [vmem:[#allocation2 + $0x118] sm:$0xff] %vm325_vm11, %v4618_v1  ;;  %3873 = vmatmul.mubr.bf16.gmra.mrb[24].mxu1 %v3329_v29  ;;  %v4620_v34 = vcombine.low %v3184_v47, %v3187_v35  ;;  %v3191_v36 = vsel %vm5068_vm2, %v4605_v28, %v3190_v14  ;;  %v3192_v40 = vrot.slane %v3190_v14, 4  ;;  %v4587_v52 = vld [vmem:[%s5076_s7 + $0xbc] sm:$0x1]  ;;  %v3204_v55 = vrot.slane %v4586_v45, 5 }
 0x138   : > { %2463 = vst.msk [vmem:[#allocation2 + $0x130] sm:$0xff] %vm2453_vm14, %v2424_v6  ;;  %v3198_v60 = vsel %vm5068_vm2, %v4606_v24, %v3197_v43  ;;  %v3199_v61 = vrot.slane %v3197_v43, 4  ;;  %v3207_v62 = vrot.slane %v4587_v52, 5  ;;  %v4588_v54 = vld [vmem:[%s5076_s7 + $0xc0] sm:$0xe]  ;;  %v3337_v29 = vld [vmem:[#allocation2 + $0x110] sm:$0xff] }
 0x139   : > { %3296 = vst.msk [vmem:[#allocation2 + $0x138] sm:$0xff] %vm325_vm11, %v4619_v49  ;;  %3297 = vst.msk [vmem:[#allocation2 + $0x158] sm:$0xff] %vm325_vm11, %v4620_v34  ;;  %v3194_v51 = vsel %vm5068_vm2, %v3192_v40, %v3193_v20  ;;  %v3205_v0 = vsel %vm5068_vm2, %v4607_v46, %v3204_v55  ;;  %v3206_v3 = vrot.slane %v3204_v55, 4  ;;  %v4589_v7 = vld [vmem:[%s5076_s7 + $0xc4] sm:$0xf]  ;;  %v4608_v56 = vrot.slane %v4588_v54, 9 }
 0x13a   : > { %v1170_v50 = vpop.permute.xlu0 %1169  ;;  %v4621_v59 = vcombine.low %v3191_v36, %v3194_v51  ;;  %v3201_v5 = vsel %vm5068_vm2, %v3199_v61, %v3200_v44  ;;  %v4590_v10 = vld [vmem:[%s5076_s7 + $0xc8] sm:$0x1]  ;;  %v3211_v11 = vrot.slane %v4589_v7, 5  ;;  %v4591_v12 = vld [vmem:[%s5076_s7 + $0xcc] sm:$0xe]  ;;  %s4676_s22 = sshll.u32 %s5035_s19, 12 }
 0x13b   : > { %v3340_v39 = vld [vmem:[#allocation2 + $0x128] sm:$0xff]  ;;  %1220 = vst.msk [vmem:[#allocation2 + $0x148] sm:$0xff] %vm1199_vm6, %v1170_v50  ;;  %v4622_v8 = vcombine.low %v3198_v60, %v3201_v5  ;;  %v3208_v9 = vsel %vm5068_vm2, %v3206_v3, %v3207_v62  ;;  %v3214_v15 = vrot.slane %v4590_v10, 5  ;;  %v4592_v53 = vld [vmem:[%s5076_s7 + $0xd0] sm:$0xf]  ;;  %v4609_v19 = vrot.slane %v4591_v12, 9  ;;  %s6412_s9 = scalar_lea.hbm %s6467_s4, %s4676_s22 }
 0x13c   : > { %3735 = vmatprep.mubr.bf16.mxu0 %v3340_v39  ;;  %3298 = vst.msk [vmem:[#allocation2 + $0x178] sm:$0xff] %vm325_vm11, %v4621_v59  ;;  %v4623_v13 = vcombine.low %v3205_v0, %v3208_v9  ;;  %v4593_v16 = vld [vmem:[%s5076_s7 + $0xd4] sm:$0x1]  ;;  %v3212_v18 = vsel %vm5068_vm2, %v4608_v56, %v3211_v11  ;;  %v3213_v17 = vrot.slane %v3211_v11, 4  ;;  %v3218_v21 = vrot.slane %v4592_v53, 5  ;;  %s188_s7 = sand.u32 1, %s4968_s16  }
 0x13d   : > { %v3339_v42 = vld [vmem:[#allocation2 + $0x120] sm:$0xff]  ;;  %v2969_v48 = vpop.permute.xlu1 %2968  ;;  %3299 = vst.msk [vmem:[#allocation2 + $0x198] sm:$0xff] %vm325_vm11, %v4622_v8  ;;  %v3221_v22 = vrot.slane %v4593_v16, 5  ;;  %s4176_s14 = sshll.u32 %s188_s7, 8  ;;  %s6422_s19 = scalar_lea.sflag [#allocation4], %s188_s7 }
 0x13e   : > { %3736 = vmatmul.mubr.bf16.gmra.mrb[36].mxu0 %v3339_v42  ;;  %v3334_v57 = vld [vmem:[#allocation2 + $0xf8] sm:$0xff]  ;;  %3008 = vst.msk [vmem:[#allocation2 + $0x130] sm:$0xff] %vm2998_vm15, %v2969_v48  ;;  %v3215_v1 = vsel %vm5068_vm2, %v3213_v17, %v3214_v15  ;;  %v3219_v6 = vsel %vm5068_vm2, %v4609_v19, %v3218_v21  ;;  %v3220_v25 = vrot.slane %v3218_v21, 4  ;;  %s6282_s20 = scalar_lea.vmem [#allocation3], %s4176_s14 }
 0x13f   : > { %4660 = vmatprep.mubr.msk.bf16.mxu1 %vm325_vm11, %v3334_v57  ;;  %v3338_v4 = vld [vmem:[#allocation2 + $0x118] sm:$0xff]  ;;  %3300 = vst.msk [vmem:[#allocation2 + $0x1b8] sm:$0xff] %vm325_vm11, %v4623_v13  ;;  %v4624_v27 = vcombine.low %v3212_v18, %v3215_v1  ;;  %s4110_s5 = sshll.u32 %s6282_s20, 4  ;;  %s6414_s5 = int_to_ptr.vmem [resolvable:$true] %s4110_s5 }
 0x140   : > { %3881 = vmatmul.mubr.bf16.gmra.mrb[28].mxu1 %v3333_v63  ;;  %v1910_v23 = vpop.permute.xlu0 %1909  ;;  %v3222_v28 = vsel %vm5068_vm2, %v3220_v25, %v3221_v22  ;;  %v3342_v47 = vld [vmem:[#allocation2 + $0x138] sm:$0xff]  ;;  %s4914_s23 = scalar_lea.vmem %s6414_s5, 4096  ;;  %p4921_p0 = scmp.lt.s32.totalorder %s6414_s5, %s4919_s28 }
 0x141   : > { %v1365_v58 = vpop.permute.xlu1 %1364  ;;  %4661 = vmatprep.mubr.msk.bf16.mxu1 %vm325_vm11, %v3338_v4  ;;  %3301 = vst.msk [vmem:[#allocation2 + $0x1d8] sm:$0xff] %vm325_vm11, %v4624_v27  ;;  %v4625_v31 = vcombine.low %v3219_v6, %v3222_v28  ;;  %v3346_v20 = vld [vmem:[#allocation2 + $0x158] sm:$0xff]  ;;  %p4915_p11 = scmp.ne.s32.totalorder %s6414_s5, %s4914_s23  ;;  %p4922_p1 = scmp.lt.s32.totalorder %s4920_s29, %s4914_s23 }
 0x142   : > { %1403 = vst.msk [vmem:[#allocation2 + $0x148] sm:$0xff] %vm1392_vm7, %v1365_v58 }
 0x143   : > { %1948 = vst.msk [vmem:[#allocation2 + $0x148] sm:$0xff] %vm1937_vm8, %v1910_v23  ;;  %v3350_v39 = vld [vmem:[#allocation2 + $0x178] sm:$0xff]  ;;  %p4916_p12 = pnand %p4915_p11, %p5052_p5  ;;  %p4923_p2 = por %p4922_p1, %p4921_p0 }
 0x144   : > { %v2231_v32 = vpop.permute.xlu0 %2230  ;;  %3302 = vst.msk [vmem:[#allocation2 + $0x1f8] sm:$0xff] %vm325_vm11, %v4625_v31  ;;  %v3354_v48 = vld [vmem:[#allocation2 + $0x198] sm:$0xff] }
 0x145   : > { %v846_v30 = vpop.permute.xlu1 %845  ;;  %2280 = vst.msk [vmem:[#allocation2 + $0x148] sm:$0xff] %vm2258_vm9, %v2231_v32  ;;  %v3341_v33 = vld [vmem:[#allocation2 + $0x130] sm:$0xff]  ;;  %p4917_p13 = pneg %p4916_p12 }
 0x146   : > { %884 = vst.msk [vmem:[#allocation2 + $0x140] sm:$0xff] %vm873_vm12, %v846_v30  ;;  %v3358_v0 = vld [vmem:[#allocation2 + $0x1b8] sm:$0xff] }
 0x147   : > { %1219 = vst.msk [vmem:[#allocation2 + $0x140] sm:$0xff] %vm1197_vm13, %v1170_v50  ;;  %p4924_p3 = pnand %p4923_p2, %p4917_p13 }
 0x148   : > { %2281 = vst.msk [vmem:[#allocation2 + $0x150] sm:$0xff] %vm2260_vm10, %v2231_v32  ;;  %3889 = vmatmul.mubr.bf16.gmra.mrb[32].mxu1 %v3337_v29  ;;  %v3362_v12 = vld [vmem:[#allocation2 + $0x1d8] sm:$0xff] }
 0x149   : > { %4662 = vmatprep.mubr.msk.bf16.mxu1 %vm325_vm11, %v3342_v47  ;;  %v2426_v2 = vpop.permute.xlu1 %2425 }
 0x14a   : > { %2464 = vst.msk [vmem:[#allocation2 + $0x150] sm:$0xff] %vm2453_vm14, %v2426_v2 }
 0x14c   : > { %v3344_v14 = vld [vmem:[#allocation2 + $0x148] sm:$0xff] }
 0x14d   : > { %v1172_v49 = vpop.permute.xlu1 %1171  ;;  %3743 = vmatprep.mubr.bf16.mxu0 %v3344_v14  ;;  %v3366_v14 = vld [vmem:[#allocation2 + $0x1f8] sm:$0xff] }
 0x14e   : > { %1222 = vst.msk [vmem:[#allocation2 + $0x168] sm:$0xff] %vm1199_vm6, %v1172_v49  ;;  %v2971_v35 = vpop.permute.xlu0 %2970  ;;  %v3343_v26 = vld [vmem:[#allocation2 + $0x140] sm:$0xff] }
 0x14f   : > { %3009 = vst.msk [vmem:[#allocation2 + $0x150] sm:$0xff] %vm2998_vm15, %v2971_v35  ;;  %3744 = vmatmul.mubr.bf16.gmra.mrb[40].mxu0 %v3343_v26 }
 0x150   : > { %3897 = vmatmul.mubr.bf16.gmra.mrb[36].mxu1 %v3341_v33 }
 0x151   : > { %4663 = vmatprep.mubr.msk.bf16.mxu1 %vm325_vm11, %v3346_v20 }
 0x152   : > { %v1367_v37 = vpop.permute.xlu0 %1366  ;;  %v1912_v38 = vpop.permute.xlu1 %1911 }
 0x153   : > { %1404 = vst.msk [vmem:[#allocation2 + $0x168] sm:$0xff] %vm1392_vm7, %v1367_v37 }
 0x154   : > { %1949 = vst.msk [vmem:[#allocation2 + $0x168] sm:$0xff] %vm1937_vm8, %v1912_v38 }
 0x156   : > { %v848_v34 = vpop.permute.xlu0 %847  ;;  %v3345_v36 = vld [vmem:[#allocation2 + $0x150] sm:$0xff]  ;;  %v2233_v40 = vpop.permute.xlu1 %2232 }
 0x157   : > { %885 = vst.msk [vmem:[#allocation2 + $0x160] sm:$0xff] %vm873_vm12, %v848_v34 }
 0x158   : > { %3905 = vmatmul.mubr.bf16.gmra.mrb[40].mxu1 %v3345_v36  ;;  %2282 = vst.msk [vmem:[#allocation2 + $0x168] sm:$0xff] %vm2258_vm9, %v2233_v40  ;;  %v6267_v36 = vld [vmem:[%s6465_s2] ss:$0 sm:$0xff] }
 0x159   : > { %2283 = vst.msk [vmem:[#allocation2 + $0x170] sm:$0xff] %vm2260_vm10, %v2233_v40  ;;  %4664 = vmatprep.mubr.msk.bf16.mxu1 %vm325_vm11, %v3350_v39 }
 0x15a   : > { %1221 = vst.msk [vmem:[#allocation2 + $0x160] sm:$0xff] %vm1197_vm13, %v1172_v49  ;;  %v2428_v24 = vpop.permute.xlu0 %2427 }
 0x15b   : > { %2465 = vst.msk [vmem:[#allocation2 + $0x170] sm:$0xff] %vm2453_vm14, %v2428_v24 }
 0x15e   : > { %v1174_v41 = vpop.permute.xlu0 %1173 }
 0x15f   : > { %v3348_v42 = vld [vmem:[#allocation2 + $0x168] sm:$0xff]  ;;  %1224 = vst.msk [vmem:[#allocation2 + $0x188] sm:$0xff] %vm1199_vm6, %v1174_v41 }
 0x160   : > { %3751 = vmatprep.mubr.bf16.mxu0 %v3348_v42  ;;  %v2973_v44 = vpop.permute.xlu1 %2972 }
 0x161   : > { %v3347_v43 = vld [vmem:[#allocation2 + $0x160] sm:$0xff]  ;;  %3010 = vst.msk [vmem:[#allocation2 + $0x170] sm:$0xff] %vm2998_vm15, %v2973_v44 }
 0x162   : > { %3752 = vmatmul.mubr.bf16.gmra.mrb[44].mxu0 %v3347_v43  ;;  %v6272_v43 = vld [vmem:[%s6466_s3] ss:$0 sm:$0xff] }
 0x164   : > { %v1369_v45 = vpop.permute.xlu1 %1368  ;;  %v1914_v46 = vpop.permute.xlu0 %1913 }
 0x165   : > { %1405 = vst.msk [vmem:[#allocation2 + $0x188] sm:$0xff] %vm1392_vm7, %v1369_v45 }
 0x166   : > { %1950 = vst.msk [vmem:[#allocation2 + $0x188] sm:$0xff] %vm1937_vm8, %v1914_v46 }
 0x168   : > { %v850_v50 = vpop.permute.xlu1 %849  ;;  %v3349_v51 = vld [vmem:[#allocation2 + $0x170] sm:$0xff] }
 0x169   : > { %886 = vst.msk [vmem:[#allocation2 + $0x180] sm:$0xff] %vm873_vm12, %v850_v50  ;;  %3913 = vmatmul.mubr.bf16.gmra.mrb[44].mxu1 %v3349_v51 }
 0x16a   : > { %1223 = vst.msk [vmem:[#allocation2 + $0x180] sm:$0xff] %vm1197_vm13, %v1174_v41  ;;  %4665 = vmatprep.mubr.msk.bf16.mxu1 %vm325_vm11, %v3354_v48 }
 0x16c   : > { %v2235_v52 = vpop.permute.xlu0 %2234 }
 0x16d   : > { %2284 = vst.msk [vmem:[#allocation2 + $0x188] sm:$0xff] %vm2258_vm9, %v2235_v52  ;;  %v2430_v55 = vpop.permute.xlu1 %2429 }
 0x16e   : > { %2285 = vst.msk [vmem:[#allocation2 + $0x190] sm:$0xff] %vm2260_vm10, %v2235_v52 }
 0x16f   : > { %2466 = vst.msk [vmem:[#allocation2 + $0x190] sm:$0xff] %vm2453_vm14, %v2430_v55 }
 0x171   : > { %v1176_v57 = vpop.permute.xlu1 %1175  ;;  %v3351_v61 = vld [vmem:[#allocation2 + $0x180] sm:$0xff] }
 0x172   : > { %1226 = vst.msk [vmem:[#allocation2 + $0x1a8] sm:$0xff] %vm1199_vm6, %v1176_v57  ;;  %v2975_v59 = vpop.permute.xlu0 %2974 }
 0x173   : > { %3011 = vst.msk [vmem:[#allocation2 + $0x190] sm:$0xff] %vm2998_vm15, %v2975_v59 }
 0x174   : > { %v3352_v60 = vld [vmem:[#allocation2 + $0x188] sm:$0xff] }
 0x175   : > { %3759 = vmatprep.mubr.bf16.mxu0 %v3352_v60 }
 0x176   : > { %3760 = vmatmul.mubr.bf16.gmra.mrb[48].mxu0 %v3351_v61  ;;  %v1371_v62 = vpop.permute.xlu0 %1370 }
 0x177   : > { %1406 = vst.msk [vmem:[#allocation2 + $0x1a8] sm:$0xff] %vm1392_vm7, %v1371_v62 }
 0x17a   : > { %v1916_v63 = vpop.permute.xlu1 %1915  ;;  %v852_v3 = vpop.permute.xlu0 %851  ;;  %v3353_v4 = vld [vmem:[#allocation2 + $0x190] sm:$0xff] }
 0x17b   : > { %1951 = vst.msk [vmem:[#allocation2 + $0x1a8] sm:$0xff] %vm1937_vm8, %v1916_v63  ;;  %3921 = vmatmul.mubr.bf16.gmra.mrb[48].mxu1 %v3353_v4 }
 0x17c   : > { %887 = vst.msk [vmem:[#allocation2 + $0x1a0] sm:$0xff] %vm873_vm12, %v852_v3  ;;  %4666 = vmatprep.mubr.msk.bf16.mxu1 %vm325_vm11, %v3358_v0 }
 0x17d   : > { %1225 = vst.msk [vmem:[#allocation2 + $0x1a0] sm:$0xff] %vm1197_vm13, %v1176_v57 }
 0x17e   : > { %v2237_v5 = vpop.permute.xlu1 %2236  ;;  %v2432_v54 = vpop.permute.xlu0 %2431 }
 0x17f   : > { %2286 = vst.msk [vmem:[#allocation2 + $0x1a8] sm:$0xff] %vm2258_vm9, %v2237_v5 }
 0x180   : > { %2287 = vst.msk [vmem:[#allocation2 + $0x1b0] sm:$0xff] %vm2260_vm10, %v2237_v5 }
 0x181   : > { %2467 = vst.msk [vmem:[#allocation2 + $0x1b0] sm:$0xff] %vm2453_vm14, %v2432_v54 }
 0x182   : > { %v1178_v7 = vpop.permute.xlu0 %1177 }
 0x183   : > { %1228 = vst.msk [vmem:[#allocation2 + $0x1c8] sm:$0xff] %vm1199_vm6, %v1178_v7 }
 0x184   : > { %v3355_v8 = vld [vmem:[#allocation2 + $0x1a0] sm:$0xff]  ;;  %v2977_v9 = vpop.permute.xlu1 %2976  ;;  %v4693_v11 = vpop.f32.mrb[0].mxu0 }
 0x185   : > { %3012 = vst.msk [vmem:[#allocation2 + $0x1b0] sm:$0xff] %vm2998_vm15, %v2977_v9  ;;  %v4694_v13 = vpop.f32.mrb[1].mxu0 }
 0x186   : > { %v3356_v58 = vld [vmem:[#allocation2 + $0x1a8] sm:$0xff]  ;;  %v4695_v16 = vadd.f32 %v4694_v13, %v4693_v11  ;;  %v4696_v18 = vpop.f32.mrb[2].mxu0 }
 0x187   : > { %3767 = vmatprep.mubr.bf16.mxu0 %v3356_v58  ;;  %v4697_v17 = vpop.f32.mrb[3].mxu0 }
 0x188   : > { %3768 = vmatmul.mubr.bf16.gmra.mrb[52].mxu0 %v3355_v8  ;;  %v1373_v10 = vpop.permute.xlu1 %1372  ;;  %v4698_v21 = vadd.f32 %v4697_v17, %v4696_v18 }
 0x189   : > { %1407 = vst.msk [vmem:[#allocation2 + $0x1c8] sm:$0xff] %vm1392_vm7, %v1373_v10 }
 0x18a   : > { %v1918_v56 = vpop.permute.xlu0 %1917 }
 0x18b   : > { %1952 = vst.msk [vmem:[#allocation2 + $0x1c8] sm:$0xff] %vm1937_vm8, %v1918_v56 }
 0x18c   : > { %v854_v15 = vpop.permute.xlu1 %853  ;;  %v3357_v53 = vld [vmem:[#allocation2 + $0x1b0] sm:$0xff] }
 0x18d   : > { %888 = vst.msk [vmem:[#allocation2 + $0x1c0] sm:$0xff] %vm873_vm12, %v854_v15  ;;  %3929 = vmatmul.mubr.bf16.gmra.mrb[52].mxu1 %v3357_v53 }
 0x18e   : > { %1227 = vst.msk [vmem:[#allocation2 + $0x1c0] sm:$0xff] %vm1197_vm13, %v1178_v7  ;;  %v2239_v19 = vpop.permute.xlu0 %2238  ;;  %4667 = vmatprep.mubr.msk.bf16.mxu1 %vm325_vm11, %v3362_v12 }
 0x18f   : > { %2288 = vst.msk [vmem:[#allocation2 + $0x1c8] sm:$0xff] %vm2258_vm9, %v2239_v19  ;;  %v4699_v23 = vpop.f32.mrb[4].mxu0 }
 0x190   : > { %2289 = vst.msk [vmem:[#allocation2 + $0x1d0] sm:$0xff] %vm2260_vm10, %v2239_v19  ;;  %v2434_v22 = vpop.permute.xlu1 %2433  ;;  %v4700_v1 = vpop.f32.mrb[5].mxu0 }
 0x191   : > { %2468 = vst.msk [vmem:[#allocation2 + $0x1d0] sm:$0xff] %vm2453_vm14, %v2434_v22  ;;  %v6248_v25 = vadd.f32 %v4700_v1, %v4699_v23  ;;  %v4702_v27 = vpop.f32.mrb[6].mxu0 }
 0x192   : > { %v4703_v28 = vpop.f32.mrb[7].mxu0 }
 0x193   : > { %v6251_v31 = vadd.f32 %v4703_v28, %v4702_v27 }
 0x194   : > { %v1180_v6 = vpop.permute.xlu1 %1179 }
 0x195   : > { %1230 = vst.msk [vmem:[#allocation2 + $0x1e8] sm:$0xff] %vm1199_vm6, %v1180_v6  ;;  %v3359_v47 = vld [vmem:[#allocation2 + $0x1c0] sm:$0xff] }
 0x196   : > { %v3360_v30 = vld [vmem:[#allocation2 + $0x1c8] sm:$0xff] }
 0x197   : > { %3775 = vmatprep.mubr.bf16.mxu0 %v3360_v30 }
 0x198   : > { %3776 = vmatmul.mubr.bf16.gmra.mrb[56].mxu0 %v3359_v47 }
 0x199   : > { %v2979_v29 = vpop.permute.xlu0 %2978 }
 0x19a   : > { %3013 = vst.msk [vmem:[#allocation2 + $0x1d0] sm:$0xff] %vm2998_vm15, %v2979_v29  ;;  %v1920_v2 = vpop.permute.xlu1 %1919 }
 0x19d   : > { %v1375_v32 = vpop.permute.xlu0 %1374 }
 0x19e   : > { %1408 = vst.msk [vmem:[#allocation2 + $0x1e8] sm:$0xff] %vm1392_vm7, %v1375_v32  ;;  %v2241_v38 = vpop.permute.xlu1 %2240 }
 0x19f   : > { %v4705_v33 = vpop.f32.mrb[8].mxu0  ;;  %1953 = vst.msk [vmem:[#allocation2 + $0x1e8] sm:$0xff] %vm1937_vm8, %v1920_v2 }
 0x1a0   : > { %v4706_v49 = vpop.f32.mrb[9].mxu0  ;;  %2290 = vst.msk [vmem:[#allocation2 + $0x1e8] sm:$0xff] %vm2258_vm9, %v2241_v38 }
 0x1a1   : > { %v6256_v20 = vadd.f32 %v4706_v49, %v4705_v33  ;;  %v4708_v35 = vpop.f32.mrb[10].mxu0  ;;  %v856_v26 = vpop.permute.xlu0 %855  ;;  %v3361_v37 = vld [vmem:[#allocation2 + $0x1d0] sm:$0xff]  ;;  %2291 = vst.msk [vmem:[#allocation2 + $0x1f0] sm:$0xff] %vm2260_vm10, %v2241_v38 }
 0x1a2   : > { %889 = vst.msk [vmem:[#allocation2 + $0x1e0] sm:$0xff] %vm873_vm12, %v856_v26  ;;  %3937 = vmatmul.mubr.bf16.gmra.mrb[56].mxu1 %v3361_v37  ;;  %v4709_v39 = vpop.f32.mrb[11].mxu0  ;;  %v3826_v34 = vpop.f32.mrb[0].mxu1 }
 0x1a3   : > { %1229 = vst.msk [vmem:[#allocation2 + $0x1e0] sm:$0xff] %vm1197_vm13, %v1180_v6  ;;  %4668 = vmatprep.mubr.msk.bf16.mxu1 %vm325_vm11, %v3366_v14  ;;  %v4710_v40 = vadd.f32 %v4709_v39, %v4708_v35  ;;  %v3827_v24 = vadd.f32 %v4695_v16, %v3826_v34  ;;  %v3828_v41 = vpop.f32.mrb[1].mxu1 }
 0x1a4   : > { %v3829_v44 = vpop.f32.mrb[2].mxu1 }
 0x1a5   : > { %v2436_v42 = vpop.permute.xlu0 %2435  ;;  %v3960_v45 = vmul.f32 %v6267_v36, %v3827_v24  ;;  %v3830_v46 = vadd.f32 %v4698_v21, %v3829_v44  ;;  %v3831_v48 = vpop.f32.mrb[3].mxu1 }
 0x1a6   : > { %2469 = vst.msk [vmem:[#allocation2 + $0x1f0] sm:$0xff] %vm2453_vm14, %v2436_v42 }
 0x1a7   : > { %v3999_v50 = vadd.f32 %v6272_v43, %v3960_v45  ;;  %v3961_v51 = vmul.f32 %v6267_v36, %v3830_v46  ;;  %v3364_v52 = vld [vmem:[#allocation2 + $0x1e8] sm:$0xff] }
 0x1a8   : > { %3783 = vmatprep.mubr.bf16.mxu0 %v3364_v52  ;;  %v2981_v60 = vpop.permute.xlu1 %2980 }
 0x1a9   : > { %v4031_v57 = vmax.f32 %v3999_v50, 0.0  ;;  %v4000_v59 = vadd.f32 %v6272_v43, %v3961_v51  ;;  %3014 = vst.msk [vmem:[#allocation2 + $0x1f0] sm:$0xff] %vm2998_vm15, %v2981_v60 }
 0x1aa   : > { %v3363_v55 = vld [vmem:[#allocation2 + $0x1e0] sm:$0xff] }
 0x1ab   : > { %3784 = vmatmul.mubr.bf16.gmra.mrb[60].mxu0 %v3363_v55  ;;  %4064 = vst.msk [vmem:[%s6282_s20] sm:$0xff] %vm4063_vm0, %v4031_v57  ;;  %v4032_v61 = vmax.f32 %v4000_v59, 0.0 }
 0x1ad   : > { %4065 = vst.msk [vmem:[%s6282_s20 + $0x8] sm:$0xff] %vm4063_vm0, %v4032_v61 }
 0x1af   : > { %v4711_v62 = vpop.f32.mrb[12].mxu0 }
 0x1b0   : > { %v4712_v63 = vpop.f32.mrb[13].mxu0  ;;  %v3365_v9 = vld [vmem:[#allocation2 + $0x1f0] sm:$0xff] }
 0x1b1   : > { %v4713_v0 = vadd.f32 %v4712_v63, %v4711_v62  ;;  %v4714_v3 = vpop.f32.mrb[14].mxu0  ;;  %v3834_v5 = vpop.f32.mrb[4].mxu1  ;;  %3945 = vmatmul.mubr.bf16.gmra.mrb[60].mxu1 %v3365_v9 }
 0x1b2   : > { %v4715_v4 = vpop.f32.mrb[15].mxu0  ;;  %v3835_v7 = vadd.f32 %v6248_v25, %v3834_v5  ;;  %v3836_v58 = vpop.f32.mrb[5].mxu1 }
 0x1b3   : > { %v4716_v54 = vadd.f32 %v4715_v4, %v4714_v3  ;;  %v3837_v8 = vpop.f32.mrb[6].mxu1 }
 0x1b4   : > { %v3962_v10 = vmul.f32 %v6267_v36, %v3835_v7  ;;  %v3838_v56 = vadd.f32 %v6251_v31, %v3837_v8  ;;  %v3839_v11 = vpop.f32.mrb[7].mxu1 }
 0x1b6   : > { %v4001_v12 = vadd.f32 %v6272_v43, %v3962_v10  ;;  %v3963_v13 = vmul.f32 %v6267_v36, %v3838_v56 }
 0x1b8   : > { %v4033_v15 = vmax.f32 %v4001_v12, 0.0  ;;  %v4002_v53 = vadd.f32 %v6272_v43, %v3963_v13 }
 0x1ba   : > { %4066 = vst.msk [vmem:[%s6282_s20 + $0x10] sm:$0xff] %vm4063_vm0, %v4033_v15  ;;  %v4034_v16 = vmax.f32 %v4002_v53, 0.0 }
 0x1bc   : > { %4067 = vst.msk [vmem:[%s6282_s20 + $0x18] sm:$0xff] %vm4063_vm0, %v4034_v16 }
 0x1c0   : > { %v4717_v18 = vpop.f32.mrb[16].mxu0 }
 0x1c1   : > { %v4718_v17 = vpop.f32.mrb[17].mxu0 }
 0x1c2   : > { %v4719_v19 = vadd.f32 %v4718_v17, %v4717_v18  ;;  %v4720_v21 = vpop.f32.mrb[18].mxu0 }
 0x1c3   : > { %v4721_v22 = vpop.f32.mrb[19].mxu0  ;;  %v3842_v1 = vpop.f32.mrb[8].mxu1 }
 0x1c4   : > { %v4722_v23 = vadd.f32 %v4721_v22, %v4720_v21  ;;  %v3843_v6 = vadd.f32 %v6256_v20, %v3842_v1  ;;  %v3844_v25 = vpop.f32.mrb[9].mxu1 }
 0x1c5   : > { %v3845_v27 = vpop.f32.mrb[10].mxu1 }
 0x1c6   : > { %v3964_v28 = vmul.f32 %v6267_v36, %v3843_v6  ;;  %v3846_v29 = vadd.f32 %v4710_v40, %v3845_v27  ;;  %v3847_v30 = vpop.f32.mrb[11].mxu1 }
 0x1c8   : > { %v4003_v31 = vadd.f32 %v6272_v43, %v3964_v28  ;;  %v3965_v47 = vmul.f32 %v6267_v36, %v3846_v29 }
 0x1ca   : > { %v4035_v32 = vmax.f32 %v4003_v31, 0.0  ;;  %v4004_v2 = vadd.f32 %v6272_v43, %v3965_v47 }
 0x1cc   : > { %4068 = vst.msk [vmem:[%s6282_s20 + $0x20] sm:$0xff] %vm4063_vm0, %v4035_v32  ;;  %v4036_v14 = vmax.f32 %v4004_v2, 0.0 }
 0x1ce   : > { %4069 = vst.msk [vmem:[%s6282_s20 + $0x28] sm:$0xff] %vm4063_vm0, %v4036_v14 }
 0x1d0   : > { %v4723_v33 = vpop.f32.mrb[20].mxu0 }
 0x1d1   : > { %v4724_v49 = vpop.f32.mrb[21].mxu0 }
 0x1d2   : > { %v4725_v20 = vadd.f32 %v4724_v49, %v4723_v33  ;;  %v4726_v35 = vpop.f32.mrb[22].mxu0 }
 0x1d3   : > { %v4727_v26 = vpop.f32.mrb[23].mxu0  ;;  %v3850_v38 = vpop.f32.mrb[12].mxu1 }
 0x1d4   : > { %v4728_v37 = vadd.f32 %v4727_v26, %v4726_v35  ;;  %v3851_v39 = vadd.f32 %v4713_v0, %v3850_v38  ;;  %v3852_v34 = vpop.f32.mrb[13].mxu1 }
 0x1d5   : > { %v3853_v40 = vpop.f32.mrb[14].mxu1 }
 0x1d6   : > { %v3966_v24 = vmul.f32 %v6267_v36, %v3851_v39  ;;  %v3854_v41 = vadd.f32 %v4716_v54, %v3853_v40  ;;  %v3855_v42 = vpop.f32.mrb[15].mxu1 }
 0x1d8   : > { %v4005_v44 = vadd.f32 %v6272_v43, %v3966_v24  ;;  %v3967_v45 = vmul.f32 %v6267_v36, %v3854_v41 }
 0x1da   : > { %v4037_v46 = vmax.f32 %v4005_v44, 0.0  ;;  %v4006_v48 = vadd.f32 %v6272_v43, %v3967_v45 }
 0x1dc   : > { %4070 = vst.msk [vmem:[%s6282_s20 + $0x30] sm:$0xff] %vm4063_vm0, %v4037_v46  ;;  %v4038_v50 = vmax.f32 %v4006_v48, 0.0 }
 0x1de   : > { %4071 = vst.msk [vmem:[%s6282_s20 + $0x38] sm:$0xff] %vm4063_vm0, %v4038_v50 }
 0x1e0   : > { %v4729_v51 = vpop.f32.mrb[24].mxu0 }
 0x1e1   : > { %v4730_v52 = vpop.f32.mrb[25].mxu0 }
 0x1e2   : > { %v4731_v55 = vadd.f32 %v4730_v52, %v4729_v51  ;;  %v4732_v57 = vpop.f32.mrb[26].mxu0 }
 0x1e3   : > { %v4733_v59 = vpop.f32.mrb[27].mxu0 }
 0x1e4   : > { %v4734_v60 = vadd.f32 %v4733_v59, %v4732_v57 }
 0x1e7   : > { %v3858_v61 = vpop.f32.mrb[16].mxu1 }
 0x1e8   : > { %v3859_v62 = vadd.f32 %v4719_v19, %v3858_v61  ;;  %v3860_v63 = vpop.f32.mrb[17].mxu1 }
 0x1e9   : > { %v3861_v0 = vpop.f32.mrb[18].mxu1 }
 0x1ea   : > { %v3968_v3 = vmul.f32 %v6267_v36, %v3859_v62  ;;  %v3862_v4 = vadd.f32 %v4722_v23, %v3861_v0  ;;  %v3863_v5 = vpop.f32.mrb[19].mxu1 }
 0x1ec   : > { %v4007_v54 = vadd.f32 %v6272_v43, %v3968_v3  ;;  %v3969_v7 = vmul.f32 %v6267_v36, %v3862_v4 }
 0x1ee   : > { %v4039_v8 = vmax.f32 %v4007_v54, 0.0  ;;  %v4008_v9 = vadd.f32 %v6272_v43, %v3969_v7 }
 0x1f0   : > { %v4735_v58 = vpop.f32.mrb[28].mxu0  ;;  %4072 = vst.msk [vmem:[%s6282_s20 + $0x40] sm:$0xff] %vm4063_vm0, %v4039_v8  ;;  %v4040_v12 = vmax.f32 %v4008_v9, 0.0 }
 0x1f1   : > { %v4736_v10 = vpop.f32.mrb[29].mxu0 }
 0x1f2   : > { %v4737_v56 = vadd.f32 %v4736_v10, %v4735_v58  ;;  %v4738_v11 = vpop.f32.mrb[30].mxu0  ;;  %4073 = vst.msk [vmem:[%s6282_s20 + $0x48] sm:$0xff] %vm4063_vm0, %v4040_v12 }
 0x1f3   : > { %v4739_v13 = vpop.f32.mrb[31].mxu0 }
 0x1f4   : > { %v4740_v15 = vadd.f32 %v4739_v13, %v4738_v11 }
 0x1f6   : > { %v3866_v53 = vpop.f32.mrb[20].mxu1 }
 0x1f7   : > { %v3867_v16 = vadd.f32 %v4725_v20, %v3866_v53  ;;  %v3868_v18 = vpop.f32.mrb[21].mxu1 }
 0x1f8   : > { %v3869_v17 = vpop.f32.mrb[22].mxu1 }
 0x1f9   : > { %v3970_v19 = vmul.f32 %v6267_v36, %v3867_v16  ;;  %v3870_v21 = vadd.f32 %v4728_v37, %v3869_v17  ;;  %v3871_v22 = vpop.f32.mrb[23].mxu1 }
 0x1fb   : > { %v4009_v23 = vadd.f32 %v6272_v43, %v3970_v19  ;;  %v3971_v1 = vmul.f32 %v6267_v36, %v3870_v21 }
 0x1fd   : > { %v4041_v6 = vmax.f32 %v4009_v23, 0.0  ;;  %v4010_v25 = vadd.f32 %v6272_v43, %v3971_v1 }
 0x1ff   : > { %4074 = vst.msk [vmem:[%s6282_s20 + $0x50] sm:$0xff] %vm4063_vm0, %v4041_v6  ;;  %v4042_v29 = vmax.f32 %v4010_v25, 0.0 }
 0x201   : > { %v4741_v27 = vpop.f32.mrb[32].mxu0  ;;  %4075 = vst.msk [vmem:[%s6282_s20 + $0x58] sm:$0xff] %vm4063_vm0, %v4042_v29 }
 0x202   : > { %v4742_v28 = vpop.f32.mrb[33].mxu0 }
 0x203   : > { %v4743_v30 = vadd.f32 %v4742_v28, %v4741_v27  ;;  %v4744_v31 = vpop.f32.mrb[34].mxu0 }
 0x204   : > { %v4745_v47 = vpop.f32.mrb[35].mxu0 }
 0x205   : > { %v4746_v32 = vadd.f32 %v4745_v47, %v4744_v31 }
 0x20a   : > { %v3874_v2 = vpop.f32.mrb[24].mxu1 }
 0x20b   : > { %v3875_v33 = vadd.f32 %v4731_v55, %v3874_v2  ;;  %v3876_v49 = vpop.f32.mrb[25].mxu1 }
 0x20c   : > { %v3877_v14 = vpop.f32.mrb[26].mxu1 }
 0x20d   : > { %v3972_v35 = vmul.f32 %v6267_v36, %v3875_v33  ;;  %v3878_v26 = vadd.f32 %v4734_v60, %v3877_v14  ;;  %v3879_v37 = vpop.f32.mrb[27].mxu1 }
 0x20f   : > { %v4011_v40 = vadd.f32 %v6272_v43, %v3972_v35  ;;  %v3973_v24 = vmul.f32 %v6267_v36, %v3878_v26 }
 0x211   : > { %v4747_v20 = vpop.f32.mrb[36].mxu0  ;;  %v4043_v44 = vmax.f32 %v4011_v40, 0.0  ;;  %v4012_v45 = vadd.f32 %v6272_v43, %v3973_v24 }
 0x212   : > { %v4748_v38 = vpop.f32.mrb[37].mxu0 }
 0x213   : > { %v4749_v39 = vadd.f32 %v4748_v38, %v4747_v20  ;;  %v4750_v34 = vpop.f32.mrb[38].mxu0  ;;  %v3882_v46 = vpop.f32.mrb[28].mxu1  ;;  %4076 = vst.msk [vmem:[%s6282_s20 + $0x60] sm:$0xff] %vm4063_vm0, %v4043_v44  ;;  %v4044_v48 = vmax.f32 %v4012_v45, 0.0 }
 0x214   : > { %v4751_v41 = vpop.f32.mrb[39].mxu0  ;;  %v3883_v50 = vadd.f32 %v4737_v56, %v3882_v46  ;;  %v3884_v51 = vpop.f32.mrb[29].mxu1 }
 0x215   : > { %v4752_v42 = vadd.f32 %v4751_v41, %v4750_v34  ;;  %v3885_v52 = vpop.f32.mrb[30].mxu1  ;;  %4077 = vst.msk [vmem:[%s6282_s20 + $0x68] sm:$0xff] %vm4063_vm0, %v4044_v48 }
 0x216   : > { %v3974_v55 = vmul.f32 %v6267_v36, %v3883_v50  ;;  %v3886_v57 = vadd.f32 %v4740_v15, %v3885_v52  ;;  %v3887_v59 = vpop.f32.mrb[31].mxu1 }
 0x218   : > { %v4013_v60 = vadd.f32 %v6272_v43, %v3974_v55  ;;  %v3975_v61 = vmul.f32 %v6267_v36, %v3886_v57 }
 0x21a   : > { %v4045_v62 = vmax.f32 %v4013_v60, 0.0  ;;  %v4014_v63 = vadd.f32 %v6272_v43, %v3975_v61 }
 0x21b   : > { %v3890_v0 = vpop.f32.mrb[32].mxu1 }
 0x21c   : > { %4078 = vst.msk [vmem:[%s6282_s20 + $0x70] sm:$0xff] %vm4063_vm0, %v4045_v62  ;;  %v4046_v3 = vmax.f32 %v4014_v63, 0.0  ;;  %v3891_v4 = vadd.f32 %v4743_v30, %v3890_v0  ;;  %v3892_v5 = vpop.f32.mrb[33].mxu1 }
 0x21d   : > { %v3893_v54 = vpop.f32.mrb[34].mxu1 }
 0x21e   : > { %4079 = vst.msk [vmem:[%s6282_s20 + $0x78] sm:$0xff] %vm4063_vm0, %v4046_v3  ;;  %v3976_v7 = vmul.f32 %v6267_v36, %v3891_v4  ;;  %v3894_v58 = vadd.f32 %v4746_v32, %v3893_v54  ;;  %v3895_v8 = vpop.f32.mrb[35].mxu1 }
 0x220   : > { %v4015_v9 = vadd.f32 %v6272_v43, %v3976_v7  ;;  %v3977_v10 = vmul.f32 %v6267_v36, %v3894_v58 }
 0x222   : > { %v4047_v56 = vmax.f32 %v4015_v9, 0.0  ;;  %v4016_v11 = vadd.f32 %v6272_v43, %v3977_v10  ;;  %v4753_v13 = vpop.f32.mrb[40].mxu0 }
 0x223   : > { %v3898_v12 = vpop.f32.mrb[36].mxu1  ;;  %v4754_v18 = vpop.f32.mrb[41].mxu0 }
 0x224   : > { %4080 = vst.msk [vmem:[%s6282_s20 + $0x80] sm:$0xff] %vm4063_vm0, %v4047_v56  ;;  %v4048_v15 = vmax.f32 %v4016_v11, 0.0  ;;  %v3899_v53 = vadd.f32 %v4749_v39, %v3898_v12  ;;  %v3900_v16 = vpop.f32.mrb[37].mxu1  ;;  %v4755_v19 = vadd.f32 %v4754_v18, %v4753_v13  ;;  %v4756_v21 = vpop.f32.mrb[42].mxu0 }
 0x225   : > { %v3901_v17 = vpop.f32.mrb[38].mxu1  ;;  %v4757_v6 = vpop.f32.mrb[43].mxu0 }
 0x226   : > { %4081 = vst.msk [vmem:[%s6282_s20 + $0x88] sm:$0xff] %vm4063_vm0, %v4048_v15  ;;  %v3978_v22 = vmul.f32 %v6267_v36, %v3899_v53  ;;  %v3902_v23 = vadd.f32 %v4752_v42, %v3901_v17  ;;  %v3903_v1 = vpop.f32.mrb[39].mxu1  ;;  %v4758_v25 = vadd.f32 %v4757_v6, %v4756_v21 }
 0x228   : > { %v4017_v27 = vadd.f32 %v6272_v43, %v3978_v22  ;;  %v3979_v28 = vmul.f32 %v6267_v36, %v3902_v23 }
 0x22a   : > { %v4049_v29 = vmax.f32 %v4017_v27, 0.0  ;;  %v4018_v30 = vadd.f32 %v6272_v43, %v3979_v28 }
 0x22b   : > { %v3906_v31 = vpop.f32.mrb[40].mxu1 }
 0x22c   : > { %4082 = vst.msk [vmem:[%s6282_s20 + $0x90] sm:$0xff] %vm4063_vm0, %v4049_v29  ;;  %v4050_v47 = vmax.f32 %v4018_v30, 0.0  ;;  %v3907_v32 = vadd.f32 %v4755_v19, %v3906_v31  ;;  %v3908_v2 = vpop.f32.mrb[41].mxu1 }
 0x22d   : > { %v3909_v33 = vpop.f32.mrb[42].mxu1 }
 0x22e   : > { %4083 = vst.msk [vmem:[%s6282_s20 + $0x98] sm:$0xff] %vm4063_vm0, %v4050_v47  ;;  %v3980_v49 = vmul.f32 %v6267_v36, %v3907_v32  ;;  %v3910_v14 = vadd.f32 %v4758_v25, %v3909_v33  ;;  %v3911_v20 = vpop.f32.mrb[43].mxu1 }
 0x230   : > { %v4019_v35 = vadd.f32 %v6272_v43, %v3980_v49  ;;  %v3981_v26 = vmul.f32 %v6267_v36, %v3910_v14 }
 0x232   : > { %v4051_v37 = vmax.f32 %v4019_v35, 0.0  ;;  %v4020_v38 = vadd.f32 %v6272_v43, %v3981_v26 }
 0x234   : > { %4084 = vst.msk [vmem:[%s6282_s20 + $0xa0] sm:$0xff] %vm4063_vm0, %v4051_v37  ;;  %v4052_v39 = vmax.f32 %v4020_v38, 0.0 }
 0x235   : > { %v4759_v34 = vpop.f32.mrb[44].mxu0 }
 0x236   : > { %v4760_v40 = vpop.f32.mrb[45].mxu0  ;;  %4085 = vst.msk [vmem:[%s6282_s20 + $0xa8] sm:$0xff] %vm4063_vm0, %v4052_v39 }
 0x237   : > { %v4761_v24 = vadd.f32 %v4760_v40, %v4759_v34  ;;  %v4762_v41 = vpop.f32.mrb[46].mxu0 }
 0x238   : > { %v4763_v42 = vpop.f32.mrb[47].mxu0 }
 0x239   : > { %v4764_v44 = vadd.f32 %v4763_v42, %v4762_v41 }
 0x23c   : > { %v3914_v45 = vpop.f32.mrb[44].mxu1 }
 0x23d   : > { %v3915_v46 = vadd.f32 %v4761_v24, %v3914_v45  ;;  %v3916_v48 = vpop.f32.mrb[45].mxu1 }
 0x23e   : > { %v3917_v50 = vpop.f32.mrb[46].mxu1 }
 0x23f   : > { %v3982_v51 = vmul.f32 %v6267_v36, %v3915_v46  ;;  %v3918_v52 = vadd.f32 %v4764_v44, %v3917_v50  ;;  %v3919_v55 = vpop.f32.mrb[47].mxu1 }
 0x241   : > { %v4021_v57 = vadd.f32 %v6272_v43, %v3982_v51  ;;  %v3983_v59 = vmul.f32 %v6267_v36, %v3918_v52 }
 0x243   : > { %v4053_v60 = vmax.f32 %v4021_v57, 0.0  ;;  %v4022_v61 = vadd.f32 %v6272_v43, %v3983_v59 }
 0x245   : > { %4086 = vst.msk [vmem:[%s6282_s20 + $0xb0] sm:$0xff] %vm4063_vm0, %v4053_v60  ;;  %v4054_v62 = vmax.f32 %v4022_v61, 0.0 }
 0x247   : > { %4087 = vst.msk [vmem:[%s6282_s20 + $0xb8] sm:$0xff] %vm4063_vm0, %v4054_v62 }
 0x249   : > { %v4765_v63 = vpop.f32.mrb[48].mxu0 }
 0x24a   : > { %v4766_v0 = vpop.f32.mrb[49].mxu0 }
 0x24b   : > { %v4767_v3 = vadd.f32 %v4766_v0, %v4765_v63  ;;  %v4768_v4 = vpop.f32.mrb[50].mxu0 }
 0x24c   : > { %v4769_v5 = vpop.f32.mrb[51].mxu0 }
 0x24d   : > { %v4770_v54 = vadd.f32 %v4769_v5, %v4768_v4 }
 0x24e   : > { %v3922_v7 = vpop.f32.mrb[48].mxu1 }
 0x24f   : > { %v3923_v58 = vadd.f32 %v4767_v3, %v3922_v7  ;;  %v3924_v8 = vpop.f32.mrb[49].mxu1 }
 0x250   : > { %v3925_v9 = vpop.f32.mrb[50].mxu1 }
 0x251   : > { %v3984_v10 = vmul.f32 %v6267_v36, %v3923_v58  ;;  %v3926_v56 = vadd.f32 %v4770_v54, %v3925_v9  ;;  %v3927_v11 = vpop.f32.mrb[51].mxu1 }
 0x253   : > { %v4023_v12 = vadd.f32 %v6272_v43, %v3984_v10  ;;  %v3985_v13 = vmul.f32 %v6267_v36, %v3926_v56 }
 0x255   : > { %v4055_v15 = vmax.f32 %v4023_v12, 0.0  ;;  %v4024_v53 = vadd.f32 %v6272_v43, %v3985_v13 }
 0x257   : > { %4088 = vst.msk [vmem:[%s6282_s20 + $0xc0] sm:$0xff] %vm4063_vm0, %v4055_v15  ;;  %v4056_v16 = vmax.f32 %v4024_v53, 0.0 }
 0x259   : > { %4089 = vst.msk [vmem:[%s6282_s20 + $0xc8] sm:$0xff] %vm4063_vm0, %v4056_v16 }
 0x25b   : > { %v4771_v18 = vpop.f32.mrb[52].mxu0 }
 0x25c   : > { %v4772_v17 = vpop.f32.mrb[53].mxu0 }
 0x25d   : > { %v4773_v19 = vadd.f32 %v4772_v17, %v4771_v18  ;;  %v4774_v21 = vpop.f32.mrb[54].mxu0 }
 0x25e   : > { %v4775_v22 = vpop.f32.mrb[55].mxu0 }
 0x25f   : > { %v4776_v23 = vadd.f32 %v4775_v22, %v4774_v21 }
 0x260   : > { %v3930_v1 = vpop.f32.mrb[52].mxu1 }
 0x261   : > { %v3931_v6 = vadd.f32 %v4773_v19, %v3930_v1  ;;  %v3932_v25 = vpop.f32.mrb[53].mxu1 }
 0x262   : > { %v3933_v27 = vpop.f32.mrb[54].mxu1 }
 0x263   : > { %v3986_v28 = vmul.f32 %v6267_v36, %v3931_v6  ;;  %v3934_v29 = vadd.f32 %v4776_v23, %v3933_v27  ;;  %v3935_v30 = vpop.f32.mrb[55].mxu1 }
 0x265   : > { %v4025_v31 = vadd.f32 %v6272_v43, %v3986_v28  ;;  %v3987_v47 = vmul.f32 %v6267_v36, %v3934_v29 }
 0x267   : > { %v4057_v32 = vmax.f32 %v4025_v31, 0.0  ;;  %v4026_v2 = vadd.f32 %v6272_v43, %v3987_v47 }
 0x269   : > { %4090 = vst.msk [vmem:[%s6282_s20 + $0xd0] sm:$0xff] %vm4063_vm0, %v4057_v32  ;;  %v4058_v33 = vmax.f32 %v4026_v2, 0.0 }
 0x26b   : > { %4091 = vst.msk [vmem:[%s6282_s20 + $0xd8] sm:$0xff] %vm4063_vm0, %v4058_v33  ;;  %v4777_v49 = vpop.f32.mrb[56].mxu0 }
 0x26c   : > { %v4778_v14 = vpop.f32.mrb[57].mxu0 }
 0x26d   : > { %v4779_v20 = vadd.f32 %v4778_v14, %v4777_v49  ;;  %v4780_v35 = vpop.f32.mrb[58].mxu0 }
 0x26e   : > { %v4781_v26 = vpop.f32.mrb[59].mxu0 }
 0x26f   : > { %v4782_v37 = vadd.f32 %v4781_v26, %v4780_v35 }
 0x275   : > { %v3938_v38 = vpop.f32.mrb[56].mxu1 }
 0x276   : > { %v3939_v39 = vadd.f32 %v4779_v20, %v3938_v38  ;;  %v3940_v34 = vpop.f32.mrb[57].mxu1 }
 0x277   : > { %v3941_v40 = vpop.f32.mrb[58].mxu1 }
 0x278   : > { %v3988_v24 = vmul.f32 %v6267_v36, %v3939_v39  ;;  %v3942_v41 = vadd.f32 %v4782_v37, %v3941_v40  ;;  %v3943_v42 = vpop.f32.mrb[59].mxu1 }
 0x27a   : > { %v4027_v44 = vadd.f32 %v6272_v43, %v3988_v24  ;;  %v3989_v45 = vmul.f32 %v6267_v36, %v3942_v41 }
 0x27c   : > { %v4059_v46 = vmax.f32 %v4027_v44, 0.0  ;;  %v4028_v48 = vadd.f32 %v6272_v43, %v3989_v45 }
 0x27e   : > { %4092 = vst.msk [vmem:[%s6282_s20 + $0xe0] sm:$0xff] %vm4063_vm0, %v4059_v46  ;;  %v4060_v50 = vmax.f32 %v4028_v48, 0.0  ;;  %v4783_v51 = vpop.f32.mrb[60].mxu0 }
 0x27f   : > { %v4784_v52 = vpop.f32.mrb[61].mxu0 }
 0x280   : > { %4093 = vst.msk [vmem:[%s6282_s20 + $0xe8] sm:$0xff] %vm4063_vm0, %v4060_v50  ;;  %v4785_v55 = vadd.f32 %v4784_v52, %v4783_v51  ;;  %v4786_v57 = vpop.f32.mrb[62].mxu0 }
 0x281   : > { %v4787_v59 = vpop.f32.mrb[63].mxu0 }
 0x282   : > { %v4788_v60 = vadd.f32 %v4787_v59, %v4786_v57 }
 0x284   : > { %v3946_v61 = vpop.f32.mrb[60].mxu1 }
 0x285   : > { %v3947_v62 = vadd.f32 %v4785_v55, %v3946_v61  ;;  %v3948_v63 = vpop.f32.mrb[61].mxu1 }
 0x286   : > { %v3949_v0 = vpop.f32.mrb[62].mxu1 }
 0x287   : > { %v3990_v3 = vmul.f32 %v6267_v36, %v3947_v62  ;;  %v3950_v4 = vadd.f32 %v4788_v60, %v3949_v0  ;;  %v3951_v5 = vpop.f32.mrb[63].mxu1 }
 0x289   : > { %v4029_v54 = vadd.f32 %v6272_v43, %v3990_v3  ;;  %v3991_v7 = vmul.f32 %v6267_v36, %v3950_v4 }
 0x28b   : > { %v4061_v58 = vmax.f32 %v4029_v54, 0.0  ;;  %v4030_v8 = vadd.f32 %v6272_v43, %v3991_v7 }
 0x28d   : > { %4094 = vst.msk [vmem:[%s6282_s20 + $0xf0] sm:$0xff] %vm4063_vm0, %v4061_v58  ;;  %v4062_v9 = vmax.f32 %v4030_v8, 0.0 }
 0x28f   : > { %4095 = vst.msk [vmem:[%s6282_s20 + $0xf8] sm:$0xff] %vm4063_vm0, %v4062_v9 }
 0x290   : > { %4927 = shalt.err (!%p4924_p3)
}
 0x291   : > { %s4928_s30 = scalar_lea.hbm %s6412_s9, 4096  ;;  %s4932_s11 = scalar_lea.hbm %s6467_s4, 8192 }
 0x292   : > { %p4929_p4 = scmp.ne.s32.totalorder %s6412_s9, %s4928_s30  ;;  %p4933_p9 = scmp.lt.u32.totalorder %s6412_s9, %s6467_s4 }
 0x293   : > { %p4934_p10 = scmp.lt.u32.totalorder %s4932_s11, %s4928_s30  ;;  %p4936_p12 = scmp.lt.u32.totalorder %s4928_s30, %s6412_s9 }
 0x294   : > { %p4930_p7 = pnand %p4929_p4, %p5052_p5 }
 0x295   : > { %p4935_p11 = por %p4934_p10, %p4933_p9 }
 0x296   : > { %p4931_p8 = pneg %p4930_p7 }
 0x297   : > { %p4937_p13 = por %p4936_p12, %p4935_p11 }
 0x299   : > { %p4938_p0 = pnand %p4937_p13, %p4931_p8 }
 0x29b   : > { %4941 = shalt.err (!%p4938_p0)
}
 0x29c   : > { %s4987_s14 = smov 128   ;;  %s4988_s20 = smov 8  }
 0x29d   : > { %4790 = dma.vmem_to_hbm [thread:$0]  (%p5052_p5), %s6414_s5, 4096, %s6412_s9, %s6422_s19, %s4987_s14, %s4987_s14, %s4988_s20  }
 0x29e PF: > { %p4796_p1 = scmp.ge.s32.totalorder %s4976_s18, 2  ;;  %s4125_s22 = sand.u32 1, %s4964_s15  }
 0x29f   : > { %s4126_s6 = scalar_lea.sflag [#allocation4], %s4125_s22 }
 0x2a0   : > { %p4793_p2 = pnand %p4796_p1, %p5056_p6 }
 0x2a2   : > { %4959 = dma.done.wait (!%p4793_p2), %s4126_s6, 4096  }
 0x2a3   : > { %4961 = vsyncadd (!%p4793_p2), %s4126_s6, 4294963200  ;;  %p14_p3 = scmp.ge.s32.totalorder %s5039_s21, 4   ;;  %s6474_s15 = smov %s4968_s16 }
 0x2a4   : > { %s6475_s16 = smov %s4972_s17  ;;  %s6476_s17 = smov %s5050_s24 }
 0x2a5   : > { %s6477_s18 = smov %s5039_s21  ;;  %16 = sbr.rel (!%p14_p3) target bundleno = 3 (0x3), region = 73 }
 0x2ac   :  { %4131 = vsyncpa [#allocation4], 1 }
 0x2ad   :  { %4133 = vsyncpa [#allocation4 + $0x1], 1 }

</bundles_post_ra>
